<compile_context>
chip_gen: v6e
topology: v6e:2x2x1
jax: 0.10.0
libtpu: 0.0.40
codegen_flags: <defaults>
</compile_context>

<pallas_src>
import math
from functools import partial

import numpy as np
import jax
import jax.numpy as jnp
from jax.experimental import pallas as pl
from jax.experimental.pallas import tpu as pltpu

LN_EPS = 1e-5          # nn.LayerNorm default
NEG_INF = -1e9         # finite "masked" value (robust vs. -inf NaNs)

_WEIGHT_NAMES = ["wq", "bq", "wk", "bk", "wv", "bv", "wo", "bo",
                 "g1", "be1", "w1", "b1", "w2", "b2", "g2", "be2"]


# ---------------------------------------------------------------------------
# Kernel
# ---------------------------------------------------------------------------

def _layer_norm(x, gamma, beta):
    mean = jnp.mean(x, axis=-1, keepdims=True)
    var = jnp.mean((x - mean) ** 2, axis=-1, keepdims=True)
    return (x - mean) * jax.lax.rsqrt(var + LN_EPS) * gamma + beta


def _encoder_kernel(num_heads,
                    x_ref, mask_ref,
                    wq_ref, bq_ref, wk_ref, bk_ref, wv_ref, bv_ref,
                    wo_ref, bo_ref, g1_ref, be1_ref,
                    w1_ref, b1_ref, w2_ref, b2_ref, g2_ref, be2_ref,
                    out_ref):
    """Full encoder stack (all layers) for one batch element, all in VMEM."""
    x = x_ref[0]          # (S, E) embedded + position-encoded input
    mask = mask_ref[0]    # (S, S) additive mask: 0.0 visible, NEG_INF masked
    num_layers = wq_ref.shape[0]
    S, E = x.shape
    H = num_heads
    D = E // H
    inv_sqrt_d = 1.0 / math.sqrt(D)

    for l in range(num_layers):          # static unroll over layers
        # ---------------- Multi-head attention ----------------
        # Fused projections: one (S,E)@(E,E) matmul per Q/K/V.
        q_all = jnp.dot(x, wq_ref[l], preferred_element_type=jnp.float32) + bq_ref[l]
        k_all = jnp.dot(x, wk_ref[l], preferred_element_type=jnp.float32) + bk_ref[l]
        v_all = jnp.dot(x, wv_ref[l], preferred_element_type=jnp.float32) + bv_ref[l]

        # Split heads into a leading batch axis: (H, S, D) via static lane
        # slices stacked along a new leading dim (cheap, layout-friendly).
        qh = jnp.stack([q_all[:, h * D:(h + 1) * D] for h in range(H)], axis=0)
        kh = jnp.stack([k_all[:, h * D:(h + 1) * D] for h in range(H)], axis=0)
        vh = jnp.stack([v_all[:, h * D:(h + 1) * D] for h in range(H)], axis=0)

        # Batched scores over all heads: (H, Sq, Sk)
        scores = jnp.einsum('hqd,hkd->hqk', qh, kh,
                            preferred_element_type=jnp.float32) * inv_sqrt_d
        scores = scores + mask[None, :, :]                 # additive mask
        m = jnp.max(scores, axis=-1, keepdims=True)
        p = jnp.exp(scores - m)
        p = p * pl.reciprocal(jnp.sum(p, axis=-1, keepdims=True), approx=True)

        # Batched PV: (H, Sq, D); merge heads back to (S, E) (head h -> cols h*D..)
        ctx = jnp.einsum('hqk,hkd->hqd', p, vh,
                         preferred_element_type=jnp.float32)
        attn = jnp.concatenate([ctx[h] for h in range(H)], axis=-1)   # (S, E)

        proj = jnp.dot(attn, wo_ref[l], preferred_element_type=jnp.float32) + bo_ref[l]
        x = _layer_norm(x + proj, g1_ref[l], be1_ref[l])   # residual = query

        # ---------------- Per-position FFN (no Python loop / concat) ----------
        # h1[s,f] = sum_e x[s,e] * w1[l,s,e,f]     (each position has own Linear)
        h1 = jnp.sum(x[:, :, None] * w1_ref[l], axis=1) + b1_ref[l]   # (S, F)
        h2 = jnp.sum(h1[:, :, None] * w2_ref[l], axis=1) + b2_ref[l]  # (S, E)
        x = _layer_norm(x + h2, g2_ref[l], be2_ref[l])

    out_ref[0] = x


# ---------------------------------------------------------------------------
# Pallas wrapper: one call for the whole encoder stack, grid over batch
# ---------------------------------------------------------------------------

def encoder_stack(x, mask_add, stacked, num_heads):
    B, S, E = x.shape

    def const_map(rank):
        return lambda b: (0,) * rank

    weight_specs, weight_args = [], []
    for name in _WEIGHT_NAMES:
        arr = stacked[name]
        weight_specs.append(pl.BlockSpec(arr.shape, const_map(arr.ndim)))
        weight_args.append(arr)

    return pl.pallas_call(
        partial(_encoder_kernel, num_heads),
        out_shape=jax.ShapeDtypeStruct((B, S, E), jnp.float32),
        grid=(B,),
        in_specs=[
            pl.BlockSpec((1, S, E), lambda b: (b, 0, 0)),
            pl.BlockSpec((1, S, S), lambda b: (b, 0, 0)),
            *weight_specs,
        ],
        out_specs=pl.BlockSpec((1, S, E), lambda b: (b, 0, 0)),
        compiler_params=pltpu.CompilerParams(
            dimension_semantics=("parallel",)),
    )(x, mask_add, *weight_args)


# ---------------------------------------------------------------------------
# Parameters (deterministic synthetic init, matching the torch module layout)
# ---------------------------------------------------------------------------

def _init_linear(key, fan_in, fan_out, scale=0.1):
    kw, kb = jax.random.split(key)
    w = jax.random.normal(kw, (fan_in, fan_out), jnp.float32) * scale
    b = jax.random.normal(kb, (fan_out,), jnp.float32) * scale
    return w, b


def make_pos_table(max_len, E):
    pos = np.arange(max_len)[:, None].astype(np.float64)
    idx = np.arange(E)[None, :]
    angles = pos / np.power(10000, 2.0 * (idx // 2) / E)
    angles[:, 0::2] = np.sin(angles[:, 0::2])
    angles[:, 1::2] = np.cos(angles[:, 1::2])
    return jnp.asarray(angles, jnp.float32)


def init_encoder_params(key, vocab_size, max_seq_len, num_layers, E, H, F):
    D = E // H
    keys = jax.random.split(key, 1 + num_layers)
    emb = jax.random.normal(keys[0], (vocab_size, E), jnp.float32) * 0.1
    emb = emb.at[0].set(0.0)                       # padding_idx = 0

    layers = {name: [] for name in _WEIGHT_NAMES}
    for l in range(num_layers):
        lk = jax.random.split(keys[1 + l], 4 + 2 * max_seq_len)

        def heads(k):
            ws, bs = [], []
            for kk in jax.random.split(k, H):
                w, b = _init_linear(kk, E, D)      # per-head Wq/Wk/Wv like torch
                ws.append(w); bs.append(b)
            # head h occupies output columns [h*D:(h+1)*D]
            return jnp.concatenate(ws, axis=1), jnp.concatenate(bs, axis=0)

        wq, bq = heads(lk[0])
        wk, bk = heads(lk[1])
        wv, bv = heads(lk[2])
        wo, bo = _init_linear(lk[3], E, E)

        w1s, b1s, w2s, b2s = [], [], [], []
        for i in range(max_seq_len):               # per-position FFN linears
            w1, b1 = _init_linear(lk[4 + 2 * i], E, F)
            w2, b2 = _init_linear(lk[5 + 2 * i], F, E)
            w1s.append(w1); b1s.append(b1); w2s.append(w2); b2s.append(b2)

        layers["wq"].append(wq);  layers["bq"].append(bq.reshape(1, E))
        layers["wk"].append(wk);  layers["bk"].append(bk.reshape(1, E))
        layers["wv"].append(wv);  layers["bv"].append(bv.reshape(1, E))
        layers["wo"].append(wo);  layers["bo"].append(bo.reshape(1, E))
        layers["g1"].append(jnp.ones((1, E), jnp.float32))
        layers["be1"].append(jnp.zeros((1, E), jnp.float32))
        layers["w1"].append(jnp.stack(w1s)); layers["b1"].append(jnp.stack(b1s))
        layers["w2"].append(jnp.stack(w2s)); layers["b2"].append(jnp.stack(b2s))
        layers["g2"].append(jnp.ones((1, E), jnp.float32))
        layers["be2"].append(jnp.zeros((1, E), jnp.float32))

    stacked = {k: jnp.stack(v) for k, v in layers.items()}
    return dict(emb=emb, pos=make_pos_table(max_seq_len, E), layers=stacked)


# ---------------------------------------------------------------------------
# Plain-JAX glue (embedding gather, positional ids, mask construction)
# ---------------------------------------------------------------------------

def position_ids(lengths, max_length):
    ids = [list(range(L)) + [0] * (max_length - L) for L in lengths]
    return jnp.asarray(ids, jnp.int32)


def encoder_forward(params, seq, seq_lengths, num_heads):
    B, S = seq.shape
    x = params["emb"][seq] + params["pos"][position_ids(seq_lengths, S)]
    # get_padding_mask(seq, seq): masked where key token == 0 -> additive mask
    mask_add = jnp.where((seq == 0)[:, None, :], NEG_INF, 0.0).astype(jnp.float32)
    mask_add = jnp.broadcast_to(mask_add, (B, S, S))
    return encoder_stack(x.astype(jnp.float32), mask_add,
                         params["layers"], num_heads)


# ---------------------------------------------------------------------------
# Main
# ---------------------------------------------------------------------------

if __name__ == "__main__":
    key = jax.random.PRNGKey(0)
    B = 2
    VOCAB = 50
    SEQ_LEN = 8
    NUM_LAYERS = 2
    E, H, F = 32, 4, 64

    pkey, skey = jax.random.split(key)
    params = init_encoder_params(pkey, VOCAB, SEQ_LEN, NUM_LAYERS, E, H, F)

    seq_lengths = [8, 6]
    tokens = jax.random.randint(skey, (B, SEQ_LEN), 1, VOCAB, jnp.int32)
    valid = (jnp.arange(SEQ_LEN)[None, :]
             < jnp.asarray(seq_lengths)[:, None]).astype(jnp.int32)
    seq = tokens * valid        # token id 0 == padding

    out = encoder_forward(params, seq, seq_lengths, H)
    out = jax.block_until_ready(out)

    assert out.shape == (B, SEQ_LEN, E), out.shape
    assert bool(jnp.isfinite(out).all())
    print("KERNEL_OK")
</pallas_src>

<mosaic_0001>
module attributes {stable_mosaic.version = 11 : i64} {
  func.func @_encoder_kernel(%arg0: i32, %arg1: memref<1x8x32xf32, #tpu.memory_space<vmem>>, %arg2: memref<1x8x8xf32, #tpu.memory_space<vmem>>, %arg3: memref<2x32x32xf32, #tpu.memory_space<vmem>>, %arg4: memref<2x1x32xf32, #tpu.memory_space<vmem>>, %arg5: memref<2x32x32xf32, #tpu.memory_space<vmem>>, %arg6: memref<2x1x32xf32, #tpu.memory_space<vmem>>, %arg7: memref<2x32x32xf32, #tpu.memory_space<vmem>>, %arg8: memref<2x1x32xf32, #tpu.memory_space<vmem>>, %arg9: memref<2x32x32xf32, #tpu.memory_space<vmem>>, %arg10: memref<2x1x32xf32, #tpu.memory_space<vmem>>, %arg11: memref<2x1x32xf32, #tpu.memory_space<vmem>>, %arg12: memref<2x1x32xf32, #tpu.memory_space<vmem>>, %arg13: memref<2x8x32x64xf32, #tpu.memory_space<vmem>>, %arg14: memref<2x8x64xf32, #tpu.memory_space<vmem>>, %arg15: memref<2x8x64x32xf32, #tpu.memory_space<vmem>>, %arg16: memref<2x8x32xf32, #tpu.memory_space<vmem>>, %arg17: memref<2x1x32xf32, #tpu.memory_space<vmem>>, %arg18: memref<2x1x32xf32, #tpu.memory_space<vmem>>, %arg19: memref<1x8x32xf32, #tpu.memory_space<vmem>>) attributes {dimension_semantics = [#tpu.dimension_semantics<parallel>], iteration_bounds = array<i64: 2>, scalar_prefetch = 0 : i64, scratch_operands = 0 : i64, tpu.core_type = #tpu.core_type<tc>, window_params = [{transform_indices = @transform_0, window_bounds = array<i64: 1, 8, 32>}, {transform_indices = @transform_1, window_bounds = array<i64: 1, 8, 8>}, {pipeline_mode = #tpu.pipeline_mode<synchronous>, transform_indices = @transform_2, window_bounds = array<i64: 2, 32, 32>}, {pipeline_mode = #tpu.pipeline_mode<synchronous>, transform_indices = @transform_3, window_bounds = array<i64: 2, 1, 32>}, {pipeline_mode = #tpu.pipeline_mode<synchronous>, transform_indices = @transform_4, window_bounds = array<i64: 2, 32, 32>}, {pipeline_mode = #tpu.pipeline_mode<synchronous>, transform_indices = @transform_5, window_bounds = array<i64: 2, 1, 32>}, {pipeline_mode = #tpu.pipeline_mode<synchronous>, transform_indices = @transform_6, window_bounds = array<i64: 2, 32, 32>}, {pipeline_mode = #tpu.pipeline_mode<synchronous>, transform_indices = @transform_7, window_bounds = array<i64: 2, 1, 32>}, {pipeline_mode = #tpu.pipeline_mode<synchronous>, transform_indices = @transform_8, window_bounds = array<i64: 2, 32, 32>}, {pipeline_mode = #tpu.pipeline_mode<synchronous>, transform_indices = @transform_9, window_bounds = array<i64: 2, 1, 32>}, {pipeline_mode = #tpu.pipeline_mode<synchronous>, transform_indices = @transform_10, window_bounds = array<i64: 2, 1, 32>}, {pipeline_mode = #tpu.pipeline_mode<synchronous>, transform_indices = @transform_11, window_bounds = array<i64: 2, 1, 32>}, {pipeline_mode = #tpu.pipeline_mode<synchronous>, transform_indices = @transform_12, window_bounds = array<i64: 2, 8, 32, 64>}, {pipeline_mode = #tpu.pipeline_mode<synchronous>, transform_indices = @transform_13, window_bounds = array<i64: 2, 8, 64>}, {pipeline_mode = #tpu.pipeline_mode<synchronous>, transform_indices = @transform_14, window_bounds = array<i64: 2, 8, 64, 32>}, {pipeline_mode = #tpu.pipeline_mode<synchronous>, transform_indices = @transform_15, window_bounds = array<i64: 2, 8, 32>}, {pipeline_mode = #tpu.pipeline_mode<synchronous>, transform_indices = @transform_16, window_bounds = array<i64: 2, 1, 32>}, {pipeline_mode = #tpu.pipeline_mode<synchronous>, transform_indices = @transform_17, window_bounds = array<i64: 2, 1, 32>}, {transform_indices = @transform_18, window_bounds = array<i64: 1, 8, 32>}]} {
    %c0 = arith.constant 0 : index
    %c0_0 = arith.constant 0 : index
    %c0_1 = arith.constant 0 : index
    %0 = vector.load %arg1[%c0, %c0_0, %c0_1] : memref<1x8x32xf32, #tpu.memory_space<vmem>>, vector<1x8x32xf32>
    %1 = vector.shape_cast %0 : vector<1x8x32xf32> to vector<8x32xf32>
    %c0_2 = arith.constant 0 : index
    %c0_3 = arith.constant 0 : index
    %c0_4 = arith.constant 0 : index
    %2 = vector.load %arg2[%c0_2, %c0_3, %c0_4] : memref<1x8x8xf32, #tpu.memory_space<vmem>>, vector<1x8x8xf32>
    %3 = vector.shape_cast %2 : vector<1x8x8xf32> to vector<8x8xf32>
    %c0_5 = arith.constant 0 : index
    %c0_6 = arith.constant 0 : index
    %c0_7 = arith.constant 0 : index
    %4 = vector.load %arg3[%c0_5, %c0_6, %c0_7] : memref<2x32x32xf32, #tpu.memory_space<vmem>>, vector<1x32x32xf32>
    %5 = vector.shape_cast %4 : vector<1x32x32xf32> to vector<32x32xf32>
    %cst = arith.constant dense<0.000000e+00> : vector<8x32xf32>
    %6 = tpu.matmul %1, %5, %cst {dimension_numbers = #tpu.dot_dimension_numbers<[1], [0], [0], [1], [0, 0, 1, 1], [], []>} : vector<8x32xf32>, vector<32x32xf32>, vector<8x32xf32> -> vector<8x32xf32>
    %c0_8 = arith.constant 0 : index
    %c0_9 = arith.constant 0 : index
    %c0_10 = arith.constant 0 : index
    %7 = vector.load %arg4[%c0_8, %c0_9, %c0_10] : memref<2x1x32xf32, #tpu.memory_space<vmem>>, vector<1x1x32xf32>
    %8 = vector.shape_cast %7 : vector<1x1x32xf32> to vector<1x32xf32>
    %9 = vector.broadcast %8 : vector<1x32xf32> to vector<8x32xf32>
    %10 = arith.addf %6, %9 : vector<8x32xf32>
    %c0_11 = arith.constant 0 : index
    %c0_12 = arith.constant 0 : index
    %c0_13 = arith.constant 0 : index
    %11 = vector.load %arg5[%c0_11, %c0_12, %c0_13] : memref<2x32x32xf32, #tpu.memory_space<vmem>>, vector<1x32x32xf32>
    %12 = vector.shape_cast %11 : vector<1x32x32xf32> to vector<32x32xf32>
    %cst_14 = arith.constant dense<0.000000e+00> : vector<8x32xf32>
    %13 = tpu.matmul %1, %12, %cst_14 {dimension_numbers = #tpu.dot_dimension_numbers<[1], [0], [0], [1], [0, 0, 1, 1], [], []>} : vector<8x32xf32>, vector<32x32xf32>, vector<8x32xf32> -> vector<8x32xf32>
    %c0_15 = arith.constant 0 : index
    %c0_16 = arith.constant 0 : index
    %c0_17 = arith.constant 0 : index
    %14 = vector.load %arg6[%c0_15, %c0_16, %c0_17] : memref<2x1x32xf32, #tpu.memory_space<vmem>>, vector<1x1x32xf32>
    %15 = vector.shape_cast %14 : vector<1x1x32xf32> to vector<1x32xf32>
    %16 = vector.broadcast %15 : vector<1x32xf32> to vector<8x32xf32>
    %17 = arith.addf %13, %16 : vector<8x32xf32>
    %c0_18 = arith.constant 0 : index
    %c0_19 = arith.constant 0 : index
    %c0_20 = arith.constant 0 : index
    %18 = vector.load %arg7[%c0_18, %c0_19, %c0_20] : memref<2x32x32xf32, #tpu.memory_space<vmem>>, vector<1x32x32xf32>
    %19 = vector.shape_cast %18 : vector<1x32x32xf32> to vector<32x32xf32>
    %cst_21 = arith.constant dense<0.000000e+00> : vector<8x32xf32>
    %20 = tpu.matmul %1, %19, %cst_21 {dimension_numbers = #tpu.dot_dimension_numbers<[1], [0], [0], [1], [0, 0, 1, 1], [], []>} : vector<8x32xf32>, vector<32x32xf32>, vector<8x32xf32> -> vector<8x32xf32>
    %c0_22 = arith.constant 0 : index
    %c0_23 = arith.constant 0 : index
    %c0_24 = arith.constant 0 : index
    %21 = vector.load %arg8[%c0_22, %c0_23, %c0_24] : memref<2x1x32xf32, #tpu.memory_space<vmem>>, vector<1x1x32xf32>
    %22 = vector.shape_cast %21 : vector<1x1x32xf32> to vector<1x32xf32>
    %23 = vector.broadcast %22 : vector<1x32xf32> to vector<8x32xf32>
    %24 = arith.addf %20, %23 : vector<8x32xf32>
    %25 = vector.extract_strided_slice %10 {offsets = [0, 0], sizes = [8, 8], strides = [1, 1]} : vector<8x32xf32> to vector<8x8xf32>
    %26 = vector.extract_strided_slice %10 {offsets = [0, 8], sizes = [8, 8], strides = [1, 1]} : vector<8x32xf32> to vector<8x8xf32>
    %27 = vector.extract_strided_slice %10 {offsets = [0, 16], sizes = [8, 8], strides = [1, 1]} : vector<8x32xf32> to vector<8x8xf32>
    %28 = vector.extract_strided_slice %10 {offsets = [0, 24], sizes = [8, 8], strides = [1, 1]} : vector<8x32xf32> to vector<8x8xf32>
    %29 = vector.shape_cast %25 : vector<8x8xf32> to vector<1x8x8xf32>
    %30 = vector.shape_cast %26 : vector<8x8xf32> to vector<1x8x8xf32>
    %31 = vector.shape_cast %27 : vector<8x8xf32> to vector<1x8x8xf32>
    %32 = vector.shape_cast %28 : vector<8x8xf32> to vector<1x8x8xf32>
    %33 = tpu.concatenate %29, %30, %31, %32 in 0 : vector<1x8x8xf32>, vector<1x8x8xf32>, vector<1x8x8xf32>, vector<1x8x8xf32> -> vector<4x8x8xf32>
    %34 = vector.extract_strided_slice %17 {offsets = [0, 0], sizes = [8, 8], strides = [1, 1]} : vector<8x32xf32> to vector<8x8xf32>
    %35 = vector.extract_strided_slice %17 {offsets = [0, 8], sizes = [8, 8], strides = [1, 1]} : vector<8x32xf32> to vector<8x8xf32>
    %36 = vector.extract_strided_slice %17 {offsets = [0, 16], sizes = [8, 8], strides = [1, 1]} : vector<8x32xf32> to vector<8x8xf32>
    %37 = vector.extract_strided_slice %17 {offsets = [0, 24], sizes = [8, 8], strides = [1, 1]} : vector<8x32xf32> to vector<8x8xf32>
    %38 = vector.shape_cast %34 : vector<8x8xf32> to vector<1x8x8xf32>
    %39 = vector.shape_cast %35 : vector<8x8xf32> to vector<1x8x8xf32>
    %40 = vector.shape_cast %36 : vector<8x8xf32> to vector<1x8x8xf32>
    %41 = vector.shape_cast %37 : vector<8x8xf32> to vector<1x8x8xf32>
    %42 = tpu.concatenate %38, %39, %40, %41 in 0 : vector<1x8x8xf32>, vector<1x8x8xf32>, vector<1x8x8xf32>, vector<1x8x8xf32> -> vector<4x8x8xf32>
    %43 = vector.extract_strided_slice %24 {offsets = [0, 0], sizes = [8, 8], strides = [1, 1]} : vector<8x32xf32> to vector<8x8xf32>
    %44 = vector.extract_strided_slice %24 {offsets = [0, 8], sizes = [8, 8], strides = [1, 1]} : vector<8x32xf32> to vector<8x8xf32>
    %45 = vector.extract_strided_slice %24 {offsets = [0, 16], sizes = [8, 8], strides = [1, 1]} : vector<8x32xf32> to vector<8x8xf32>
    %46 = vector.extract_strided_slice %24 {offsets = [0, 24], sizes = [8, 8], strides = [1, 1]} : vector<8x32xf32> to vector<8x8xf32>
    %47 = vector.shape_cast %43 : vector<8x8xf32> to vector<1x8x8xf32>
    %48 = vector.shape_cast %44 : vector<8x8xf32> to vector<1x8x8xf32>
    %49 = vector.shape_cast %45 : vector<8x8xf32> to vector<1x8x8xf32>
    %50 = vector.shape_cast %46 : vector<8x8xf32> to vector<1x8x8xf32>
    %51 = tpu.concatenate %47, %48, %49, %50 in 0 : vector<1x8x8xf32>, vector<1x8x8xf32>, vector<1x8x8xf32>, vector<1x8x8xf32> -> vector<4x8x8xf32>
    "tpu.trace_start"() <{level = 10 : i32, message = "hqd,hkd->hqk"}> : () -> ()
    %cst_25 = arith.constant dense<0.000000e+00> : vector<4x8x8xf32>
    %52 = tpu.matmul %33, %42, %cst_25 {dimension_numbers = #tpu.dot_dimension_numbers<[2], [2], [1], [1], [0, 0, 0, 1, 1, 1], [0], [0]>} : vector<4x8x8xf32>, vector<4x8x8xf32>, vector<4x8x8xf32> -> vector<4x8x8xf32>
    "tpu.trace_stop"() : () -> ()
    %cst_26 = arith.constant 0.353553385 : f32
    %53 = vector.broadcast %cst_26 : f32 to vector<4x8x8xf32>
    %54 = arith.mulf %52, %53 : vector<4x8x8xf32>
    %55 = vector.shape_cast %3 : vector<8x8xf32> to vector<1x8x8xf32>
    %56 = vector.broadcast %55 : vector<1x8x8xf32> to vector<4x8x8xf32>
    %57 = arith.addf %54, %56 : vector<4x8x8xf32>
    %cst_27 = arith.constant dense<0xFF800000> : vector<4x8xf32>
    %58 = vector.multi_reduction <maximumf>, %57, %cst_27 [2] : vector<4x8x8xf32> to vector<4x8xf32>
    %59 = vector.shape_cast %58 : vector<4x8xf32> to vector<4x8x1xf32>
    %60 = vector.broadcast %59 : vector<4x8x1xf32> to vector<4x8x8xf32>
    %61 = arith.subf %57, %60 : vector<4x8x8xf32>
    %62 = math.exp %61 : vector<4x8x8xf32>
    %cst_28 = arith.constant dense<0.000000e+00> : vector<4x8xf32>
    %63 = vector.multi_reduction <add>, %62, %cst_28 [2] : vector<4x8x8xf32> to vector<4x8xf32>
    %64 = vector.shape_cast %63 : vector<4x8xf32> to vector<4x8x1xf32>
    %65 = tpu.reciprocal %64 {approx = true} : vector<4x8x1xf32> -> vector<4x8x1xf32>
    %66 = vector.broadcast %65 : vector<4x8x1xf32> to vector<4x8x8xf32>
    %67 = arith.mulf %62, %66 : vector<4x8x8xf32>
    "tpu.trace_start"() <{level = 10 : i32, message = "hqk,hkd->hqd"}> : () -> ()
    %cst_29 = arith.constant dense<0.000000e+00> : vector<4x8x8xf32>
    %68 = tpu.matmul %67, %51, %cst_29 {dimension_numbers = #tpu.dot_dimension_numbers<[2], [1], [1], [2], [0, 0, 0, 1, 1, 2], [0], [0]>} : vector<4x8x8xf32>, vector<4x8x8xf32>, vector<4x8x8xf32> -> vector<4x8x8xf32>
    "tpu.trace_stop"() : () -> ()
    %69 = vector.extract_strided_slice %68 {offsets = [0, 0, 0], sizes = [1, 8, 8], strides = [1, 1, 1]} : vector<4x8x8xf32> to vector<1x8x8xf32>
    %70 = vector.shape_cast %69 : vector<1x8x8xf32> to vector<8x8xf32>
    %71 = vector.extract_strided_slice %68 {offsets = [1, 0, 0], sizes = [1, 8, 8], strides = [1, 1, 1]} : vector<4x8x8xf32> to vector<1x8x8xf32>
    %72 = vector.shape_cast %71 : vector<1x8x8xf32> to vector<8x8xf32>
    %73 = vector.extract_strided_slice %68 {offsets = [2, 0, 0], sizes = [1, 8, 8], strides = [1, 1, 1]} : vector<4x8x8xf32> to vector<1x8x8xf32>
    %74 = vector.shape_cast %73 : vector<1x8x8xf32> to vector<8x8xf32>
    %75 = vector.extract_strided_slice %68 {offsets = [3, 0, 0], sizes = [1, 8, 8], strides = [1, 1, 1]} : vector<4x8x8xf32> to vector<1x8x8xf32>
    %76 = vector.shape_cast %75 : vector<1x8x8xf32> to vector<8x8xf32>
    %77 = tpu.concatenate %70, %72, %74, %76 in 1 : vector<8x8xf32>, vector<8x8xf32>, vector<8x8xf32>, vector<8x8xf32> -> vector<8x32xf32>
    %c0_30 = arith.constant 0 : index
    %c0_31 = arith.constant 0 : index
    %c0_32 = arith.constant 0 : index
    %78 = vector.load %arg9[%c0_30, %c0_31, %c0_32] : memref<2x32x32xf32, #tpu.memory_space<vmem>>, vector<1x32x32xf32>
    %79 = vector.shape_cast %78 : vector<1x32x32xf32> to vector<32x32xf32>
    %cst_33 = arith.constant dense<0.000000e+00> : vector<8x32xf32>
    %80 = tpu.matmul %77, %79, %cst_33 {dimension_numbers = #tpu.dot_dimension_numbers<[1], [0], [0], [1], [0, 0, 1, 1], [], []>} : vector<8x32xf32>, vector<32x32xf32>, vector<8x32xf32> -> vector<8x32xf32>
    %c0_34 = arith.constant 0 : index
    %c0_35 = arith.constant 0 : index
    %c0_36 = arith.constant 0 : index
    %81 = vector.load %arg10[%c0_34, %c0_35, %c0_36] : memref<2x1x32xf32, #tpu.memory_space<vmem>>, vector<1x1x32xf32>
    %82 = vector.shape_cast %81 : vector<1x1x32xf32> to vector<1x32xf32>
    %83 = vector.broadcast %82 : vector<1x32xf32> to vector<8x32xf32>
    %84 = arith.addf %80, %83 : vector<8x32xf32>
    %85 = arith.addf %1, %84 : vector<8x32xf32>
    %c0_37 = arith.constant 0 : index
    %c0_38 = arith.constant 0 : index
    %c0_39 = arith.constant 0 : index
    %86 = vector.load %arg11[%c0_37, %c0_38, %c0_39] : memref<2x1x32xf32, #tpu.memory_space<vmem>>, vector<1x1x32xf32>
    %87 = vector.shape_cast %86 : vector<1x1x32xf32> to vector<1x32xf32>
    %c0_40 = arith.constant 0 : index
    %c0_41 = arith.constant 0 : index
    %c0_42 = arith.constant 0 : index
    %88 = vector.load %arg12[%c0_40, %c0_41, %c0_42] : memref<2x1x32xf32, #tpu.memory_space<vmem>>, vector<1x1x32xf32>
    %89 = vector.shape_cast %88 : vector<1x1x32xf32> to vector<1x32xf32>
    %cst_43 = arith.constant dense<0.000000e+00> : vector<8xf32>
    %90 = vector.multi_reduction <add>, %85, %cst_43 [1] : vector<8x32xf32> to vector<8xf32>
    %91 = vector.shape_cast %90 : vector<8xf32> to vector<8x1xf32>
    %cst_44 = arith.constant 3.200000e+01 : f32
    %92 = vector.broadcast %cst_44 : f32 to vector<8x1xf32>
    %93 = arith.divf %91, %92 : vector<8x1xf32>
    %94 = vector.broadcast %93 : vector<8x1xf32> to vector<8x32xf32>
    %95 = arith.subf %85, %94 : vector<8x32xf32>
    %96 = arith.mulf %95, %95 : vector<8x32xf32>
    %cst_45 = arith.constant dense<0.000000e+00> : vector<8xf32>
    %97 = vector.multi_reduction <add>, %96, %cst_45 [1] : vector<8x32xf32> to vector<8xf32>
    %98 = vector.shape_cast %97 : vector<8xf32> to vector<8x1xf32>
    %cst_46 = arith.constant 3.200000e+01 : f32
    %99 = vector.broadcast %cst_46 : f32 to vector<8x1xf32>
    %100 = arith.divf %98, %99 : vector<8x1xf32>
    %101 = vector.broadcast %93 : vector<8x1xf32> to vector<8x32xf32>
    %102 = arith.subf %85, %101 : vector<8x32xf32>
    %cst_47 = arith.constant 9.99999974E-6 : f32
    %103 = vector.broadcast %cst_47 : f32 to vector<8x1xf32>
    %104 = arith.addf %100, %103 : vector<8x1xf32>
    %105 = math.rsqrt %104 : vector<8x1xf32>
    %106 = vector.broadcast %105 : vector<8x1xf32> to vector<8x32xf32>
    %107 = arith.mulf %102, %106 : vector<8x32xf32>
    %108 = vector.broadcast %87 : vector<1x32xf32> to vector<8x32xf32>
    %109 = arith.mulf %107, %108 : vector<8x32xf32>
    %110 = vector.broadcast %89 : vector<1x32xf32> to vector<8x32xf32>
    %111 = arith.addf %109, %110 : vector<8x32xf32>
    %112 = vector.shape_cast %111 : vector<8x32xf32> to vector<8x32x1xf32>
    %c0_48 = arith.constant 0 : index
    %c0_49 = arith.constant 0 : index
    %c0_50 = arith.constant 0 : index
    %c0_51 = arith.constant 0 : index
    %113 = vector.load %arg13[%c0_48, %c0_49, %c0_50, %c0_51] : memref<2x8x32x64xf32, #tpu.memory_space<vmem>>, vector<1x8x32x64xf32>
    %114 = vector.shape_cast %113 : vector<1x8x32x64xf32> to vector<8x32x64xf32>
    %115 = vector.broadcast %112 : vector<8x32x1xf32> to vector<8x32x64xf32>
    %116 = arith.mulf %115, %114 : vector<8x32x64xf32>
    %cst_52 = arith.constant dense<0.000000e+00> : vector<8x64xf32>
    %117 = vector.multi_reduction <add>, %116, %cst_52 [1] : vector<8x32x64xf32> to vector<8x64xf32>
    %c0_53 = arith.constant 0 : index
    %c0_54 = arith.constant 0 : index
    %c0_55 = arith.constant 0 : index
    %118 = vector.load %arg14[%c0_53, %c0_54, %c0_55] : memref<2x8x64xf32, #tpu.memory_space<vmem>>, vector<1x8x64xf32>
    %119 = vector.shape_cast %118 : vector<1x8x64xf32> to vector<8x64xf32>
    %120 = arith.addf %117, %119 : vector<8x64xf32>
    %121 = vector.shape_cast %120 : vector<8x64xf32> to vector<8x64x1xf32>
    %c0_56 = arith.constant 0 : index
    %c0_57 = arith.constant 0 : index
    %c0_58 = arith.constant 0 : index
    %c0_59 = arith.constant 0 : index
    %122 = vector.load %arg15[%c0_56, %c0_57, %c0_58, %c0_59] : memref<2x8x64x32xf32, #tpu.memory_space<vmem>>, vector<1x8x64x32xf32>
    %123 = vector.shape_cast %122 : vector<1x8x64x32xf32> to vector<8x64x32xf32>
    %124 = vector.broadcast %121 : vector<8x64x1xf32> to vector<8x64x32xf32>
    %125 = arith.mulf %124, %123 : vector<8x64x32xf32>
    %cst_60 = arith.constant dense<0.000000e+00> : vector<8x32xf32>
    %126 = vector.multi_reduction <add>, %125, %cst_60 [1] : vector<8x64x32xf32> to vector<8x32xf32>
    %c0_61 = arith.constant 0 : index
    %c0_62 = arith.constant 0 : index
    %c0_63 = arith.constant 0 : index
    %127 = vector.load %arg16[%c0_61, %c0_62, %c0_63] : memref<2x8x32xf32, #tpu.memory_space<vmem>>, vector<1x8x32xf32>
    %128 = vector.shape_cast %127 : vector<1x8x32xf32> to vector<8x32xf32>
    %129 = arith.addf %126, %128 : vector<8x32xf32>
    %130 = arith.addf %111, %129 : vector<8x32xf32>
    %c0_64 = arith.constant 0 : index
    %c0_65 = arith.constant 0 : index
    %c0_66 = arith.constant 0 : index
    %131 = vector.load %arg17[%c0_64, %c0_65, %c0_66] : memref<2x1x32xf32, #tpu.memory_space<vmem>>, vector<1x1x32xf32>
    %132 = vector.shape_cast %131 : vector<1x1x32xf32> to vector<1x32xf32>
    %c0_67 = arith.constant 0 : index
    %c0_68 = arith.constant 0 : index
    %c0_69 = arith.constant 0 : index
    %133 = vector.load %arg18[%c0_67, %c0_68, %c0_69] : memref<2x1x32xf32, #tpu.memory_space<vmem>>, vector<1x1x32xf32>
    %134 = vector.shape_cast %133 : vector<1x1x32xf32> to vector<1x32xf32>
    %cst_70 = arith.constant dense<0.000000e+00> : vector<8xf32>
    %135 = vector.multi_reduction <add>, %130, %cst_70 [1] : vector<8x32xf32> to vector<8xf32>
    %136 = vector.shape_cast %135 : vector<8xf32> to vector<8x1xf32>
    %cst_71 = arith.constant 3.200000e+01 : f32
    %137 = vector.broadcast %cst_71 : f32 to vector<8x1xf32>
    %138 = arith.divf %136, %137 : vector<8x1xf32>
    %139 = vector.broadcast %138 : vector<8x1xf32> to vector<8x32xf32>
    %140 = arith.subf %130, %139 : vector<8x32xf32>
    %141 = arith.mulf %140, %140 : vector<8x32xf32>
    %cst_72 = arith.constant dense<0.000000e+00> : vector<8xf32>
    %142 = vector.multi_reduction <add>, %141, %cst_72 [1] : vector<8x32xf32> to vector<8xf32>
    %143 = vector.shape_cast %142 : vector<8xf32> to vector<8x1xf32>
    %cst_73 = arith.constant 3.200000e+01 : f32
    %144 = vector.broadcast %cst_73 : f32 to vector<8x1xf32>
    %145 = arith.divf %143, %144 : vector<8x1xf32>
    %146 = vector.broadcast %138 : vector<8x1xf32> to vector<8x32xf32>
    %147 = arith.subf %130, %146 : vector<8x32xf32>
    %cst_74 = arith.constant 9.99999974E-6 : f32
    %148 = vector.broadcast %cst_74 : f32 to vector<8x1xf32>
    %149 = arith.addf %145, %148 : vector<8x1xf32>
    %150 = math.rsqrt %149 : vector<8x1xf32>
    %151 = vector.broadcast %150 : vector<8x1xf32> to vector<8x32xf32>
    %152 = arith.mulf %147, %151 : vector<8x32xf32>
    %153 = vector.broadcast %132 : vector<1x32xf32> to vector<8x32xf32>
    %154 = arith.mulf %152, %153 : vector<8x32xf32>
    %155 = vector.broadcast %134 : vector<1x32xf32> to vector<8x32xf32>
    %156 = arith.addf %154, %155 : vector<8x32xf32>
    %c1 = arith.constant 1 : index
    %c0_75 = arith.constant 0 : index
    %c0_76 = arith.constant 0 : index
    %157 = vector.load %arg3[%c1, %c0_75, %c0_76] : memref<2x32x32xf32, #tpu.memory_space<vmem>>, vector<1x32x32xf32>
    %158 = vector.shape_cast %157 : vector<1x32x32xf32> to vector<32x32xf32>
    %cst_77 = arith.constant dense<0.000000e+00> : vector<8x32xf32>
    %159 = tpu.matmul %156, %158, %cst_77 {dimension_numbers = #tpu.dot_dimension_numbers<[1], [0], [0], [1], [0, 0, 1, 1], [], []>} : vector<8x32xf32>, vector<32x32xf32>, vector<8x32xf32> -> vector<8x32xf32>
    %c1_78 = arith.constant 1 : index
    %c0_79 = arith.constant 0 : index
    %c0_80 = arith.constant 0 : index
    %160 = vector.load %arg4[%c1_78, %c0_79, %c0_80] : memref<2x1x32xf32, #tpu.memory_space<vmem>>, vector<1x1x32xf32>
    %161 = vector.shape_cast %160 : vector<1x1x32xf32> to vector<1x32xf32>
    %162 = vector.broadcast %161 : vector<1x32xf32> to vector<8x32xf32>
    %163 = arith.addf %159, %162 : vector<8x32xf32>
    %c1_81 = arith.constant 1 : index
    %c0_82 = arith.constant 0 : index
    %c0_83 = arith.constant 0 : index
    %164 = vector.load %arg5[%c1_81, %c0_82, %c0_83] : memref<2x32x32xf32, #tpu.memory_space<vmem>>, vector<1x32x32xf32>
    %165 = vector.shape_cast %164 : vector<1x32x32xf32> to vector<32x32xf32>
    %cst_84 = arith.constant dense<0.000000e+00> : vector<8x32xf32>
    %166 = tpu.matmul %156, %165, %cst_84 {dimension_numbers = #tpu.dot_dimension_numbers<[1], [0], [0], [1], [0, 0, 1, 1], [], []>} : vector<8x32xf32>, vector<32x32xf32>, vector<8x32xf32> -> vector<8x32xf32>
    %c1_85 = arith.constant 1 : index
    %c0_86 = arith.constant 0 : index
    %c0_87 = arith.constant 0 : index
    %167 = vector.load %arg6[%c1_85, %c0_86, %c0_87] : memref<2x1x32xf32, #tpu.memory_space<vmem>>, vector<1x1x32xf32>
    %168 = vector.shape_cast %167 : vector<1x1x32xf32> to vector<1x32xf32>
    %169 = vector.broadcast %168 : vector<1x32xf32> to vector<8x32xf32>
    %170 = arith.addf %166, %169 : vector<8x32xf32>
    %c1_88 = arith.constant 1 : index
    %c0_89 = arith.constant 0 : index
    %c0_90 = arith.constant 0 : index
    %171 = vector.load %arg7[%c1_88, %c0_89, %c0_90] : memref<2x32x32xf32, #tpu.memory_space<vmem>>, vector<1x32x32xf32>
    %172 = vector.shape_cast %171 : vector<1x32x32xf32> to vector<32x32xf32>
    %cst_91 = arith.constant dense<0.000000e+00> : vector<8x32xf32>
    %173 = tpu.matmul %156, %172, %cst_91 {dimension_numbers = #tpu.dot_dimension_numbers<[1], [0], [0], [1], [0, 0, 1, 1], [], []>} : vector<8x32xf32>, vector<32x32xf32>, vector<8x32xf32> -> vector<8x32xf32>
    %c1_92 = arith.constant 1 : index
    %c0_93 = arith.constant 0 : index
    %c0_94 = arith.constant 0 : index
    %174 = vector.load %arg8[%c1_92, %c0_93, %c0_94] : memref<2x1x32xf32, #tpu.memory_space<vmem>>, vector<1x1x32xf32>
    %175 = vector.shape_cast %174 : vector<1x1x32xf32> to vector<1x32xf32>
    %176 = vector.broadcast %175 : vector<1x32xf32> to vector<8x32xf32>
    %177 = arith.addf %173, %176 : vector<8x32xf32>
    %178 = vector.extract_strided_slice %163 {offsets = [0, 0], sizes = [8, 8], strides = [1, 1]} : vector<8x32xf32> to vector<8x8xf32>
    %179 = vector.extract_strided_slice %163 {offsets = [0, 8], sizes = [8, 8], strides = [1, 1]} : vector<8x32xf32> to vector<8x8xf32>
    %180 = vector.extract_strided_slice %163 {offsets = [0, 16], sizes = [8, 8], strides = [1, 1]} : vector<8x32xf32> to vector<8x8xf32>
    %181 = vector.extract_strided_slice %163 {offsets = [0, 24], sizes = [8, 8], strides = [1, 1]} : vector<8x32xf32> to vector<8x8xf32>
    %182 = vector.shape_cast %178 : vector<8x8xf32> to vector<1x8x8xf32>
    %183 = vector.shape_cast %179 : vector<8x8xf32> to vector<1x8x8xf32>
    %184 = vector.shape_cast %180 : vector<8x8xf32> to vector<1x8x8xf32>
    %185 = vector.shape_cast %181 : vector<8x8xf32> to vector<1x8x8xf32>
    %186 = tpu.concatenate %182, %183, %184, %185 in 0 : vector<1x8x8xf32>, vector<1x8x8xf32>, vector<1x8x8xf32>, vector<1x8x8xf32> -> vector<4x8x8xf32>
    %187 = vector.extract_strided_slice %170 {offsets = [0, 0], sizes = [8, 8], strides = [1, 1]} : vector<8x32xf32> to vector<8x8xf32>
    %188 = vector.extract_strided_slice %170 {offsets = [0, 8], sizes = [8, 8], strides = [1, 1]} : vector<8x32xf32> to vector<8x8xf32>
    %189 = vector.extract_strided_slice %170 {offsets = [0, 16], sizes = [8, 8], strides = [1, 1]} : vector<8x32xf32> to vector<8x8xf32>
    %190 = vector.extract_strided_slice %170 {offsets = [0, 24], sizes = [8, 8], strides = [1, 1]} : vector<8x32xf32> to vector<8x8xf32>
    %191 = vector.shape_cast %187 : vector<8x8xf32> to vector<1x8x8xf32>
    %192 = vector.shape_cast %188 : vector<8x8xf32> to vector<1x8x8xf32>
    %193 = vector.shape_cast %189 : vector<8x8xf32> to vector<1x8x8xf32>
    %194 = vector.shape_cast %190 : vector<8x8xf32> to vector<1x8x8xf32>
    %195 = tpu.concatenate %191, %192, %193, %194 in 0 : vector<1x8x8xf32>, vector<1x8x8xf32>, vector<1x8x8xf32>, vector<1x8x8xf32> -> vector<4x8x8xf32>
    %196 = vector.extract_strided_slice %177 {offsets = [0, 0], sizes = [8, 8], strides = [1, 1]} : vector<8x32xf32> to vector<8x8xf32>
    %197 = vector.extract_strided_slice %177 {offsets = [0, 8], sizes = [8, 8], strides = [1, 1]} : vector<8x32xf32> to vector<8x8xf32>
    %198 = vector.extract_strided_slice %177 {offsets = [0, 16], sizes = [8, 8], strides = [1, 1]} : vector<8x32xf32> to vector<8x8xf32>
    %199 = vector.extract_strided_slice %177 {offsets = [0, 24], sizes = [8, 8], strides = [1, 1]} : vector<8x32xf32> to vector<8x8xf32>
    %200 = vector.shape_cast %196 : vector<8x8xf32> to vector<1x8x8xf32>
    %201 = vector.shape_cast %197 : vector<8x8xf32> to vector<1x8x8xf32>
    %202 = vector.shape_cast %198 : vector<8x8xf32> to vector<1x8x8xf32>
    %203 = vector.shape_cast %199 : vector<8x8xf32> to vector<1x8x8xf32>
    %204 = tpu.concatenate %200, %201, %202, %203 in 0 : vector<1x8x8xf32>, vector<1x8x8xf32>, vector<1x8x8xf32>, vector<1x8x8xf32> -> vector<4x8x8xf32>
    "tpu.trace_start"() <{level = 10 : i32, message = "hqd,hkd->hqk"}> : () -> ()
    %cst_95 = arith.constant dense<0.000000e+00> : vector<4x8x8xf32>
    %205 = tpu.matmul %186, %195, %cst_95 {dimension_numbers = #tpu.dot_dimension_numbers<[2], [2], [1], [1], [0, 0, 0, 1, 1, 1], [0], [0]>} : vector<4x8x8xf32>, vector<4x8x8xf32>, vector<4x8x8xf32> -> vector<4x8x8xf32>
    "tpu.trace_stop"() : () -> ()
    %cst_96 = arith.constant 0.353553385 : f32
    %206 = vector.broadcast %cst_96 : f32 to vector<4x8x8xf32>
    %207 = arith.mulf %205, %206 : vector<4x8x8xf32>
    %208 = vector.shape_cast %3 : vector<8x8xf32> to vector<1x8x8xf32>
    %209 = vector.broadcast %208 : vector<1x8x8xf32> to vector<4x8x8xf32>
    %210 = arith.addf %207, %209 : vector<4x8x8xf32>
    %cst_97 = arith.constant dense<0xFF800000> : vector<4x8xf32>
    %211 = vector.multi_reduction <maximumf>, %210, %cst_97 [2] : vector<4x8x8xf32> to vector<4x8xf32>
    %212 = vector.shape_cast %211 : vector<4x8xf32> to vector<4x8x1xf32>
    %213 = vector.broadcast %212 : vector<4x8x1xf32> to vector<4x8x8xf32>
    %214 = arith.subf %210, %213 : vector<4x8x8xf32>
    %215 = math.exp %214 : vector<4x8x8xf32>
    %cst_98 = arith.constant dense<0.000000e+00> : vector<4x8xf32>
    %216 = vector.multi_reduction <add>, %215, %cst_98 [2] : vector<4x8x8xf32> to vector<4x8xf32>
    %217 = vector.shape_cast %216 : vector<4x8xf32> to vector<4x8x1xf32>
    %218 = tpu.reciprocal %217 {approx = true} : vector<4x8x1xf32> -> vector<4x8x1xf32>
    %219 = vector.broadcast %218 : vector<4x8x1xf32> to vector<4x8x8xf32>
    %220 = arith.mulf %215, %219 : vector<4x8x8xf32>
    "tpu.trace_start"() <{level = 10 : i32, message = "hqk,hkd->hqd"}> : () -> ()
    %cst_99 = arith.constant dense<0.000000e+00> : vector<4x8x8xf32>
    %221 = tpu.matmul %220, %204, %cst_99 {dimension_numbers = #tpu.dot_dimension_numbers<[2], [1], [1], [2], [0, 0, 0, 1, 1, 2], [0], [0]>} : vector<4x8x8xf32>, vector<4x8x8xf32>, vector<4x8x8xf32> -> vector<4x8x8xf32>
    "tpu.trace_stop"() : () -> ()
    %222 = vector.extract_strided_slice %221 {offsets = [0, 0, 0], sizes = [1, 8, 8], strides = [1, 1, 1]} : vector<4x8x8xf32> to vector<1x8x8xf32>
    %223 = vector.shape_cast %222 : vector<1x8x8xf32> to vector<8x8xf32>
    %224 = vector.extract_strided_slice %221 {offsets = [1, 0, 0], sizes = [1, 8, 8], strides = [1, 1, 1]} : vector<4x8x8xf32> to vector<1x8x8xf32>
    %225 = vector.shape_cast %224 : vector<1x8x8xf32> to vector<8x8xf32>
    %226 = vector.extract_strided_slice %221 {offsets = [2, 0, 0], sizes = [1, 8, 8], strides = [1, 1, 1]} : vector<4x8x8xf32> to vector<1x8x8xf32>
    %227 = vector.shape_cast %226 : vector<1x8x8xf32> to vector<8x8xf32>
    %228 = vector.extract_strided_slice %221 {offsets = [3, 0, 0], sizes = [1, 8, 8], strides = [1, 1, 1]} : vector<4x8x8xf32> to vector<1x8x8xf32>
    %229 = vector.shape_cast %228 : vector<1x8x8xf32> to vector<8x8xf32>
    %230 = tpu.concatenate %223, %225, %227, %229 in 1 : vector<8x8xf32>, vector<8x8xf32>, vector<8x8xf32>, vector<8x8xf32> -> vector<8x32xf32>
    %c1_100 = arith.constant 1 : index
    %c0_101 = arith.constant 0 : index
    %c0_102 = arith.constant 0 : index
    %231 = vector.load %arg9[%c1_100, %c0_101, %c0_102] : memref<2x32x32xf32, #tpu.memory_space<vmem>>, vector<1x32x32xf32>
    %232 = vector.shape_cast %231 : vector<1x32x32xf32> to vector<32x32xf32>
    %cst_103 = arith.constant dense<0.000000e+00> : vector<8x32xf32>
    %233 = tpu.matmul %230, %232, %cst_103 {dimension_numbers = #tpu.dot_dimension_numbers<[1], [0], [0], [1], [0, 0, 1, 1], [], []>} : vector<8x32xf32>, vector<32x32xf32>, vector<8x32xf32> -> vector<8x32xf32>
    %c1_104 = arith.constant 1 : index
    %c0_105 = arith.constant 0 : index
    %c0_106 = arith.constant 0 : index
    %234 = vector.load %arg10[%c1_104, %c0_105, %c0_106] : memref<2x1x32xf32, #tpu.memory_space<vmem>>, vector<1x1x32xf32>
    %235 = vector.shape_cast %234 : vector<1x1x32xf32> to vector<1x32xf32>
    %236 = vector.broadcast %235 : vector<1x32xf32> to vector<8x32xf32>
    %237 = arith.addf %233, %236 : vector<8x32xf32>
    %238 = arith.addf %156, %237 : vector<8x32xf32>
    %c1_107 = arith.constant 1 : index
    %c0_108 = arith.constant 0 : index
    %c0_109 = arith.constant 0 : index
    %239 = vector.load %arg11[%c1_107, %c0_108, %c0_109] : memref<2x1x32xf32, #tpu.memory_space<vmem>>, vector<1x1x32xf32>
    %240 = vector.shape_cast %239 : vector<1x1x32xf32> to vector<1x32xf32>
    %c1_110 = arith.constant 1 : index
    %c0_111 = arith.constant 0 : index
    %c0_112 = arith.constant 0 : index
    %241 = vector.load %arg12[%c1_110, %c0_111, %c0_112] : memref<2x1x32xf32, #tpu.memory_space<vmem>>, vector<1x1x32xf32>
    %242 = vector.shape_cast %241 : vector<1x1x32xf32> to vector<1x32xf32>
    %cst_113 = arith.constant dense<0.000000e+00> : vector<8xf32>
    %243 = vector.multi_reduction <add>, %238, %cst_113 [1] : vector<8x32xf32> to vector<8xf32>
    %244 = vector.shape_cast %243 : vector<8xf32> to vector<8x1xf32>
    %cst_114 = arith.constant 3.200000e+01 : f32
    %245 = vector.broadcast %cst_114 : f32 to vector<8x1xf32>
    %246 = arith.divf %244, %245 : vector<8x1xf32>
    %247 = vector.broadcast %246 : vector<8x1xf32> to vector<8x32xf32>
    %248 = arith.subf %238, %247 : vector<8x32xf32>
    %249 = arith.mulf %248, %248 : vector<8x32xf32>
    %cst_115 = arith.constant dense<0.000000e+00> : vector<8xf32>
    %250 = vector.multi_reduction <add>, %249, %cst_115 [1] : vector<8x32xf32> to vector<8xf32>
    %251 = vector.shape_cast %250 : vector<8xf32> to vector<8x1xf32>
    %cst_116 = arith.constant 3.200000e+01 : f32
    %252 = vector.broadcast %cst_116 : f32 to vector<8x1xf32>
    %253 = arith.divf %251, %252 : vector<8x1xf32>
    %254 = vector.broadcast %246 : vector<8x1xf32> to vector<8x32xf32>
    %255 = arith.subf %238, %254 : vector<8x32xf32>
    %cst_117 = arith.constant 9.99999974E-6 : f32
    %256 = vector.broadcast %cst_117 : f32 to vector<8x1xf32>
    %257 = arith.addf %253, %256 : vector<8x1xf32>
    %258 = math.rsqrt %257 : vector<8x1xf32>
    %259 = vector.broadcast %258 : vector<8x1xf32> to vector<8x32xf32>
    %260 = arith.mulf %255, %259 : vector<8x32xf32>
    %261 = vector.broadcast %240 : vector<1x32xf32> to vector<8x32xf32>
    %262 = arith.mulf %260, %261 : vector<8x32xf32>
    %263 = vector.broadcast %242 : vector<1x32xf32> to vector<8x32xf32>
    %264 = arith.addf %262, %263 : vector<8x32xf32>
    %265 = vector.shape_cast %264 : vector<8x32xf32> to vector<8x32x1xf32>
    %c1_118 = arith.constant 1 : index
    %c0_119 = arith.constant 0 : index
    %c0_120 = arith.constant 0 : index
    %c0_121 = arith.constant 0 : index
    %266 = vector.load %arg13[%c1_118, %c0_119, %c0_120, %c0_121] : memref<2x8x32x64xf32, #tpu.memory_space<vmem>>, vector<1x8x32x64xf32>
    %267 = vector.shape_cast %266 : vector<1x8x32x64xf32> to vector<8x32x64xf32>
    %268 = vector.broadcast %265 : vector<8x32x1xf32> to vector<8x32x64xf32>
    %269 = arith.mulf %268, %267 : vector<8x32x64xf32>
    %cst_122 = arith.constant dense<0.000000e+00> : vector<8x64xf32>
    %270 = vector.multi_reduction <add>, %269, %cst_122 [1] : vector<8x32x64xf32> to vector<8x64xf32>
    %c1_123 = arith.constant 1 : index
    %c0_124 = arith.constant 0 : index
    %c0_125 = arith.constant 0 : index
    %271 = vector.load %arg14[%c1_123, %c0_124, %c0_125] : memref<2x8x64xf32, #tpu.memory_space<vmem>>, vector<1x8x64xf32>
    %272 = vector.shape_cast %271 : vector<1x8x64xf32> to vector<8x64xf32>
    %273 = arith.addf %270, %272 : vector<8x64xf32>
    %274 = vector.shape_cast %273 : vector<8x64xf32> to vector<8x64x1xf32>
    %c1_126 = arith.constant 1 : index
    %c0_127 = arith.constant 0 : index
    %c0_128 = arith.constant 0 : index
    %c0_129 = arith.constant 0 : index
    %275 = vector.load %arg15[%c1_126, %c0_127, %c0_128, %c0_129] : memref<2x8x64x32xf32, #tpu.memory_space<vmem>>, vector<1x8x64x32xf32>
    %276 = vector.shape_cast %275 : vector<1x8x64x32xf32> to vector<8x64x32xf32>
    %277 = vector.broadcast %274 : vector<8x64x1xf32> to vector<8x64x32xf32>
    %278 = arith.mulf %277, %276 : vector<8x64x32xf32>
    %cst_130 = arith.constant dense<0.000000e+00> : vector<8x32xf32>
    %279 = vector.multi_reduction <add>, %278, %cst_130 [1] : vector<8x64x32xf32> to vector<8x32xf32>
    %c1_131 = arith.constant 1 : index
    %c0_132 = arith.constant 0 : index
    %c0_133 = arith.constant 0 : index
    %280 = vector.load %arg16[%c1_131, %c0_132, %c0_133] : memref<2x8x32xf32, #tpu.memory_space<vmem>>, vector<1x8x32xf32>
    %281 = vector.shape_cast %280 : vector<1x8x32xf32> to vector<8x32xf32>
    %282 = arith.addf %279, %281 : vector<8x32xf32>
    %283 = arith.addf %264, %282 : vector<8x32xf32>
    %c1_134 = arith.constant 1 : index
    %c0_135 = arith.constant 0 : index
    %c0_136 = arith.constant 0 : index
    %284 = vector.load %arg17[%c1_134, %c0_135, %c0_136] : memref<2x1x32xf32, #tpu.memory_space<vmem>>, vector<1x1x32xf32>
    %285 = vector.shape_cast %284 : vector<1x1x32xf32> to vector<1x32xf32>
    %c1_137 = arith.constant 1 : index
    %c0_138 = arith.constant 0 : index
    %c0_139 = arith.constant 0 : index
    %286 = vector.load %arg18[%c1_137, %c0_138, %c0_139] : memref<2x1x32xf32, #tpu.memory_space<vmem>>, vector<1x1x32xf32>
    %287 = vector.shape_cast %286 : vector<1x1x32xf32> to vector<1x32xf32>
    %cst_140 = arith.constant dense<0.000000e+00> : vector<8xf32>
    %288 = vector.multi_reduction <add>, %283, %cst_140 [1] : vector<8x32xf32> to vector<8xf32>
    %289 = vector.shape_cast %288 : vector<8xf32> to vector<8x1xf32>
    %cst_141 = arith.constant 3.200000e+01 : f32
    %290 = vector.broadcast %cst_141 : f32 to vector<8x1xf32>
    %291 = arith.divf %289, %290 : vector<8x1xf32>
    %292 = vector.broadcast %291 : vector<8x1xf32> to vector<8x32xf32>
    %293 = arith.subf %283, %292 : vector<8x32xf32>
    %294 = arith.mulf %293, %293 : vector<8x32xf32>
    %cst_142 = arith.constant dense<0.000000e+00> : vector<8xf32>
    %295 = vector.multi_reduction <add>, %294, %cst_142 [1] : vector<8x32xf32> to vector<8xf32>
    %296 = vector.shape_cast %295 : vector<8xf32> to vector<8x1xf32>
    %cst_143 = arith.constant 3.200000e+01 : f32
    %297 = vector.broadcast %cst_143 : f32 to vector<8x1xf32>
    %298 = arith.divf %296, %297 : vector<8x1xf32>
    %299 = vector.broadcast %291 : vector<8x1xf32> to vector<8x32xf32>
    %300 = arith.subf %283, %299 : vector<8x32xf32>
    %cst_144 = arith.constant 9.99999974E-6 : f32
    %301 = vector.broadcast %cst_144 : f32 to vector<8x1xf32>
    %302 = arith.addf %298, %301 : vector<8x1xf32>
    %303 = math.rsqrt %302 : vector<8x1xf32>
    %304 = vector.broadcast %303 : vector<8x1xf32> to vector<8x32xf32>
    %305 = arith.mulf %300, %304 : vector<8x32xf32>
    %306 = vector.broadcast %285 : vector<1x32xf32> to vector<8x32xf32>
    %307 = arith.mulf %305, %306 : vector<8x32xf32>
    %308 = vector.broadcast %287 : vector<1x32xf32> to vector<8x32xf32>
    %309 = arith.addf %307, %308 : vector<8x32xf32>
    %c0_145 = arith.constant 0 : index
    %c0_146 = arith.constant 0 : index
    %c0_147 = arith.constant 0 : index
    %310 = vector.load %arg19[%c0_145, %c0_146, %c0_147] : memref<1x8x32xf32, #tpu.memory_space<vmem>>, vector<1x8x32xf32>
    %311 = vector.shape_cast %310 : vector<1x8x32xf32> to vector<8x32xf32>
    %312 = vector.shape_cast %309 : vector<8x32xf32> to vector<1x8x32xf32>
    tpu.vector_store %arg19[%c0_145, %c0_146, %c0_147], %312 {strides = array<i32>} : memref<1x8x32xf32, #tpu.memory_space<vmem>>, vector<1x8x32xf32>,
    return
  }
  func.func @transform_0(%arg0: i32) -> (i32, i32, i32) {
    %c0_i32 = arith.constant 0 : i32
    %c0_i32_0 = arith.constant 0 : i32
    %c0_i32_1 = arith.constant 0 : i32
    return %arg0, %c0_i32, %c0_i32_0 : i32, i32, i32
  }
  func.func @transform_1(%arg0: i32) -> (i32, i32, i32) {
    %c0_i32 = arith.constant 0 : i32
    %c0_i32_0 = arith.constant 0 : i32
    %c0_i32_1 = arith.constant 0 : i32
    return %arg0, %c0_i32, %c0_i32_0 : i32, i32, i32
  }
  func.func @transform_2(%arg0: i32) -> (i32, i32, i32) {
    %c0_i32 = arith.constant 0 : i32
    %c0_i32_0 = arith.constant 0 : i32
    %c0_i32_1 = arith.constant 0 : i32
    %c0_i32_2 = arith.constant 0 : i32
    return %c0_i32, %c0_i32_0, %c0_i32_1 : i32, i32, i32
  }
  func.func @transform_3(%arg0: i32) -> (i32, i32, i32) {
    %c0_i32 = arith.constant 0 : i32
    %c0_i32_0 = arith.constant 0 : i32
    %c0_i32_1 = arith.constant 0 : i32
    %c0_i32_2 = arith.constant 0 : i32
    return %c0_i32, %c0_i32_0, %c0_i32_1 : i32, i32, i32
  }
  func.func @transform_4(%arg0: i32) -> (i32, i32, i32) {
    %c0_i32 = arith.constant 0 : i32
    %c0_i32_0 = arith.constant 0 : i32
    %c0_i32_1 = arith.constant 0 : i32
    %c0_i32_2 = arith.constant 0 : i32
    return %c0_i32, %c0_i32_0, %c0_i32_1 : i32, i32, i32
  }
  func.func @transform_5(%arg0: i32) -> (i32, i32, i32) {
    %c0_i32 = arith.constant 0 : i32
    %c0_i32_0 = arith.constant 0 : i32
    %c0_i32_1 = arith.constant 0 : i32
    %c0_i32_2 = arith.constant 0 : i32
    return %c0_i32, %c0_i32_0, %c0_i32_1 : i32, i32, i32
  }
  func.func @transform_6(%arg0: i32) -> (i32, i32, i32) {
    %c0_i32 = arith.constant 0 : i32
    %c0_i32_0 = arith.constant 0 : i32
    %c0_i32_1 = arith.constant 0 : i32
    %c0_i32_2 = arith.constant 0 : i32
    return %c0_i32, %c0_i32_0, %c0_i32_1 : i32, i32, i32
  }
  func.func @transform_7(%arg0: i32) -> (i32, i32, i32) {
    %c0_i32 = arith.constant 0 : i32
    %c0_i32_0 = arith.constant 0 : i32
    %c0_i32_1 = arith.constant 0 : i32
    %c0_i32_2 = arith.constant 0 : i32
    return %c0_i32, %c0_i32_0, %c0_i32_1 : i32, i32, i32
  }
  func.func @transform_8(%arg0: i32) -> (i32, i32, i32) {
    %c0_i32 = arith.constant 0 : i32
    %c0_i32_0 = arith.constant 0 : i32
    %c0_i32_1 = arith.constant 0 : i32
    %c0_i32_2 = arith.constant 0 : i32
    return %c0_i32, %c0_i32_0, %c0_i32_1 : i32, i32, i32
  }
  func.func @transform_9(%arg0: i32) -> (i32, i32, i32) {
    %c0_i32 = arith.constant 0 : i32
    %c0_i32_0 = arith.constant 0 : i32
    %c0_i32_1 = arith.constant 0 : i32
    %c0_i32_2 = arith.constant 0 : i32
    return %c0_i32, %c0_i32_0, %c0_i32_1 : i32, i32, i32
  }
  func.func @transform_10(%arg0: i32) -> (i32, i32, i32) {
    %c0_i32 = arith.constant 0 : i32
    %c0_i32_0 = arith.constant 0 : i32
    %c0_i32_1 = arith.constant 0 : i32
    %c0_i32_2 = arith.constant 0 : i32
    return %c0_i32, %c0_i32_0, %c0_i32_1 : i32, i32, i32
  }
  func.func @transform_11(%arg0: i32) -> (i32, i32, i32) {
    %c0_i32 = arith.constant 0 : i32
    %c0_i32_0 = arith.constant 0 : i32
    %c0_i32_1 = arith.constant 0 : i32
    %c0_i32_2 = arith.constant 0 : i32
    return %c0_i32, %c0_i32_0, %c0_i32_1 : i32, i32, i32
  }
  func.func @transform_12(%arg0: i32) -> (i32, i32, i32, i32) {
    %c0_i32 = arith.constant 0 : i32
    %c0_i32_0 = arith.constant 0 : i32
    %c0_i32_1 = arith.constant 0 : i32
    %c0_i32_2 = arith.constant 0 : i32
    %c0_i32_3 = arith.constant 0 : i32
    return %c0_i32, %c0_i32_0, %c0_i32_1, %c0_i32_2 : i32, i32, i32, i32
  }
  func.func @transform_13(%arg0: i32) -> (i32, i32, i32) {
    %c0_i32 = arith.constant 0 : i32
    %c0_i32_0 = arith.constant 0 : i32
    %c0_i32_1 = arith.constant 0 : i32
    %c0_i32_2 = arith.constant 0 : i32
    return %c0_i32, %c0_i32_0, %c0_i32_1 : i32, i32, i32
  }
  func.func @transform_14(%arg0: i32) -> (i32, i32, i32, i32) {
    %c0_i32 = arith.constant 0 : i32
    %c0_i32_0 = arith.constant 0 : i32
    %c0_i32_1 = arith.constant 0 : i32
    %c0_i32_2 = arith.constant 0 : i32
    %c0_i32_3 = arith.constant 0 : i32
    return %c0_i32, %c0_i32_0, %c0_i32_1, %c0_i32_2 : i32, i32, i32, i32
  }
  func.func @transform_15(%arg0: i32) -> (i32, i32, i32) {
    %c0_i32 = arith.constant 0 : i32
    %c0_i32_0 = arith.constant 0 : i32
    %c0_i32_1 = arith.constant 0 : i32
    %c0_i32_2 = arith.constant 0 : i32
    return %c0_i32, %c0_i32_0, %c0_i32_1 : i32, i32, i32
  }
  func.func @transform_16(%arg0: i32) -> (i32, i32, i32) {
    %c0_i32 = arith.constant 0 : i32
    %c0_i32_0 = arith.constant 0 : i32
    %c0_i32_1 = arith.constant 0 : i32
    %c0_i32_2 = arith.constant 0 : i32
    return %c0_i32, %c0_i32_0, %c0_i32_1 : i32, i32, i32
  }
  func.func @transform_17(%arg0: i32) -> (i32, i32, i32) {
    %c0_i32 = arith.constant 0 : i32
    %c0_i32_0 = arith.constant 0 : i32
    %c0_i32_1 = arith.constant 0 : i32
    %c0_i32_2 = arith.constant 0 : i32
    return %c0_i32, %c0_i32_0, %c0_i32_1 : i32, i32, i32
  }
  func.func @transform_18(%arg0: i32) -> (i32, i32, i32) {
    %c0_i32 = arith.constant 0 : i32
    %c0_i32_0 = arith.constant 0 : i32
    %c0_i32_1 = arith.constant 0 : i32
    return %arg0, %c0_i32, %c0_i32_0 : i32, i32, i32
  }
}

</mosaic_0001>

<bundles_post_ra>
// kernel: tpu_custom_call.1
= control target key start
LH: loop header
LB: loop body
LE: loop exit
PB: predicated region body
PF: predicated region fallthrough
CT: control target
= control target key end

     0   :  { %s7149_s0 = inlined_call_operand.vmem [shape: f32[2,8,32], index: 0, kind: input, shape index: {}]   ;;  %s7150_s1 = inlined_call_operand.vmem [shape: f32[2,8,8], index: 1, kind: input, shape index: {}]   ;;  %s7151_s2 = inlined_call_operand.vmem [shape: f32[2,32,32], index: 2, kind: input, shape index: {}]   ;;  %s7152_s3 = inlined_call_operand.vmem [shape: f32[2,1,32], index: 3, kind: input, shape index: {}]   ;;  %s7153_s4 = inlined_call_operand.vmem [shape: f32[2,32,32], index: 4, kind: input, shape index: {}]   ;;  %s7154_s5 = inlined_call_operand.vmem [shape: f32[2,1,32], index: 5, kind: input, shape index: {}]   ;;  %s7155_s6 = inlined_call_operand.vmem [shape: f32[2,32,32], index: 6, kind: input, shape index: {}]   ;;  %s7156_s7 = inlined_call_operand.vmem [shape: f32[2,1,32], index: 7, kind: input, shape index: {}]   ;;  %s7157_s8 = inlined_call_operand.vmem [shape: f32[2,32,32], index: 8, kind: input, shape index: {}]   ;;  %s7158_s9 = inlined_call_operand.vmem [shape: f32[2,1,32], index: 9, kind: input, shape index: {}]   ;;  %s7159_s10 = inlined_call_operand.vmem [shape: f32[2,1,32], index: 10, kind: input, shape index: {}]   ;;  %s7160_s11 = inlined_call_operand.vmem [shape: f32[2,1,32], index: 11, kind: input, shape index: {}]   ;;  %s7161_s12 = inlined_call_operand.vmem [shape: f32[2,8,32,64], index: 12, kind: input, shape index: {}]   ;;  %s7162_s13 = inlined_call_operand.vmem [shape: f32[2,8,64], index: 13, kind: input, shape index: {}]   ;;  %s7163_s14 = inlined_call_operand.vmem [shape: f32[2,8,64,32], index: 14, kind: input, shape index: {}]   ;;  %s7164_s15 = inlined_call_operand.vmem [shape: f32[2,8,32], index: 15, kind: input, shape index: {}]   ;;  %s7165_s16 = inlined_call_operand.vmem [shape: f32[2,1,32], index: 16, kind: input, shape index: {}]   ;;  %s7166_s17 = inlined_call_operand.vmem [shape: f32[2,1,32], index: 17, kind: input, shape index: {}]   ;;  %s7167_s18 = inlined_call_operand.hbm [shape: f32[2,8,32], index: 18, kind: output, shape index: {}]  }
   0x1   :  { %7189 = sst [smem:[#allocation11_spill]] %s7149_s0 }
   0x2   :  { %7190 = sst [smem:[#allocation12_spill]] %s7150_s1 }
   0x3   :  { %7191 = sst [smem:[#allocation13_spill]] %s7151_s2 }
   0x4   :  { %7192 = sst [smem:[#allocation14_spill]] %s7152_s3 }
   0x5   :  { %7193 = sst [smem:[#allocation15_spill]] %s7153_s4 }
   0x6   :  { %7194 = sst [smem:[#allocation16_spill]] %s7167_s18 }
   0x7   :  { %23 = vsyncpa [#allocation3], 0 }
   0x8   :  { %25 = vsyncpa [#allocation3 + $0x1], 0  ;;  %s5456_s27 = smov 0   ;;  %s5458_s28 = smov 0  }
   0x9   :  { %s5460_s29 = smov 0   ;;  %s5462_s30 = smov 0  }
   0xa LB: > { %7195 = sst [smem:[#allocation5_spill]] %s5338_s27  ;;  %s5477_s0 = sadd.s32 4294967295, %s5350_s30   ;;  %s5350_s30 = sphi %s5462_s30, %s7222_s30   ;;  %s5346_s29 = sphi %s5460_s29, %s7224_s29   ;;  %s5342_s28 = sphi %s5458_s28, %s7226_s28   ;;  %s5338_s27 = sphi %s5456_s27, %s7225_s27  }
   0xb   : > { %7196 = sst [smem:[#allocation6_spill]] %s5346_s29  ;;  %s4781_s19 = sadd.s32 4294967294, %s5350_s30  }
   0xc   : > { %7197 = sst [smem:[#allocation7_spill]] %s5350_s30  ;;  %s5481_s1 = sadd.s32 1, %s5350_s30  }
   0xd   : > { %7198 = sst [smem:[#allocation8_spill]] %s5481_s1  ;;  %s426_s20 = sadd.s32 1, %s5346_s29 }
   0xe   : > { %s423_s21 = ssub.s32 %s5350_s30, %s5481_s1  ;;  %p436_p0 = scmp.ne.s32.totalorder %s5346_s29, %s5342_s28 }
   0xf   : > { %p424_p1 = scmp.eq.s32.totalorder %s423_s21, 0  ;;  %p437_p2 = scmp.eq.s32.totalorder %s5477_s0, 1 }
  0x10   : > { %p442_p3 = scmp.ne.s32.totalorder %s5342_s28, %s5338_s27  ;;  %p443_p4 = scmp.eq.s32.totalorder %s4781_s19, 1 }
  0x11   : > { %s5492_s22 = scalar_select %p424_p1, %s5346_s29, %s426_s20  }
  0x12   : > { %p5494_p5 = por %p437_p2, %p436_p0  ;;  %p5498_p6 = por %p443_p4, %p442_p3 }
  0x13   : > { %7199 = sst [smem:[#allocation9_spill]] %s5492_s22  ;;  %p4784_p7 = scmp.ge.s32.totalorder %s5350_s30, 1 }
  0x14   : > { %s7201_s23 = scalar_select %p5498_p6, 1, 0 }
  0x15   : > { %p523_p8 = scmp.lt.s32.totalorder %s5350_s30, 3 }
  0x16   : > { %7202 = sst [smem:[#allocation10_spill]] %s7201_s23 }
  0x17   : > { %p524_p9 = pnand %p4784_p7, %p523_p8 }
  0x18   : > { %s7203_s4 = sld [smem:[#allocation15_spill]] (!%p524_p9)  ;;  %p580_p10 = scmp.lt.s32.totalorder (!%p524_p9), %s5477_s0, 1 }
  0x19   : > { %527 = sbr.rel (%p524_p9) target bundleno = 4829 (0x12dd), region = 92  ;;  %s7204_s20 = sld [smem:[#allocation13_spill]] (!%p524_p9) }
  0x1a   : > { %s7205_s25 = sld [smem:[#allocation11_spill]] (!%p524_p9)  ;;  %s7176_s27 = smov (!%p524_p9), 104  }
  0x1b   : > { %s7206_s3 = sld [smem:[#allocation14_spill]] (!%p524_p9)  ;;  %s7179_s23 = smov (!%p524_p9), 16  }
  0x1c   : > { %s7207_s21 = sld [smem:[#allocation12_spill]] (!%p524_p9)  ;;  %s7178_s1 = smov (!%p524_p9), 24  }
  0x1d   : > { %s7209_s19 = smov (!%p524_p9), 120   ;;  %s7213_s18 = smov (!%p524_p9), 24  }
  0x1e   : > { %v678_v0 = vld [vmem:[%s7203_s4 + $0x18] sm:$0xff]  ;;  %v5352_v2 = vmov 0.0   ;;  %v677_v3 = vld [vmem:[%s7203_s4 + $0x10] sm:$0xff]  ;;  %s5520_s24 = scalar_select %p580_p10, %s5477_s0, 1  ;;  %v676_v5 = vld [vmem:[%s7203_s4 + $0x8] sm:$0xff]  ;;  %vm601_vm0 = vcmask 261120  }
  0x1f   : > { %v593_v1 = vld [vmem:[%s7204_s20 + $0x18] sm:$0xff]  ;;  %5045 = vmatprep.subr.mxu1 %v5352_v2  ;;  %5034 = vmatprep.subr.mxu0 %v5352_v2  ;;  %v592_v4 = vld [vmem:[%s7204_s20 + $0x10] sm:$0xff]  ;;  %v591_v6 = vld [vmem:[%s7204_s20 + $0x8] sm:$0xff]  ;;  %vm5353_vm1 = vmmov 0   ;;  %vm861_vm2 = vcmask 64512   ;;  %vm1515_vm3 = vcmask 130048  }
  0x20   : > { %5046 = vmatpush3.msra.mxu1 %v678_v0  ;;  %5035 = vmatpush3.msra.mxu0 %v593_v1  ;;  %s4786_s29 = sshll.u32 %s5520_s24, 3  ;;  %v675_v7 = vld [vmem:[%s7203_s4] sm:$0xff]  ;;  %v759_v17 = vld [vmem:[%s7155_s6 + $0x18] sm:$0xff]  ;;  %v758_v18 = vld [vmem:[%s7155_s6 + $0x10] sm:$0xff]  ;;  %s7208_s24 = smov 112   ;;  %vm1517_vm4 = vcmask 195584  }
  0x21   : > { %5047 = vmatprep.subr.mxu1 %v5352_v2  ;;  %5036 = vmatprep.subr.mxu0 %v5352_v2  ;;  %s583_s26 = scalar_lea.vmem %s7205_s25, %s4786_s29  ;;  %v590_v9 = vld [vmem:[%s7204_s20] sm:$0xff]  ;;  %s7174_s25 = smov 112   ;;  %v757_v20 = vld [vmem:[%s7155_s6 + $0x8] sm:$0xff]  ;;  %vm1850_vm5 = vcmask 523264   ;;  %vm2590_vm6 = vcmask 1041409   ;;  %vm2593_vm7 = vcmask 1042434  }
  0x22   : > { %5048 = vmatpush3.msra.mxu1 %v677_v3  ;;  %5037 = vmatpush3.msra.mxu0 %v592_v4  ;;  %v5541_v8 = vld [vmem:[%s583_s26] sm:$0xff]  ;;  %s7181_s26 = smov 120   ;;  %s5619_s22 = scalar_lea.vmem %s7207_s21, %s4786_s29  ;;  %vm2596_vm8 = vcmask 1043459   ;;  %vm2599_vm9 = vcmask 1044484   ;;  %vm2602_vm10 = vcmask 1045509   ;;  %vm2605_vm11 = vcmask 1046534  }
  0x23   : > { %5049 = vmatprep.subr.mxu1 %v5352_v2  ;;  %5038 = vmatprep.subr.mxu0 %v5352_v2  ;;  %v4790_v10 = vld [vmem:[%s7154_s5] ss:$0 sm:$0xff]  ;;  %vm2608_vm12 = vcmask 1047559   ;;  %s4959_s29 = sshll.u32 %s5477_s0, 7 }
  0x24   : > { %5050 = vmatpush3.msra.mxu1 %v676_v5  ;;  %5039 = vmatpush3.msra.mxu0 %v591_v6  ;;  %v4788_v12 = vld [vmem:[%s7206_s3] ss:$0 sm:$0xff] }
  0x25   : > { %5051 = vmatprep.subr.mxu1 %v5352_v2  ;;  %5053 = vmatprep.mubr.msk.f32.mxu1 %vm5353_vm1, %v5352_v2  ;;  %v756_v21 = vld [vmem:[%s7155_s6] sm:$0xff] }
  0x26   : > { %5052 = vmatpush3.msra.mxu1 %v675_v7  ;;  %5040 = vmatprep.subr.mxu0 %v5352_v2  ;;  %v589_v28 = vld [vmem:[%s5619_s22] sm:$0xff] }
  0x27   : > { %5054 = vmatmul.mubr.msk.f32.vlgmr.msra.gmra.mxu1 %vm601_vm0, %v5541_v8  ;;  %5041 = vmatpush3.msra.mxu0 %v590_v9  ;;  %v4792_v33 = vld [vmem:[%s7156_s7] ss:$0 sm:$0xff] }
  0x28   : > { %5042 = vmatprep.mubr.msk.f32.mxu0 %vm5353_vm1, %v5352_v2  ;;  %5067 = vmatprep.subr.mxu1 %v5352_v2 }
  0x29   : > { %5043 = vmatmul.mubr.msk.f32.vlgmr.msra.gmra.mxu0 %vm601_vm0, %v5541_v8  ;;  %5069 = vmatprep.mubr.msk.f32.mxu1 %vm5353_vm1, %v5352_v2 }
  0x2a   : > { %5056 = vmatprep.subr.mxu0 %v5352_v2  ;;  %5064 = vmatprep.mubr.msk.f32.mxu0 %vm5353_vm1, %v5352_v2 }
  0x2b   : > { %5057 = vmatpush3.msra.mxu0 %v759_v17 }
  0x2c   : > { %5058 = vmatprep.subr.mxu0 %v5352_v2 }
  0x2d   : > { %5059 = vmatpush3.msra.mxu0 %v758_v18 }
  0x2e   : > { %5060 = vmatprep.subr.mxu0 %v5352_v2 }
  0x2f   : > { %5061 = vmatpush3.msra.mxu0 %v757_v20 }
  0x30   : > { %5062 = vmatprep.subr.mxu0 %v5352_v2 }
  0x31   : > { %5063 = vmatpush3.msra.mxu0 %v756_v21 }
  0x32   : > { %5065 = vmatmul.mubr.msk.f32.vlgmr.msra.gmra.mxu0 %vm601_vm0, %v5541_v8  ;;  %5087 = vmatprep.subr.mxu0 %v5352_v2 }
  0x33   : > { %5089 = vmatprep.mubr.msk.f32.mxu0 %vm5353_vm1, %v5352_v2 }
  0xe7   : > { %v752_v11 = vpop.f32.mrf.mxu1 }
  0xe8   : > { %v753_v13 = vadd.f32 %v4790_v10, %v752_v11 }
  0xe9   : > { %v671_v14 = vpop.f32.mrf.mxu0  ;;  %v5055_v15 = vpop.f32.mrf.mxu1 }
  0xea   : > { %v672_v16 = vadd.f32 %v4788_v12, %v671_v14  ;;  %847 = vrot.lane.b32.xlu1 %v753_v13, %s7174_s25  ;;  %845 = vrot.lane.b32.xlu0 %v753_v13, %s7181_s26 }
  0xeb   : > { %5068 = vmatpush3.xpose.msk.msra.mxu1 %vm861_vm2, %v753_v13  ;;  %v5044_v19 = vpop.f32.mrf.mxu0 }
  0xec   : > { %5072 = vmatprep.subr.mxu1 %v5352_v2 }
  0xee   : > { %5070 = vmatmul.mubr.msk.f32.vlgmr.msra.gmra.mxu1 %vm861_vm2, %v672_v16  ;;  %840 = vrot.lane.b32.xlu1 %v672_v16, %s7174_s25  ;;  %s7180_s25 = smov 8  }
  0xef   : > { %838 = vrot.lane.b32.xlu0 %v672_v16, %s7181_s26  ;;  %5074 = vmatprep.mubr.msk.f32.mxu1 %vm5353_vm1, %v5352_v2 }
  0xf2   : > { %842 = vrot.lane.b32.xlu1 %v672_v16, %s7176_s27  ;;  %v833_v35 = vpop.f32.mrf.mxu0 }
  0xf3   : > { %849 = vrot.lane.b32.xlu0 %v753_v13, %s7176_s27  ;;  %v834_v36 = vadd.f32 %v4792_v33, %v833_v35 }
  0xf4   : > { %v5066_v37 = vpop.f32.mrf.mxu0 }
  0xf5   : > { %5088 = vmatpush3.msra.mxu0 %v834_v36 }
  0xf6   : > { %5097 = vmatprep.subr.mxu0 %v5352_v2 }
 0x15c   : > { %v846_v22 = vpop.permute.xlu0 %845  ;;  %v848_v23 = vpop.permute.xlu1 %847 }
 0x15d   : > { %5073 = vmatpush3.xpose.msk.msra.mxu1 %vm861_vm2, %v846_v22 }
 0x15e   : > { %5077 = vmatprep.subr.mxu1 %v5352_v2 }
 0x160   : > { %v841_v25 = vpop.permute.xlu1 %840 }
 0x161   : > { %v839_v24 = vpop.permute.xlu0 %838 }
 0x162   : > { %5075 = vmatmul.mubr.msk.f32.vlgmr.msra.gmra.mxu1 %vm861_vm2, %v839_v24 }
 0x163   : > { %5078 = vmatpush3.xpose.msk.msra.mxu1 %vm861_vm2, %v848_v23  ;;  %5079 = vmatprep.mubr.msk.f32.mxu1 %vm5353_vm1, %v5352_v2 }
 0x164   : > { %5082 = vmatprep.subr.mxu1 %v5352_v2  ;;  %v843_v27 = vpop.permute.xlu1 %842 }
 0x165   : > { %v850_v26 = vpop.permute.xlu0 %849 }
 0x166   : > { %5080 = vmatmul.mubr.msk.f32.vlgmr.msra.gmra.mxu1 %vm861_vm2, %v841_v25 }
 0x167   : > { %5083 = vmatpush3.xpose.msk.msra.mxu1 %vm861_vm2, %v850_v26  ;;  %5084 = vmatprep.mubr.msk.f32.mxu1 %vm5353_vm1, %v5352_v2 }
 0x168   : > { %5092 = vmatprep.subr.mxu1 %v5352_v2 }
 0x16a   : > { %5085 = vmatmul.mubr.msk.f32.vlgmr.msra.gmra.mxu1 %vm861_vm2, %v843_v27 }
 0x16b   : > { %5094 = vmatprep.mubr.msk.f32.mxu1 %vm5353_vm1, %v5352_v2 }
 0x1ae   : > { %v932_v29 = vpop.f32.mrf.mxu1 }
 0x1af   : > { %v1158_v30 = vmul.f32 0.35355338, %v932_v29  ;;  %v1521_v29 = vld [vmem:[%s7157_s8 + $0x10] sm:$0xff] }
 0x1b0   : > { %v5071_v31 = vpop.f32.mrf.mxu1 }
 0x1b1   : > { %v1162_v32 = vadd.f32 %v1158_v30, %v589_v28  ;;  %v1520_v30 = vld [vmem:[%s7157_s8 + $0x8] sm:$0xff]  ;;  %v1519_v31 = vld [vmem:[%s7157_s8] sm:$0xff] }
 0x1b3   : > { %v1166_v34 = vsel %vm861_vm2, %v1162_v32, -inf }
 0x1b4   : > { %1167 = vmax.xlane.f32.xlu0 %v1166_v34 }
 0x222   : > { %v1006_v38 = vpop.f32.mrf.mxu1 }
 0x223   : > { %v1159_v39 = vmul.f32 0.35355338, %v1006_v38 }
 0x224   : > { %v5076_v40 = vpop.f32.mrf.mxu1 }
 0x225   : > { %v1163_v41 = vadd.f32 %v1159_v39, %v589_v28 }
 0x226   : > { %v1080_v42 = vpop.f32.mrf.mxu1 }
 0x227   : > { %v1160_v43 = vmul.f32 0.35355338, %v1080_v42  ;;  %v1169_v44 = vsel %vm861_vm2, %v1163_v41, -inf }
 0x228   : > { %1170 = vmax.xlane.f32.xlu1 %v1169_v44  ;;  %v5081_v45 = vpop.f32.mrf.mxu1  ;;  %v4806_v44 = vld [vmem:[%s7158_s9] ss:$0 sm:$0xff] }
 0x229   : > { %v1164_v46 = vadd.f32 %v1160_v43, %v589_v28 }
 0x22a   : > { %v1154_v47 = vpop.f32.mrf.mxu1 }
 0x22b   : > { %v1161_v48 = vmul.f32 0.35355338, %v1154_v47  ;;  %v1172_v49 = vsel %vm861_vm2, %v1164_v46, -inf }
 0x22c   : > { %1173 = vmax.xlane.f32.xlu0 %v1172_v49  ;;  %v5086_v50 = vpop.f32.mrf.mxu1 }
 0x22d   : > { %v1165_v51 = vadd.f32 %v1161_v48, %v589_v28  ;;  %v1522_v28 = vld [vmem:[%s7157_s8 + $0x18] sm:$0xff] }
 0x22f   : > { %v1175_v52 = vsel %vm861_vm2, %v1165_v51, -inf }
 0x230   : > { %1176 = vmax.xlane.f32.xlu0 %v1175_v52 }
 0x239   : > { %852 = vrot.lane.b32.xlu1 %v834_v36, %s7181_s26  ;;  %s7210_s26 = smov 104  }
 0x23d   : > { %v1168_v53 = vpop.xlane.xlu0 %1167 }
 0x23e   : > { %v1178_v54 = vsub.f32 %v1162_v32, %v1168_v53 }
 0x240   : > { %v1182_v55 = vmul.f32 1.442695, %v1178_v54 }
 0x242   : > { %5249 = vpow2.f32 %v1182_v55 }
 0x24f   : > { %v5250_v56 = vpop.eup %5249 }
 0x250   : > { %v1190_v57 = vsel %vm861_vm2, %v5250_v56, 0.0 }
 0x25d   : > { %1191 = vadd.xlane.f32.xlu1 %v1190_v57 }
 0x2b1   : > { %v1171_v58 = vpop.xlane.xlu1 %1170 }
 0x2b2   : > { %v1179_v59 = vsub.f32 %v1163_v41, %v1171_v58  ;;  %v1634_v58 = vlaneseq }
 0x2b4   : > { %v1184_v60 = vmul.f32 1.442695, %v1179_v59  ;;  %v5683_v59 = vshrl.u32 %v1634_v58, 7  ;;  %v1787_v58 = vld [vmem:[%s7161_s12 + $0x8] sm:$0xff] }
 0x2b5   : > { %v1174_v61 = vpop.xlane.xlu0 %1173  ;;  %v853_v62 = vpop.permute.xlu1 %852 }
 0x2b6   : > { %5251 = vpow2.f32 %v1184_v60  ;;  %v1180_v63 = vsub.f32 %v1164_v46, %v1174_v61  ;;  %5093 = vmatpush3.msra.mxu1 %v853_v62  ;;  %v4809_v62 = vld [vmem:[%s7160_s11] ss:$0 sm:$0xff] }
 0x2b7   : > { %5102 = vmatprep.subr.mxu1 %v5352_v2 }
 0x2b8   : > { %v1186_v0 = vmul.f32 1.442695, %v1180_v63 }
 0x2b9   : > { %v1177_v1 = vpop.xlane.xlu0 %1176 }
 0x2ba   : > { %5253 = vpow2.f32 %v1186_v0  ;;  %v1181_v3 = vsub.f32 %v1165_v51, %v1177_v1  ;;  %v1655_v0 = vsub.s32 1, %v5683_v59 }
 0x2bc   : > { %v1188_v4 = vmul.f32 1.442695, %v1181_v3 }
 0x2be   : > { %5255 = vpow2.f32 %v1188_v4  ;;  %v1674_v4 = vsub.s32 2, %v5683_v59 }
 0x2c3   : > { %v5252_v5 = vpop.eup %5251 }
 0x2c4   : > { %v1193_v6 = vsel %vm861_vm2, %v5252_v5, 0.0 }
 0x2c5   : > { %1194 = vadd.xlane.f32.xlu0 %v1193_v6 }
 0x2c7   : > { %v5254_v7 = vpop.eup %5253 }
 0x2c8   : > { %v1196_v9 = vsel %vm861_vm2, %v5254_v7, 0.0 }
 0x2c9   : > { %1197 = vadd.xlane.f32.xlu1 %v1196_v9  ;;  %v1693_v9 = vsub.s32 3, %v5683_v59 }
 0x2cb   : > { %v5256_v10 = vpop.eup %5255 }
 0x2cc   : > { %v1199_v11 = vsel %vm861_vm2, %v5256_v10, 0.0 }
 0x2cd   : > { %1200 = vadd.xlane.f32.xlu0 %v1199_v11  ;;  %v7188_v11 = vsub.s32 4, %v5683_v59 }
 0x2da   : > { %858 = vrot.lane.b32.xlu1 %v834_v36, %s7176_s27 }
 0x2e3   : > { %855 = vrot.lane.b32.xlu0 %v834_v36, %s7208_s24 }
 0x2e6   : > { %v1192_v12 = vpop.xlane.xlu1 %1191 }
 0x2e7   : > { %5257 = vrcp.f32 %v1192_v12 }
 0x2f4   : > { %v5258_v13 = vpop.eup %5257 }
 0x2f5   : > { %v1206_v14 = vmul.f32 %v5258_v13, %v5250_v56  ;;  %v7187_v13 = vsub.s32 5, %v5683_v59 }
 0x2f7   : > { %5090 = vmatmul.mubr.msk.f32.vlgmr.msra.gmra.mxu0 %vm861_vm2, %v1206_v14 }
 0x2f8   : > { %5099 = vmatprep.mubr.msk.f32.mxu0 %vm5353_vm1, %v5352_v2 }
 0x34e   : > { %v1195_v15 = vpop.xlane.xlu0 %1194 }
 0x34f   : > { %5259 = vrcp.f32 %v1195_v15  ;;  %v7186_v15 = vsub.s32 6, %v5683_v59 }
 0x352   : > { %v1198_v16 = vpop.xlane.xlu1 %1197 }
 0x353   : > { %5261 = vrcp.f32 %v1198_v16 }
 0x356   : > { %v1201_v17 = vpop.xlane.xlu0 %1200  ;;  %v859_v21 = vpop.permute.xlu1 %858 }
 0x357   : > { %5263 = vrcp.f32 %v1201_v17  ;;  %v7185_v17 = vsub.s32 7, %v5683_v59 }
 0x35a   : > { %v856_v18 = vpop.permute.xlu0 %855 }
 0x35b   : > { %5098 = vmatpush3.msra.mxu0 %v856_v18 }
 0x35c   : > { %v5260_v19 = vpop.eup %5259  ;;  %5107 = vmatprep.subr.mxu0 %v5352_v2 }
 0x35d   : > { %v1207_v20 = vmul.f32 %v5260_v19, %v5252_v5  ;;  %v5699_v5 = vsub.s32 0, %v5683_v59 }
 0x35f   : > { %5095 = vmatmul.mubr.msk.f32.vlgmr.msra.gmra.mxu1 %vm861_vm2, %v1207_v20 }
 0x360   : > { %v5262_v22 = vpop.eup %5261  ;;  %5103 = vmatpush3.msra.mxu1 %v859_v21  ;;  %5104 = vmatprep.mubr.msk.f32.mxu1 %vm5353_vm1, %v5352_v2 }
 0x361   : > { %v1208_v23 = vmul.f32 %v5262_v22, %v5254_v7  ;;  %5118 = vmatprep.subr.mxu1 %v5352_v2 }
 0x363   : > { %5100 = vmatmul.mubr.msk.f32.vlgmr.msra.gmra.mxu0 %vm861_vm2, %v1208_v23 }
 0x364   : > { %v5264_v24 = vpop.eup %5263  ;;  %5115 = vmatprep.mubr.msk.f32.mxu0 %vm5353_vm1, %v5352_v2  ;;  %5108 = vmatpush3.msra.mxu0 %v1522_v28  ;;  %v1790_v28 = vld [vmem:[%s7161_s12 + $0x20] sm:$0xff] }
 0x365   : > { %v1209_v25 = vmul.f32 %v5264_v24, %v5256_v10  ;;  %5109 = vmatprep.subr.mxu0 %v5352_v2 }
 0x366   : > { %5110 = vmatpush3.msra.mxu0 %v1521_v29  ;;  %v1792_v29 = vld [vmem:[%s7161_s12 + $0x30] sm:$0xff] }
 0x367   : > { %5105 = vmatmul.mubr.msk.f32.vlgmr.msra.gmra.mxu1 %vm861_vm2, %v1209_v25  ;;  %5111 = vmatprep.subr.mxu0 %v5352_v2 }
 0x368   : > { %5126 = vmatprep.mubr.msk.f32.mxu1 %vm5353_vm1, %v5352_v2  ;;  %5112 = vmatpush3.msra.mxu0 %v1520_v30 }
 0x369   : > { %5113 = vmatprep.subr.mxu0 %v5352_v2 }
 0x36a   : > { %5114 = vmatpush3.msra.mxu0 %v1519_v31 }
 0x36b   : > { %5129 = vmatprep.subr.mxu0 %v5352_v2 }
 0x3b7   : > { %v1279_v26 = vpop.f32.mrf.mxu0 }
 0x3b9   : > { %v5091_v27 = vpop.f32.mrf.mxu0 }
 0x3ba   : > { %v1791_v27 = vld [vmem:[%s7161_s12 + $0x28] sm:$0xff] }
 0x41f   : > { %v1352_v32 = vpop.f32.mrf.mxu1 }
 0x420   : > { %1503 = vrot.lane.b32.xlu1 %v1352_v32, %s7180_s25 }
 0x421   : > { %v5096_v33 = vpop.f32.mrf.mxu1 }
 0x423   : > { %v1425_v34 = vpop.f32.mrf.mxu0 }
 0x424   : > { %1507 = vrot.lane.b32.xlu0 %v1425_v34, %s7179_s23 }
 0x425   : > { %v5101_v35 = vpop.f32.mrf.mxu0 }
 0x427   : > { %v1498_v36 = vpop.f32.mrf.mxu1 }
 0x428   : > { %1511 = vrot.lane.b32.xlu1 %v1498_v36, %s7178_s1 }
 0x429   : > { %v5106_v37 = vpop.f32.mrf.mxu1 }
 0x492   : > { %v1504_v38 = vpop.permute.xlu1 %1503 }
 0x493   : > { %v1514_v40 = vsel %vm861_vm2, %v1279_v26, %v1504_v38 }
 0x496   : > { %v1508_v39 = vpop.permute.xlu0 %1507 }
 0x497   : > { %v1516_v41 = vsel %vm1515_vm3, %v1514_v40, %v1508_v39  ;;  %v1795_v39 = vld [vmem:[%s7161_s12 + $0x48] sm:$0xff]  ;;  %v1794_v40 = vld [vmem:[%s7161_s12 + $0x40] sm:$0xff] }
 0x49a   : > { %v1512_v42 = vpop.permute.xlu1 %1511 }
 0x49b   : > { %v1518_v43 = vsel %vm1517_vm4, %v1516_v41, %v1512_v42  ;;  %v1793_v41 = vld [vmem:[%s7161_s12 + $0x38] sm:$0xff] }
 0x49c   : > { %5116 = vmatmul.mubr.msk.f32.vlgmr.msra.gmra.mxu0 %vm601_vm0, %v1518_v43 }
 0x49d   : > { %5137 = vmatprep.mubr.msk.f32.mxu0 %vm5353_vm1, %v5352_v2 }
 0x55c   : > { %v1599_v45 = vpop.f32.mrf.mxu0 }
 0x55d   : > { %v1600_v46 = vadd.f32 %v4806_v44, %v1599_v45  ;;  %v1796_v44 = vld [vmem:[%s7161_s12 + $0x50] sm:$0xff] }
 0x55e   : > { %v5117_v47 = vpop.f32.mrf.mxu0 }
 0x55f   : > { %v1603_v48 = vadd.f32 %v1600_v46, %v5541_v8  ;;  %v4808_v8 = vld [vmem:[%s7159_s10] ss:$0 sm:$0xff] }
 0x561   : > { %v1606_v49 = vsel %vm601_vm0, %v1603_v48, 0.0 }
 0x562   : > { %1607 = vadd.xlane.f32.xlu0 %v1606_v49 }
 0x5eb   : > { %v1608_v50 = vpop.xlane.xlu0 %1607 }
 0x5ec   : > { %v1610_v51 = vmul.f32 0.03125, %v1608_v50 }
 0x5ee   : > { %v1611_v52 = vsub.f32 %v1603_v48, %v1610_v51 }
 0x5f0   : > { %v1612_v53 = vmul.f32 %v1611_v52, %v1611_v52 }
 0x5f2   : > { %v1613_v54 = vsel %vm601_vm0, %v1612_v53, 0.0 }
 0x5f3   : > { %1614 = vadd.xlane.f32.xlu1 %v1613_v54 }
 0x67c   : > { %v1615_v55 = vpop.xlane.xlu1 %1614 }
 0x67d   : > { %v1616_v56 = vmul.f32 0.03125, %v1615_v55 }
 0x67f   : > { %v1617_v57 = vadd.f32 1e-05, %v1616_v56 }
 0x681   : > { %5265 = vrsqrt.f32 %v1617_v57 }
 0x68e   : > { %v5266_v60 = vpop.eup %5265 }
 0x68f   : > { %v1619_v61 = vmul.f32 %v5266_v60, %v1611_v52  ;;  %v1786_v60 = vld [vmem:[%s7161_s12] sm:$0xff] }
 0x691   : > { %v1626_v63 = vmul.f32 %v4808_v8, %v1619_v61  ;;  %v1797_v61 = vld [vmem:[%s7161_s12 + $0x58] sm:$0xff] }
 0x693   : > { %v5692_v1 = vadd.f32 %v4809_v62, %v1626_v63 }
 0x695   : > { %v1656_v3 = vrot.slane %v5692_v1, %v1655_v0  ;;  %v1675_v6 = vrot.slane %v5692_v1, %v1674_v4  ;;  %v1637_v7 = vrot.slane %v5692_v1, %v5699_v5  ;;  %v1694_v10 = vrot.slane %v5692_v1, %v1693_v9 }
 0x696   : > { %v1713_v12 = vrot.slane %v5692_v1, %v7188_v11  ;;  %v1732_v14 = vrot.slane %v5692_v1, %v7187_v13  ;;  %v1751_v16 = vrot.slane %v5692_v1, %v7186_v15  ;;  %v1770_v18 = vrot.slane %v5692_v1, %v7185_v17  ;;  %v2262_v13 = vld [vmem:[%s7163_s14 + $0x10] sm:$0xff] }
 0x697   : > { %1662 = vbcast.lane.b32.xlu1 %v1656_v3, 264  ;;  %1658 = vbcast.lane.b32.xlu0 %v1656_v3, 256 }
 0x69b   : > { %1681 = vbcast.lane.b32.xlu1 %v1675_v6, 264  ;;  %1677 = vbcast.lane.b32.xlu0 %v1675_v6, 256 }
 0x69f   : > { %1643 = vbcast.lane.b32.xlu1 %v1637_v7, 264  ;;  %1639 = vbcast.lane.b32.xlu0 %v1637_v7, 256 }
 0x6a3   : > { %1696 = vbcast.lane.b32.xlu1 %v1694_v10, 256  ;;  %1666 = vbcast.lane.b32.xlu0 %v1656_v3, 272 }
 0x6a7   : > { %1685 = vbcast.lane.b32.xlu1 %v1675_v6, 272  ;;  %1700 = vbcast.lane.b32.xlu0 %v1694_v10, 264 }
 0x6ab   : > { %1719 = vbcast.lane.b32.xlu1 %v1713_v12, 264  ;;  %1715 = vbcast.lane.b32.xlu0 %v1713_v12, 256 }
 0x6af   : > { %1670 = vbcast.lane.b32.xlu1 %v1656_v3, 280  ;;  %1647 = vbcast.lane.b32.xlu0 %v1637_v7, 272 }
 0x6b3   : > { %1734 = vbcast.lane.b32.xlu1 %v1732_v14, 256  ;;  %1704 = vbcast.lane.b32.xlu0 %v1694_v10, 272 }
 0x6b7   : > { %1689 = vbcast.lane.b32.xlu1 %v1675_v6, 280  ;;  %1738 = vbcast.lane.b32.xlu0 %v1732_v14, 264  ;;  %v1788_v6 = vld [vmem:[%s7161_s12 + $0x10] sm:$0xff] }
 0x6bb   : > { %1753 = vbcast.lane.b32.xlu1 %v1751_v16, 256  ;;  %1723 = vbcast.lane.b32.xlu0 %v1713_v12, 272 }
 0x6bf   : > { %1651 = vbcast.lane.b32.xlu1 %v1637_v7, 280  ;;  %1757 = vbcast.lane.b32.xlu0 %v1751_v16, 264 }
 0x6c3   : > { %1742 = vbcast.lane.b32.xlu1 %v1732_v14, 272  ;;  %1708 = vbcast.lane.b32.xlu0 %v1694_v10, 280 }
 0x6c7   : > { %1776 = vbcast.lane.b32.xlu1 %v1770_v18, 264  ;;  %1772 = vbcast.lane.b32.xlu0 %v1770_v18, 256 }
 0x6cb   : > { %1761 = vbcast.lane.b32.xlu1 %v1751_v16, 272  ;;  %1727 = vbcast.lane.b32.xlu0 %v1713_v12, 280 }
 0x6cf   : > { %1780 = vbcast.lane.b32.xlu1 %v1770_v18, 272  ;;  %1746 = vbcast.lane.b32.xlu0 %v1732_v14, 280 }
 0x6d3   : > { %1784 = vbcast.lane.b32.xlu1 %v1770_v18, 280  ;;  %1765 = vbcast.lane.b32.xlu0 %v1751_v16, 280 }
 0x709   : > { %v1663_v19 = vpop.permute.xlu1 %1662  ;;  %v1659_v20 = vpop.permute.xlu0 %1658 }
 0x70a   : > { %v1823_v32 = vmul.f32 %v1791_v27, %v1663_v19  ;;  %v1822_v33 = vmul.f32 %v1790_v28, %v1659_v20  ;;  %v1799_v19 = vld [vmem:[%s7161_s12 + $0x68] sm:$0xff]  ;;  %v1800_v27 = vld [vmem:[%s7161_s12 + $0x70] sm:$0xff] }
 0x70c   : > { %v1865_v37 = vsel %vm1850_vm5, %v1823_v32, 0.0  ;;  %v1864_v38 = vsel %vm1850_vm5, %v1822_v33, 0.0 }
 0x70d   : > { %v1682_v21 = vpop.permute.xlu1 %1681  ;;  %v1678_v22 = vpop.permute.xlu0 %1677  ;;  %v1866_v43 = vadd.f32 %v1865_v37, %v1864_v38 }
 0x70e   : > { %v1827_v47 = vmul.f32 %v1795_v39, %v1682_v21  ;;  %v1826_v48 = vmul.f32 %v1794_v40, %v1678_v22  ;;  %v5782_v21 = vld [vmem:[%s7162_s13] sm:$0xff]  ;;  %v1789_v40 = vld [vmem:[%s7161_s12 + $0x18] sm:$0xff] }
 0x70f   : > { %v1957_v37 = vrot.slane %v5782_v21, 1 }
 0x710   : > { %v1878_v56 = vsel %vm1850_vm5, %v1827_v47, 0.0  ;;  %v1877_v57 = vsel %vm1850_vm5, %v1826_v48, 0.0 }
 0x711   : > { %v1644_v23 = vpop.permute.xlu1 %1643  ;;  %v1640_v24 = vpop.permute.xlu0 %1639  ;;  %v1879_v63 = vadd.f32 %v1878_v56, %v1877_v57 }
 0x712   : > { %v1819_v12 = vmul.f32 %v1787_v58, %v1644_v23  ;;  %v1818_v14 = vmul.f32 %v1786_v60, %v1640_v24  ;;  %v1798_v23 = vld [vmem:[%s7161_s12 + $0x60] sm:$0xff] }
 0x714   : > { %v1852_v32 = vsel %vm1850_vm5, %v1819_v12, 0.0  ;;  %v1851_v33 = vsel %vm1850_vm5, %v1818_v14, 0.0 }
 0x715   : > { %v5726_v25 = vpop.permute.xlu1 %1696  ;;  %v1667_v26 = vpop.permute.xlu0 %1666 }
 0x716   : > { %v1824_v34 = vmul.f32 %v1792_v29, %v1667_v26 }
 0x718   : > { %v1867_v42 = vsel %vm1850_vm5, %v1824_v34, 0.0 }
 0x719   : > { %v1686_v30 = vpop.permute.xlu1 %1685  ;;  %v1701_v31 = vpop.permute.xlu0 %1700  ;;  %v1868_v50 = vadd.f32 %v1867_v42, %v1866_v43 }
 0x71a   : > { %v1828_v51 = vmul.f32 %v1796_v44, %v1686_v30  ;;  %v1831_v34 = vmul.f32 %v1799_v19, %v1701_v31  ;;  %v1853_v44 = vadd.f32 %v1852_v32, %v1851_v33  ;;  %v1958_v19 = vrot.slane %v5782_v21, 2 }
 0x71c   : > { %v1880_v62 = vsel %vm1850_vm5, %v1828_v51, 0.0  ;;  %v1891_v31 = vsel %vm1850_vm5, %v1831_v34, 0.0  ;;  %v1802_v51 = vld [vmem:[%s7161_s12 + $0x80] sm:$0xff] }
 0x71d   : > { %v5737_v35 = vpop.permute.xlu1 %1719  ;;  %v5739_v36 = vpop.permute.xlu0 %1715  ;;  %v1881_v18 = vadd.f32 %v1880_v62, %v1879_v63  ;;  %v1804_v62 = vld [vmem:[%s7161_s12 + $0x90] sm:$0xff] }
 0x71e   : > { %v1834_v12 = vmul.f32 %v1802_v51, %v5739_v36 }
 0x721   : > { %v1671_v45 = vpop.permute.xlu1 %1670  ;;  %v1648_v46 = vpop.permute.xlu0 %1647 }
 0x722   : > { %v1825_v49 = vmul.f32 %v1793_v41, %v1671_v45  ;;  %v1820_v22 = vmul.f32 %v1788_v6, %v1648_v46  ;;  %v1830_v41 = vmul.f32 %v1798_v23, %v5726_v25 }
 0x724   : > { %v1869_v52 = vsel %vm1850_vm5, %v1825_v49, 0.0  ;;  %v1854_v42 = vsel %vm1850_vm5, %v1820_v22, 0.0  ;;  %v1890_v56 = vsel %vm1850_vm5, %v1830_v41, 0.0  ;;  %v1810_v41 = vld [vmem:[%s7161_s12 + $0xc0] sm:$0xff] }
 0x725   : > { %v1870_v53 = vadd.f32 %v1869_v52, %v1868_v50  ;;  %v5757_v54 = vpop.permute.xlu1 %1734  ;;  %v1705_v55 = vpop.permute.xlu0 %1704  ;;  %v1803_v50 = vld [vmem:[%s7161_s12 + $0x88] sm:$0xff]  ;;  %v1855_v52 = vadd.f32 %v1854_v42, %v1853_v44  ;;  %v1892_v60 = vadd.f32 %v1891_v31, %v1890_v56  ;;  %v1805_v44 = vld [vmem:[%s7161_s12 + $0x98] sm:$0xff]  ;;  %v1814_v56 = vld [vmem:[%s7161_s12 + $0xe0] sm:$0xff] }
 0x726   : > { %v1832_v43 = vmul.f32 %v1800_v27, %v1705_v55  ;;  %v1801_v55 = vld [vmem:[%s7161_s12 + $0x78] sm:$0xff]  ;;  %v1811_v27 = vld [vmem:[%s7161_s12 + $0xc8] sm:$0xff] }
 0x727   : > { %v1871_v8 = vrot.slane %v1870_v53, 4 }
 0x728   : > { %v1893_v57 = vsel %vm1850_vm5, %v1832_v43, 0.0 }
 0x729   : > { %v1872_v3 = vadd.f32 %v1871_v8, %v1870_v53  ;;  %v1690_v7 = vpop.permute.xlu1 %1689  ;;  %v5774_v10 = vpop.permute.xlu0 %1738 }
 0x72a   : > { %v1829_v16 = vmul.f32 %v1797_v61, %v1690_v7  ;;  %v1835_v7 = vmul.f32 %v1803_v50, %v5737_v35  ;;  %v1807_v35 = vld [vmem:[%s7161_s12 + $0xa8] sm:$0xff]  ;;  %v1812_v50 = vld [vmem:[%s7161_s12 + $0xd0] sm:$0xff] }
 0x72b   : > { %v1873_v20 = vrot.slane %v1872_v3, 2 }
 0x72c   : > { %v1882_v26 = vsel %vm1850_vm5, %v1829_v16, 0.0  ;;  %v1806_v16 = vld [vmem:[%s7161_s12 + $0xa0] sm:$0xff] }
 0x72d   : > { %v1874_v24 = vadd.f32 %v1873_v20, %v1872_v3  ;;  %v1883_v28 = vadd.f32 %v1882_v26, %v1881_v18  ;;  %v5791_v29 = vpop.permute.xlu1 %1753  ;;  %v1724_v30 = vpop.permute.xlu0 %1723  ;;  %v1894_v18 = vadd.f32 %v1893_v57, %v1892_v60 }
 0x72e   : > { %v1836_v26 = vmul.f32 %v1804_v62, %v1724_v30  ;;  %v1838_v30 = vmul.f32 %v1806_v16, %v5757_v54 }
 0x72f   : > { %v1875_v38 = vrot.slane %v1874_v24, 1  ;;  %v1884_v39 = vrot.slane %v1883_v28, 4 }
 0x731   : > { %v1876_v45 = vadd.f32 %v1875_v38, %v1874_v24  ;;  %v1885_v46 = vadd.f32 %v1884_v39, %v1883_v28  ;;  %v1652_v47 = vpop.permute.xlu1 %1651  ;;  %v1758_v48 = vpop.permute.xlu0 %1757  ;;  %v1808_v28 = vld [vmem:[%s7161_s12 + $0xb0] sm:$0xff]  ;;  %v1903_v38 = vsel %vm1850_vm5, %v1834_v12, 0.0 }
 0x732   : > { %v1821_v49 = vmul.f32 %v1789_v40, %v1652_v47  ;;  %v1839_v40 = vmul.f32 %v1807_v35, %v5774_v10 }
 0x733   : > { %v1973_v25 = vadd.f32 %v1957_v37, %v1876_v45  ;;  %v1886_v53 = vrot.slane %v1885_v46, 2  ;;  %v1904_v37 = vsel %vm1850_vm5, %v1835_v7, 0.0  ;;  %v1906_v45 = vsel %vm1850_vm5, %v1836_v26, 0.0 }
 0x734   : > { %v1856_v58 = vsel %vm1850_vm5, %v1821_v49, 0.0  ;;  %v1905_v31 = vadd.f32 %v1904_v37, %v1903_v38  ;;  %v1813_v37 = vld [vmem:[%s7161_s12 + $0xd8] sm:$0xff] }
 0x735   : > { %v5815_v8 = vrot.slane %v1973_v25, %v5699_v5  ;;  %v1887_v61 = vadd.f32 %v1886_v53, %v1885_v46  ;;  %v1857_v63 = vadd.f32 %v1856_v58, %v1855_v52  ;;  %v1743_v3 = vpop.permute.xlu1 %1742  ;;  %v1709_v6 = vpop.permute.xlu0 %1708  ;;  %v1843_v46 = vmul.f32 %v1811_v27, %v1758_v48  ;;  %v1815_v48 = vld [vmem:[%s7161_s12 + $0xe8] sm:$0xff] }
 0x736   : > { %v1833_v14 = vmul.f32 %v1801_v55, %v1709_v6  ;;  %v1840_v47 = vmul.f32 %v1808_v28, %v1743_v3  ;;  %v1916_v52 = vsel %vm1850_vm5, %v1838_v30, 0.0  ;;  %v1842_v53 = vmul.f32 %v1810_v41, %v5791_v29  ;;  %v1809_v29 = vld [vmem:[%s7161_s12 + $0xb8] sm:$0xff] }
 0x737   : > { %v1888_v20 = vrot.slane %v1887_v61, 1  ;;  %v1858_v22 = vrot.slane %v1857_v63, 4  ;;  %2024 = vbcast.lane.b32.xlu1 %v5815_v8, 264  ;;  %2020 = vbcast.lane.b32.xlu0 %v5815_v8, 256  ;;  %v1959_v55 = vrot.slane %v5782_v21, 3  ;;  %v1917_v58 = vsel %vm1850_vm5, %v1839_v40, 0.0 }
 0x738   : > { %v1895_v36 = vsel %vm1850_vm5, %v1833_v14, 0.0  ;;  %v1907_v60 = vadd.f32 %v1906_v45, %v1905_v31  ;;  %v1919_v3 = vsel %vm1850_vm5, %v1840_v47, 0.0  ;;  %v1918_v35 = vadd.f32 %v1917_v58, %v1916_v52 }
 0x739   : > { %v1889_v23 = vadd.f32 %v1888_v20, %v1887_v61  ;;  %v1859_v24 = vadd.f32 %v1858_v22, %v1857_v63  ;;  %v1896_v32 = vadd.f32 %v1895_v36, %v1894_v18  ;;  %v1777_v33 = vpop.permute.xlu1 %1776  ;;  %v1773_v34 = vpop.permute.xlu0 %1772  ;;  %v1930_v63 = vsel %vm1850_vm5, %v1843_v46, 0.0 }
 0x73a   : > { %v1847_v16 = vmul.f32 %v1815_v48, %v1777_v33  ;;  %v1929_v26 = vsel %vm1850_vm5, %v1842_v53, 0.0  ;;  %v1846_v36 = vmul.f32 %v1814_v56, %v1773_v34  ;;  %v1817_v33 = vld [vmem:[%s7161_s12 + $0xf8] sm:$0xff]  ;;  %v1920_v38 = vadd.f32 %v1919_v3, %v1918_v35 }
 0x73b   : > { %v1974_v39 = vadd.f32 %v1958_v19, %v1889_v23  ;;  %v1860_v42 = vrot.slane %v1859_v24, 2  ;;  %v1897_v43 = vrot.slane %v1896_v32, 4  ;;  %v1816_v19 = vld [vmem:[%s7161_s12 + $0xf0] sm:$0xff]  ;;  %v1931_v27 = vadd.f32 %v1930_v63, %v1929_v26 }
 0x73c   : > { %v1942_v46 = vsel %vm1850_vm5, %v1846_v36, 0.0 }
 0x73d   : > { %v5850_v54 = vrot.slane %v1974_v39, %v5699_v5  ;;  %v1861_v49 = vadd.f32 %v1860_v42, %v1859_v24  ;;  %v1898_v10 = vadd.f32 %v1897_v43, %v1896_v32  ;;  %v1762_v51 = vpop.permute.xlu1 %1761  ;;  %v1728_v25 = vpop.permute.xlu0 %1727  ;;  %v1943_v42 = vsel %vm1850_vm5, %v1847_v16, 0.0 }
 0x73e   : > { %v1837_v57 = vmul.f32 %v1805_v44, %v1728_v25  ;;  %v1844_v6 = vmul.f32 %v1812_v50, %v1762_v51  ;;  %v1944_v56 = vadd.f32 %v1943_v42, %v1942_v46 }
 0x73f   : > { %v1862_v61 = vrot.slane %v1861_v49, 1  ;;  %v1899_v62 = vrot.slane %v1898_v10, 2  ;;  %2059 = vbcast.lane.b32.xlu1 %v5850_v54, 264  ;;  %2055 = vbcast.lane.b32.xlu0 %v5850_v54, 256 }
 0x740   : > { %v1908_v7 = vsel %vm1850_vm5, %v1837_v57, 0.0  ;;  %v1932_v30 = vsel %vm1850_vm5, %v1844_v6, 0.0 }
 0x741   : > { %v1863_v12 = vadd.f32 %v1862_v61, %v1861_v49  ;;  %v1900_v14 = vadd.f32 %v1899_v62, %v1898_v10  ;;  %v1909_v18 = vadd.f32 %v1908_v7, %v1907_v60  ;;  %v1781_v20 = vpop.permute.xlu1 %1780  ;;  %v1747_v22 = vpop.permute.xlu0 %1746  ;;  %v1933_v50 = vadd.f32 %v1932_v30, %v1931_v27 }
 0x742   : > { %v1841_v23 = vmul.f32 %v1809_v29, %v1747_v22  ;;  %v1848_v39 = vmul.f32 %v1816_v19, %v1781_v20  ;;  %v1960_v61 = vrot.slane %v5782_v21, 4  ;;  %v1961_v22 = vrot.slane %v5782_v21, 5 }
 0x743   : > { %v1972_v24 = vadd.f32 %v5782_v21, %v1863_v12  ;;  %v1901_v28 = vrot.slane %v1900_v14, 1  ;;  %v1910_v32 = vrot.slane %v1909_v18, 4 }
 0x744   : > { %v1921_v34 = vsel %vm1850_vm5, %v1841_v23, 0.0  ;;  %v1945_v25 = vsel %vm1850_vm5, %v1848_v39, 0.0 }
 0x745   : > { %v5887_v40 = vrot.slane %v1972_v24, %v5699_v5  ;;  %v1902_v41 = vadd.f32 %v1901_v28, %v1900_v14  ;;  %v1911_v43 = vadd.f32 %v1910_v32, %v1909_v18  ;;  %v1785_v44 = vpop.permute.xlu1 %1784  ;;  %v1766_v45 = vpop.permute.xlu0 %1765  ;;  %v1922_v47 = vadd.f32 %v1921_v34, %v1920_v38 }
 0x746   : > { %v1849_v31 = vmul.f32 %v1817_v33, %v1785_v44  ;;  %v1845_v49 = vmul.f32 %v1813_v37, %v1766_v45  ;;  %v1946_v29 = vadd.f32 %v1945_v25, %v1944_v56  ;;  %v1962_v33 = vrot.slane %v5782_v21, 6 }
 0x747   : > { %v1975_v10 = vadd.f32 %v1959_v55, %v1902_v41  ;;  %v1912_v51 = vrot.slane %v1911_v43, 2  ;;  %1989 = vbcast.lane.b32.xlu1 %v5887_v40, 264  ;;  %1985 = vbcast.lane.b32.xlu0 %v5887_v40, 256  ;;  %v1923_v52 = vrot.slane %v1922_v47, 4  ;;  %v1963_v41 = vrot.slane %v5782_v21, 7 }
 0x748   : > { %v1934_v53 = vsel %vm1850_vm5, %v1845_v49, 0.0  ;;  %v1947_v55 = vsel %vm1850_vm5, %v1849_v31, 0.0 }
 0x749   : > { %v5896_v48 = vrot.slane %v1975_v10, %v5699_v5  ;;  %v1913_v57 = vadd.f32 %v1912_v51, %v1911_v43  ;;  %v1935_v58 = vadd.f32 %v1934_v53, %v1933_v50  ;;  %v1924_v60 = vadd.f32 %v1923_v52, %v1922_v47 }
 0x74a   : > { %v1948_v7 = vadd.f32 %v1947_v55, %v1946_v29 }
 0x74b   : > { %v1914_v62 = vrot.slane %v1913_v57, 1  ;;  %v1936_v63 = vrot.slane %v1935_v58, 4  ;;  %2028 = vbcast.lane.b32.xlu0 %v5815_v8, 272  ;;  %2090 = vbcast.lane.b32.xlu1 %v5896_v48, 256  ;;  %v1925_v3 = vrot.slane %v1924_v60, 2 }
 0x74c   : > { %v1949_v35 = vrot.slane %v1948_v7, 4 }
 0x74d   : > { %v1915_v6 = vadd.f32 %v1914_v62, %v1913_v57  ;;  %v1937_v12 = vadd.f32 %v1936_v63, %v1935_v58  ;;  %v1926_v14 = vadd.f32 %v1925_v3, %v1924_v60 }
 0x74e   : > { %v1950_v24 = vadd.f32 %v1949_v35, %v1948_v7 }
 0x74f   : > { %v1976_v16 = vadd.f32 %v1960_v61, %v1915_v6  ;;  %v1938_v18 = vrot.slane %v1937_v12, 2  ;;  %2094 = vbcast.lane.b32.xlu0 %v5896_v48, 264  ;;  %2063 = vbcast.lane.b32.xlu1 %v5850_v54, 272  ;;  %v1927_v19 = vrot.slane %v1926_v14, 1 }
 0x750   : > { %v1951_v32 = vrot.slane %v1950_v24, 2 }
 0x751   : > { %v5905_v20 = vrot.slane %v1976_v16, %v5699_v5  ;;  %v1939_v26 = vadd.f32 %v1938_v18, %v1937_v12  ;;  %v1928_v36 = vadd.f32 %v1927_v19, %v1926_v14 }
 0x752   : > { %v1952_v38 = vadd.f32 %v1951_v32, %v1950_v24  ;;  %v2276_v24 = vld [vmem:[%s7163_s14 + $0x80] sm:$0xff] }
 0x753   : > { %2129 = vbcast.lane.b32.xlu1 %v5905_v20, 264  ;;  %2125 = vbcast.lane.b32.xlu0 %v5905_v20, 256  ;;  %v1977_v23 = vadd.f32 %v1961_v22, %v1928_v36  ;;  %v1940_v27 = vrot.slane %v1939_v26, 1  ;;  %v2268_v36 = vld [vmem:[%s7163_s14 + $0x40] sm:$0xff] }
 0x754   : > { %v1953_v39 = vrot.slane %v1952_v38, 1 }
 0x755   : > { %v2158_v28 = vrot.slane %v1977_v23, %v5699_v5  ;;  %v1941_v37 = vadd.f32 %v1940_v27, %v1939_v26  ;;  %v2269_v26 = vld [vmem:[%s7163_s14 + $0x48] sm:$0xff] }
 0x756   : > { %v1954_v42 = vadd.f32 %v1953_v39, %v1952_v38  ;;  %v2277_v23 = vld [vmem:[%s7163_s14 + $0x88] sm:$0xff]  ;;  %v2260_v38 = vld [vmem:[%s7163_s14] sm:$0xff] }
 0x757   : > { %2032 = vbcast.lane.b32.xlu1 %v5815_v8, 280  ;;  %1993 = vbcast.lane.b32.xlu0 %v5887_v40, 272  ;;  %v1978_v30 = vadd.f32 %v1962_v33, %v1941_v37  ;;  %v2261_v37 = vld [vmem:[%s7163_s14 + $0x8] sm:$0xff] }
 0x758   : > { %v1979_v43 = vadd.f32 %v1963_v41, %v1954_v42  ;;  %v2278_v41 = vld [vmem:[%s7163_s14 + $0x90] sm:$0xff] }
 0x759   : > { %v2193_v34 = vrot.slane %v1978_v30, %v5699_v5 }
 0x75a   : > { %v2228_v44 = vrot.slane %v1979_v43, %v5699_v5 }
 0x75b   : > { %2098 = vbcast.lane.b32.xlu0 %v5896_v48, 272  ;;  %2160 = vbcast.lane.b32.xlu1 %v2158_v28, 256 }
 0x75f   : > { %2164 = vbcast.lane.b32.xlu0 %v2158_v28, 264  ;;  %2067 = vbcast.lane.b32.xlu1 %v5850_v54, 280 }
 0x763   : > { %2133 = vbcast.lane.b32.xlu0 %v5905_v20, 272  ;;  %2195 = vbcast.lane.b32.xlu1 %v2193_v34, 256 }
 0x767   : > { %2199 = vbcast.lane.b32.xlu0 %v2193_v34, 264  ;;  %1997 = vbcast.lane.b32.xlu1 %v5887_v40, 280 }
 0x76b   : > { %2036 = vbcast.lane.b32.xlu0 %v5815_v8, 288  ;;  %2102 = vbcast.lane.b32.xlu1 %v5896_v48, 280 }
 0x76f   : > { %2168 = vbcast.lane.b32.xlu0 %v2158_v28, 272  ;;  %2230 = vbcast.lane.b32.xlu1 %v2228_v44, 256 }
 0x773   : > { %2234 = vbcast.lane.b32.xlu0 %v2228_v44, 264  ;;  %2071 = vbcast.lane.b32.xlu1 %v5850_v54, 288 }
 0x777   : > { %2137 = vbcast.lane.b32.xlu0 %v5905_v20, 280  ;;  %2203 = vbcast.lane.b32.xlu1 %v2193_v34, 272 }
 0x77b   : > { %2001 = vbcast.lane.b32.xlu0 %v5887_v40, 288  ;;  %2040 = vbcast.lane.b32.xlu1 %v5815_v8, 296 }
 0x77f   : > { %2106 = vbcast.lane.b32.xlu0 %v5896_v48, 288  ;;  %2172 = vbcast.lane.b32.xlu1 %v2158_v28, 280 }
 0x783   : > { %2238 = vbcast.lane.b32.xlu0 %v2228_v44, 272  ;;  %2075 = vbcast.lane.b32.xlu1 %v5850_v54, 296 }
 0x787   : > { %2141 = vbcast.lane.b32.xlu0 %v5905_v20, 288  ;;  %2207 = vbcast.lane.b32.xlu1 %v2193_v34, 280 }
 0x78b   : > { %2005 = vbcast.lane.b32.xlu0 %v5887_v40, 296  ;;  %2044 = vbcast.lane.b32.xlu1 %v5815_v8, 304 }
 0x78f   : > { %2110 = vbcast.lane.b32.xlu0 %v5896_v48, 296  ;;  %2176 = vbcast.lane.b32.xlu1 %v2158_v28, 288 }
 0x793   : > { %2242 = vbcast.lane.b32.xlu0 %v2228_v44, 280  ;;  %2079 = vbcast.lane.b32.xlu1 %v5850_v54, 304 }
 0x797   : > { %2145 = vbcast.lane.b32.xlu0 %v5905_v20, 296  ;;  %2211 = vbcast.lane.b32.xlu1 %v2193_v34, 288 }
 0x79b   : > { %2009 = vbcast.lane.b32.xlu0 %v5887_v40, 304  ;;  %2048 = vbcast.lane.b32.xlu1 %v5815_v8, 312 }
 0x79f   : > { %2114 = vbcast.lane.b32.xlu0 %v5896_v48, 304  ;;  %2180 = vbcast.lane.b32.xlu1 %v2158_v28, 296 }
 0x7a3   : > { %2246 = vbcast.lane.b32.xlu0 %v2228_v44, 288  ;;  %2083 = vbcast.lane.b32.xlu1 %v5850_v54, 312 }
 0x7a7   : > { %2149 = vbcast.lane.b32.xlu0 %v5905_v20, 304  ;;  %2215 = vbcast.lane.b32.xlu1 %v2193_v34, 296 }
 0x7a9   : > { %v2025_v21 = vpop.permute.xlu1 %2024  ;;  %v2021_v45 = vpop.permute.xlu0 %2020 }
 0x7aa   : > { %v2333_v32 = vmul.f32 %v2269_v26, %v2025_v21  ;;  %v2332_v33 = vmul.f32 %v2268_v36, %v2021_v45  ;;  %v2285_v21 = vld [vmem:[%s7163_s14 + $0xc8] sm:$0xff]  ;;  %v2271_v36 = vld [vmem:[%s7163_s14 + $0x58] sm:$0xff] }
 0x7ab   : > { %2013 = vbcast.lane.b32.xlu0 %v5887_v40, 312  ;;  %2118 = vbcast.lane.b32.xlu1 %v5896_v48, 312  ;;  %v2293_v45 = vld [vmem:[%s7163_s14 + $0x108] sm:$0xff] }
 0x7ac   : > { %v2410_v26 = vsel %vm601_vm0, %v2333_v32, 0.0  ;;  %v6043_v32 = vld [vmem:[%s7164_s15] sm:$0xff] }
 0x7af   : > { %2184 = vbcast.lane.b32.xlu0 %v2158_v28, 304  ;;  %2250 = vbcast.lane.b32.xlu1 %v2228_v44, 296 }
 0x7b1   : > { %v2060_v8 = vpop.permute.xlu1 %2059  ;;  %v2056_v46 = vpop.permute.xlu0 %2055 }
 0x7b2   : > { %v2341_v30 = vmul.f32 %v2277_v23, %v2060_v8  ;;  %v2340_v39 = vmul.f32 %v2276_v24, %v2056_v46 }
 0x7b3   : > { %2153 = vbcast.lane.b32.xlu0 %v5905_v20, 312  ;;  %2219 = vbcast.lane.b32.xlu1 %v2193_v34, 304 }
 0x7b4   : > { %v2431_v23 = vsel %vm601_vm0, %v2341_v30, 0.0  ;;  %v2430_v24 = vsel %vm601_vm0, %v2340_v39, 0.0  ;;  %v2286_v30 = vld [vmem:[%s7163_s14 + $0xd0] sm:$0xff] }
 0x7b7   : > { %2188 = vbcast.lane.b32.xlu0 %v2158_v28, 312  ;;  %2254 = vbcast.lane.b32.xlu1 %v2228_v44, 304 }
 0x7b9   : > { %v1990_v47 = vpop.permute.xlu1 %1989  ;;  %v1986_v54 = vpop.permute.xlu0 %1985 }
 0x7ba   : > { %v2325_v42 = vmul.f32 %v2261_v37, %v1990_v47  ;;  %v2324_v43 = vmul.f32 %v2260_v38, %v1986_v54  ;;  %v2409_v47 = vsel %vm601_vm0, %v2332_v33, 0.0  ;;  %v2292_v54 = vld [vmem:[%s7163_s14 + $0x100] sm:$0xff] }
 0x7bb   : > { %2223 = vbcast.lane.b32.xlu0 %v2193_v34, 312  ;;  %2258 = vbcast.lane.b32.xlu1 %v2228_v44, 312  ;;  %v2270_v34 = vld [vmem:[%s7163_s14 + $0x50] sm:$0xff]  ;;  %v2284_v44 = vld [vmem:[%s7163_s14 + $0xc0] sm:$0xff] }
 0x7bc   : > { %v2389_v39 = vsel %vm601_vm0, %v2325_v42, 0.0  ;;  %v2558_v42 = vrot.slane %v6043_v32, 1 }
 0x7bd   : > { %v2091_v31 = vpop.permute.xlu1 %2090  ;;  %v2029_v49 = vpop.permute.xlu0 %2028 }
 0x7be   : > { %v2334_v37 = vmul.f32 %v2270_v34, %v2029_v49  ;;  %v2348_v33 = vmul.f32 %v2284_v44, %v2091_v31  ;;  %v2388_v49 = vsel %vm601_vm0, %v2324_v43, 0.0  ;;  %v2411_v31 = vadd.f32 %v2410_v26, %v2409_v47  ;;  %v2301_v44 = vld [vmem:[%s7163_s14 + $0x148] sm:$0xff]  ;;  %v2294_v26 = vld [vmem:[%s7163_s14 + $0x110] sm:$0xff] }
 0x7bf   : > { %v2390_v47 = vadd.f32 %v2389_v39, %v2388_v49 }
 0x7c0   : > { %v2412_v43 = vsel %vm601_vm0, %v2334_v37, 0.0 }
 0x7c1   : > { %v2064_v40 = vpop.permute.xlu1 %2063  ;;  %v2095_v10 = vpop.permute.xlu0 %2094 }
 0x7c2   : > { %v2342_v38 = vmul.f32 %v2278_v41, %v2064_v40  ;;  %v2349_v17 = vmul.f32 %v2285_v21, %v2095_v10  ;;  %v2432_v10 = vadd.f32 %v2431_v23, %v2430_v24  ;;  %v2300_v21 = vld [vmem:[%s7163_s14 + $0x140] sm:$0xff] }
 0x7c5   : > { %v2130_v50 = vpop.permute.xlu1 %2129  ;;  %v2126_v51 = vpop.permute.xlu0 %2125 }
 0x7c6   : > { %v2357_v15 = vmul.f32 %v2293_v45, %v2130_v50  ;;  %v2356_v40 = vmul.f32 %v2292_v54, %v2126_v51  ;;  %v2279_v50 = vld [vmem:[%s7163_s14 + $0x98] sm:$0xff]  ;;  %v2433_v51 = vsel %vm601_vm0, %v2342_v38, 0.0  ;;  %v2451_v54 = vsel %vm601_vm0, %v2348_v33, 0.0 }
 0x7c7   : > { %v2434_v39 = vadd.f32 %v2433_v51, %v2432_v10 }
 0x7c8   : > { %v2473_v23 = vsel %vm601_vm0, %v2357_v15, 0.0  ;;  %v2287_v15 = vld [vmem:[%s7163_s14 + $0xd8] sm:$0xff] }
 0x7c9   : > { %v2033_v25 = vpop.permute.xlu1 %2032  ;;  %v5943_v52 = vpop.permute.xlu0 %1993 }
 0x7ca   : > { %v2335_v34 = vmul.f32 %v2271_v36, %v2033_v25  ;;  %v2326_v25 = vmul.f32 %v2262_v13, %v5943_v52  ;;  %v2452_v36 = vsel %vm601_vm0, %v2349_v17, 0.0  ;;  %v2263_v13 = vld [vmem:[%s7163_s14 + $0x18] sm:$0xff]  ;;  %v2309_v52 = vld [vmem:[%s7163_s14 + $0x188] sm:$0xff] }
 0x7cb   : > { %v2453_v10 = vadd.f32 %v2452_v36, %v2451_v54 }
 0x7cc   : > { %v2414_v24 = vsel %vm601_vm0, %v2335_v34, 0.0  ;;  %v2391_v34 = vsel %vm601_vm0, %v2326_v25, 0.0 }
 0x7cd   : > { %v5945_v53 = vpop.permute.xlu1 %2160  ;;  %v5947_v48 = vpop.permute.xlu0 %2098  ;;  %v2392_v36 = vadd.f32 %v2391_v34, %v2390_v47  ;;  %v2316_v47 = vld [vmem:[%s7163_s14 + $0x1c0] sm:$0xff] }
 0x7ce   : > { %v2350_v45 = vmul.f32 %v2286_v30, %v5947_v48  ;;  %v2472_v48 = vsel %vm601_vm0, %v2356_v40, 0.0  ;;  %v2413_v30 = vadd.f32 %v2412_v43, %v2411_v31  ;;  %v2364_v49 = vmul.f32 %v2300_v21, %v5945_v53  ;;  %v2308_v40 = vld [vmem:[%s7163_s14 + $0x180] sm:$0xff] }
 0x7cf   : > { %v2474_v53 = vadd.f32 %v2473_v23, %v2472_v48  ;;  %v2280_v21 = vld [vmem:[%s7163_s14 + $0xa0] sm:$0xff] }
 0x7d0   : > { %v2415_v43 = vadd.f32 %v2414_v24, %v2413_v30  ;;  %v2493_v23 = vsel %vm601_vm0, %v2364_v49, 0.0 }
 0x7d1   : > { %v5949_v56 = vpop.permute.xlu1 %2067  ;;  %v5951_v57 = vpop.permute.xlu0 %2164 }
 0x7d2   : > { %v2343_v37 = vmul.f32 %v2279_v50, %v5949_v56  ;;  %v2365_v38 = vmul.f32 %v2301_v44, %v5951_v57  ;;  %v2272_v57 = vld [vmem:[%s7163_s14 + $0x60] sm:$0xff]  ;;  %v2454_v50 = vsel %vm601_vm0, %v2350_v45, 0.0 }
 0x7d4   : > { %v2435_v25 = vsel %vm601_vm0, %v2343_v37, 0.0  ;;  %v2494_v45 = vsel %vm601_vm0, %v2365_v38, 0.0 }
 0x7d5   : > { %v5953_v58 = vpop.permute.xlu1 %2195  ;;  %v5955_v60 = vpop.permute.xlu0 %2133  ;;  %v2495_v30 = vadd.f32 %v2494_v45, %v2493_v23  ;;  %v2288_v23 = vld [vmem:[%s7163_s14 + $0xe0] sm:$0xff] }
 0x7d6   : > { %v2358_v56 = vmul.f32 %v2294_v26, %v5955_v60  ;;  %v2302_v60 = vld [vmem:[%s7163_s14 + $0x150] sm:$0xff] }
 0x7d9   : > { %v5957_v55 = vpop.permute.xlu1 %1997  ;;  %v5959_v61 = vpop.permute.xlu0 %2199 }
 0x7da   : > { %v2327_v44 = vmul.f32 %v2263_v13, %v5957_v55  ;;  %v2373_v31 = vmul.f32 %v2309_v52, %v5959_v61  ;;  %v2372_v55 = vmul.f32 %v2308_v40, %v5953_v58  ;;  %v2455_v13 = vadd.f32 %v2454_v50, %v2453_v10  ;;  %v2310_v58 = vld [vmem:[%s7163_s14 + $0x190] sm:$0xff] }
 0x7db   : > { %v2475_v52 = vsel %vm601_vm0, %v2358_v56, 0.0  ;;  %v2274_v56 = vld [vmem:[%s7163_s14 + $0x70] sm:$0xff] }
 0x7dc   : > { %v2393_v48 = vsel %vm601_vm0, %v2327_v44, 0.0  ;;  %v2515_v24 = vsel %vm601_vm0, %v2373_v31, 0.0  ;;  %v2476_v31 = vadd.f32 %v2475_v52, %v2474_v53 }
 0x7dd   : > { %v5961_v62 = vpop.permute.xlu1 %2102  ;;  %v5963_v29 = vpop.permute.xlu0 %2036  ;;  %v6154_v10 = vadd.f32 %v2393_v48, %v2392_v36  ;;  %v2303_v36 = vld [vmem:[%s7163_s14 + $0x158] sm:$0xff] }
 0x7de   : > { %v2351_v51 = vmul.f32 %v2287_v15, %v5961_v62  ;;  %v2336_v61 = vmul.f32 %v2272_v57, %v5963_v29  ;;  %v2317_v62 = vld [vmem:[%s7163_s14 + $0x1c8] sm:$0xff]  ;;  %v2436_v15 = vadd.f32 %v2435_v25, %v2434_v39  ;;  %v2514_v57 = vsel %vm601_vm0, %v2372_v55, 0.0 }
 0x7df   : > { %v2273_v29 = vld [vmem:[%s7163_s14 + $0x68] sm:$0xff] }
 0x7e0   : > { %v2456_v49 = vsel %vm601_vm0, %v2351_v51, 0.0  ;;  %v2416_v34 = vsel %vm601_vm0, %v2336_v61, 0.0  ;;  %v2516_v51 = vadd.f32 %v2515_v24, %v2514_v57 }
 0x7e1   : > { %v5965_v63 = vpop.permute.xlu1 %2230  ;;  %v5967_v3 = vpop.permute.xlu0 %2168  ;;  %v2417_v55 = vadd.f32 %v2416_v34, %v2415_v43 }
 0x7e2   : > { %v2366_v37 = vmul.f32 %v2302_v60, %v5967_v3  ;;  %v2295_v3 = vld [vmem:[%s7163_s14 + $0x118] sm:$0xff]  ;;  %v2380_v60 = vmul.f32 %v2316_v47, %v5965_v63  ;;  %v2282_v63 = vld [vmem:[%s7163_s14 + $0xb0] sm:$0xff] }
 0x7e4   : > { %v2496_v25 = vsel %vm601_vm0, %v2366_v37, 0.0  ;;  %v2535_v48 = vsel %vm601_vm0, %v2380_v60, 0.0  ;;  %v2318_v37 = vld [vmem:[%s7163_s14 + $0x1d0] sm:$0xff] }
 0x7e5   : > { %v5969_v6 = vpop.permute.xlu1 %2071  ;;  %v5971_v7 = vpop.permute.xlu0 %2234  ;;  %v2497_v24 = vadd.f32 %v2496_v25, %v2495_v30  ;;  %v2283_v30 = vld [vmem:[%s7163_s14 + $0xb8] sm:$0xff] }
 0x7e6   : > { %v2344_v38 = vmul.f32 %v2280_v21, %v5969_v6  ;;  %v2381_v40 = vmul.f32 %v2317_v62, %v5971_v7  ;;  %v2281_v7 = vld [vmem:[%s7163_s14 + $0xa8] sm:$0xff]  ;;  %v6163_v21 = vadd.f32 %v2456_v49, %v2455_v13 }
 0x7e8   : > { %v2437_v45 = vsel %vm601_vm0, %v2344_v38, 0.0  ;;  %v2536_v61 = vsel %vm601_vm0, %v2381_v40, 0.0 }
 0x7e9   : > { %v5973_v12 = vpop.permute.xlu1 %2203  ;;  %v5975_v14 = vpop.permute.xlu0 %2137  ;;  %v2438_v47 = vadd.f32 %v2437_v45, %v2436_v15  ;;  %v2537_v49 = vadd.f32 %v2536_v61, %v2535_v48  ;;  %v2289_v15 = vld [vmem:[%s7163_s14 + $0xe8] sm:$0xff] }
 0x7ea   : > { %v2374_v50 = vmul.f32 %v2310_v58, %v5973_v12  ;;  %v2264_v12 = vld [vmem:[%s7163_s14 + $0x20] sm:$0xff]  ;;  %v2359_v62 = vmul.f32 %v2295_v3, %v5975_v14 }
 0x7ec   : > { %v2477_v34 = vsel %vm601_vm0, %v2359_v62, 0.0  ;;  %v2304_v62 = vld [vmem:[%s7163_s14 + $0x160] sm:$0xff] }
 0x7ed   : > { %v5977_v16 = vpop.permute.xlu1 %2040  ;;  %v5979_v18 = vpop.permute.xlu0 %2001 }
 0x7ee   : > { %v2337_v6 = vmul.f32 %v2273_v29, %v5977_v16  ;;  %v2275_v16 = vld [vmem:[%s7163_s14 + $0x78] sm:$0xff]  ;;  %v2328_v43 = vmul.f32 %v2264_v12, %v5979_v18 }
 0x7f0   : > { %v2418_v52 = vsel %vm601_vm0, %v2337_v6, 0.0 }
 0x7f1   : > { %v5981_v19 = vpop.permute.xlu1 %2172  ;;  %v5983_v20 = vpop.permute.xlu0 %2106 }
 0x7f2   : > { %v2367_v18 = vmul.f32 %v2303_v36, %v5981_v19  ;;  %v2352_v40 = vmul.f32 %v2288_v23, %v5983_v20  ;;  %v2311_v19 = vld [vmem:[%s7163_s14 + $0x198] sm:$0xff]  ;;  %v2395_v20 = vsel %vm601_vm0, %v2328_v43, 0.0 }
 0x7f5   : > { %v5985_v22 = vpop.permute.xlu1 %2075  ;;  %v5987_v35 = vpop.permute.xlu0 %2238 }
 0x7f6   : > { %v2345_v13 = vmul.f32 %v2281_v7, %v5985_v22  ;;  %v2265_v22 = vld [vmem:[%s7163_s14 + $0x28] sm:$0xff]  ;;  %v2382_v3 = vmul.f32 %v2318_v37, %v5987_v35 }
 0x7f9   : > { %v6001_v27 = vpop.permute.xlu1 %2207  ;;  %v6003_v28 = vpop.permute.xlu0 %2141 }
 0x7fa   : > { %v2375_v61 = vmul.f32 %v2311_v19, %v6001_v27  ;;  %v2396_v27 = vadd.f32 %v2395_v20, %v6154_v10  ;;  %v2312_v19 = vld [vmem:[%s7163_s14 + $0x1a0] sm:$0xff] }
 0x7fd   : > { %v6026_v8 = vpop.permute.xlu1 %2044  ;;  %v6028_v46 = vpop.permute.xlu0 %2005 }
 0x7fe   : > { %v2338_v53 = vmul.f32 %v2274_v56, %v6026_v8  ;;  %v2517_v8 = vsel %vm601_vm0, %v2374_v50, 0.0  ;;  %v2419_v50 = vadd.f32 %v2418_v52, %v2417_v55  ;;  %v2329_v6 = vmul.f32 %v2265_v22, %v6028_v46 }
 0x7ff   : > { %v2518_v57 = vadd.f32 %v2517_v8, %v2516_v51  ;;  %v2290_v51 = vld [vmem:[%s7163_s14 + $0xf0] sm:$0xff]  ;;  %v2538_v52 = vsel %vm601_vm0, %v2382_v3, 0.0 }
 0x800   : > { %v2420_v56 = vsel %vm601_vm0, %v2338_v53, 0.0  ;;  %v2498_v53 = vsel %vm601_vm0, %v2367_v18, 0.0  ;;  %v2397_v22 = vsel %vm601_vm0, %v2329_v6, 0.0  ;;  %v2297_v18 = vld [vmem:[%s7163_s14 + $0x128] sm:$0xff] }
 0x801   : > { %v6053_v41 = vpop.permute.xlu1 %2176  ;;  %v6055_v11 = vpop.permute.xlu0 %2110  ;;  %v2421_v35 = vadd.f32 %v2420_v56, %v2419_v50  ;;  %v2499_v37 = vadd.f32 %v2498_v53, %v2497_v24  ;;  %v2291_v24 = vld [vmem:[%s7163_s14 + $0xf8] sm:$0xff]  ;;  %v2539_v56 = vadd.f32 %v2538_v52, %v2537_v49 }
 0x802   : > { %v2353_v46 = vmul.f32 %v2289_v15, %v6055_v11  ;;  %v2478_v11 = vadd.f32 %v2477_v34, %v2476_v31  ;;  %v2398_v34 = vadd.f32 %v2397_v22, %v2396_v27 }
 0x805   : > { %v6090_v17 = vpop.permute.xlu1 %2079  ;;  %v6092_v33 = vpop.permute.xlu0 %2242 }
 0x806   : > { %v2346_v38 = vmul.f32 %v2282_v63, %v6090_v17  ;;  %v2439_v17 = vsel %vm601_vm0, %v2345_v13, 0.0  ;;  %v2458_v63 = vsel %vm601_vm0, %v2352_v40, 0.0  ;;  %v2267_v40 = vld [vmem:[%s7163_s14 + $0x38] sm:$0xff] }
 0x807   : > { %v2440_v55 = vadd.f32 %v2439_v17, %v2438_v47  ;;  %v2459_v31 = vadd.f32 %v2458_v63, %v6163_v21 }
 0x808   : > { %v2441_v25 = vsel %vm601_vm0, %v2346_v38, 0.0  ;;  %v2460_v38 = vsel %vm601_vm0, %v2353_v46, 0.0 }
 0x809   : > { %v6120_v26 = vpop.permute.xlu1 %2211  ;;  %v6122_v54 = vpop.permute.xlu0 %2145  ;;  %v2461_v50 = vadd.f32 %v2460_v38, %v2459_v31 }
 0x80a   : > { %v2361_v49 = vmul.f32 %v2297_v18, %v6122_v54  ;;  %v2376_v54 = vmul.f32 %v2312_v19, %v6120_v26 }
 0x80d   : > { %v2049_v39 = vpop.permute.xlu1 %2048  ;;  %v2010_v44 = vpop.permute.xlu0 %2009 }
 0x80e   : > { %v2339_v58 = vmul.f32 %v2275_v16, %v2049_v39  ;;  %v2266_v39 = vld [vmem:[%s7163_s14 + $0x30] sm:$0xff]  ;;  %v2296_v16 = vld [vmem:[%s7163_s14 + $0x120] sm:$0xff] }
 0x80f   : > { %v2330_v23 = vmul.f32 %v2266_v39, %v2010_v44  ;;  %v2360_v43 = vmul.f32 %v2296_v16, %v6003_v28  ;;  %v2319_v44 = vld [vmem:[%s7163_s14 + $0x1d8] sm:$0xff]  ;;  %v2368_v28 = vmul.f32 %v2304_v62, %v6053_v41 }
 0x810   : > { %v2422_v7 = vsel %vm601_vm0, %v2339_v58, 0.0  ;;  %v2442_v58 = vadd.f32 %v2441_v25, %v2440_v55  ;;  %v2383_v17 = vmul.f32 %v2319_v44, %v6092_v33  ;;  %v2305_v33 = vld [vmem:[%s7163_s14 + $0x168] sm:$0xff]  ;;  %v2299_v44 = vld [vmem:[%s7163_s14 + $0x138] sm:$0xff] }
 0x811   : > { %v6183_v29 = vpop.permute.xlu1 %2180  ;;  %v2115_v14 = vpop.permute.xlu0 %2114  ;;  %v2423_v36 = vadd.f32 %v2422_v7, %v2421_v35  ;;  %v2399_v21 = vsel %vm601_vm0, %v2330_v23, 0.0  ;;  %v2479_v41 = vsel %vm601_vm0, %v2360_v43, 0.0  ;;  %v2298_v7 = vld [vmem:[%s7163_s14 + $0x130] sm:$0xff]  ;;  %v2481_v43 = vsel %vm601_vm0, %v2361_v49, 0.0 }
 0x812   : > { %v2354_v13 = vmul.f32 %v2290_v51, %v2115_v14  ;;  %v2519_v14 = vsel %vm601_vm0, %v2375_v61, 0.0  ;;  %v2400_v16 = vadd.f32 %v2399_v21, %v2398_v34  ;;  %v2540_v63 = vsel %vm601_vm0, %v2383_v17, 0.0 }
 0x813   : > { %v2424_v15 = vrot.slane %v2423_v36, 4  ;;  %v2520_v6 = vadd.f32 %v2519_v14, %v2518_v57  ;;  %v2320_v57 = vld [vmem:[%s7163_s14 + $0x1e0] sm:$0xff]  ;;  %v2480_v52 = vadd.f32 %v2479_v41, %v2478_v11  ;;  %v2369_v26 = vmul.f32 %v2305_v33, %v6183_v29  ;;  %v2313_v29 = vld [vmem:[%s7163_s14 + $0x1a8] sm:$0xff] }
 0x814   : > { %v2541_v31 = vadd.f32 %v2540_v63, %v2539_v56  ;;  %v2521_v11 = vsel %vm601_vm0, %v2376_v54, 0.0 }
 0x815   : > { %v2084_v60 = vpop.permute.xlu1 %2083  ;;  %v6217_v12 = vpop.permute.xlu0 %2246  ;;  %v2425_v25 = vadd.f32 %v2424_v15, %v2423_v36  ;;  %v2502_v15 = vsel %vm601_vm0, %v2369_v26, 0.0  ;;  %v2522_v34 = vadd.f32 %v2521_v11, %v2520_v6 }
 0x816   : > { %v2347_v45 = vmul.f32 %v2283_v30, %v2084_v60  ;;  %v2462_v30 = vsel %vm601_vm0, %v2354_v13, 0.0  ;;  %v2500_v60 = vsel %vm601_vm0, %v2368_v28, 0.0  ;;  %v2306_v13 = vld [vmem:[%s7163_s14 + $0x170] sm:$0xff]  ;;  %v2384_v36 = vmul.f32 %v2320_v57, %v6217_v12 }
 0x817   : > { %v2463_v35 = vadd.f32 %v2462_v30, %v2461_v50  ;;  %v2426_v14 = vrot.slane %v2425_v25, 2  ;;  %v2314_v30 = vld [vmem:[%s7163_s14 + $0x1b0] sm:$0xff] }
 0x818   : > { %v2443_v8 = vsel %vm601_vm0, %v2347_v45, 0.0  ;;  %v2542_v21 = vsel %vm601_vm0, %v2384_v36, 0.0 }
 0x819   : > { %v6233_v48 = vpop.permute.xlu1 %2215  ;;  %v2150_v47 = vpop.permute.xlu0 %2149  ;;  %v2444_v10 = vadd.f32 %v2443_v8, %v2442_v58  ;;  %v2501_v58 = vadd.f32 %v2500_v60, %v2499_v37  ;;  %v2482_v37 = vadd.f32 %v2481_v43, %v2480_v52  ;;  %v2427_v49 = vadd.f32 %v2426_v14, %v2425_v25 }
 0x81a   : > { %v2362_v55 = vmul.f32 %v2298_v7, %v2150_v47  ;;  %v2321_v47 = vld [vmem:[%s7163_s14 + $0x1e8] sm:$0xff]  ;;  %v2377_v17 = vmul.f32 %v2313_v29, %v6233_v48  ;;  %v2543_v6 = vadd.f32 %v2542_v21, %v2541_v31 }
 0x81b   : > { %v2445_v46 = vrot.slane %v2444_v10, 4  ;;  %v2503_v60 = vadd.f32 %v2502_v15, %v2501_v58 }
 0x81c   : > { %v2483_v28 = vsel %vm601_vm0, %v2362_v55, 0.0  ;;  %v2523_v63 = vsel %vm601_vm0, %v2377_v17, 0.0 }
 0x81d   : > { %v2119_v20 = vpop.permute.xlu1 %2118  ;;  %v2014_v3 = vpop.permute.xlu0 %2013  ;;  %v2446_v27 = vadd.f32 %v2445_v46, %v2444_v10  ;;  %v2484_v7 = vadd.f32 %v2483_v28, %v2482_v37 }
 0x81e   : > { %v2355_v39 = vmul.f32 %v2291_v24, %v2119_v20  ;;  %v2331_v51 = vmul.f32 %v2267_v40, %v2014_v3  ;;  %v2322_v20 = vld [vmem:[%s7163_s14 + $0x1f0] sm:$0xff]  ;;  %v2307_v3 = vld [vmem:[%s7163_s14 + $0x178] sm:$0xff] }
 0x81f   : > { %v2447_v50 = vrot.slane %v2446_v27, 2 }
 0x820   : > { %v2464_v45 = vsel %vm601_vm0, %v2355_v39, 0.0  ;;  %v2401_v53 = vsel %vm601_vm0, %v2331_v51, 0.0 }
 0x821   : > { %v2465_v61 = vadd.f32 %v2464_v45, %v2463_v35  ;;  %v2402_v62 = vadd.f32 %v2401_v53, %v2400_v16  ;;  %v2251_v23 = vpop.permute.xlu1 %2250  ;;  %v2185_v8 = vpop.permute.xlu0 %2184  ;;  %v2448_v53 = vadd.f32 %v2447_v50, %v2446_v27 }
 0x822   : > { %v2370_v12 = vmul.f32 %v2306_v13, %v2185_v8  ;;  %v2385_v56 = vmul.f32 %v2321_v47, %v2251_v23  ;;  %v2428_v23 = vrot.slane %v2427_v49, 1 }
 0x823   : > { %v2466_v22 = vrot.slane %v2465_v61, 4  ;;  %v2403_v38 = vrot.slane %v2402_v62, 4  ;;  %v2449_v11 = vrot.slane %v2448_v53, 1 }
 0x824   : > { %v2504_v39 = vsel %vm601_vm0, %v2370_v12, 0.0  ;;  %v2544_v46 = vsel %vm601_vm0, %v2385_v56, 0.0 }
 0x825   : > { %v2467_v18 = vadd.f32 %v2466_v22, %v2465_v61  ;;  %v2404_v10 = vadd.f32 %v2403_v38, %v2402_v62  ;;  %v2220_v24 = vpop.permute.xlu1 %2219  ;;  %v2154_v40 = vpop.permute.xlu0 %2153  ;;  %v2505_v55 = vadd.f32 %v2504_v39, %v2503_v60  ;;  %v2323_v61 = vld [vmem:[%s7163_s14 + $0x1f8] sm:$0xff]  ;;  %v2545_v26 = vadd.f32 %v2544_v46, %v2543_v6 }
 0x826   : > { %v2363_v41 = vmul.f32 %v2299_v44, %v2154_v40  ;;  %v2378_v33 = vmul.f32 %v2314_v30, %v2220_v24  ;;  %v2315_v62 = vld [vmem:[%s7163_s14 + $0x1b8] sm:$0xff]  ;;  %v2524_v38 = vadd.f32 %v2523_v63, %v2522_v34  ;;  %v2429_v24 = vadd.f32 %v2428_v23, %v2427_v49 }
 0x827   : > { %v2405_v19 = vrot.slane %v2404_v10, 2  ;;  %v2468_v16 = vrot.slane %v2467_v18, 2  ;;  %v2561_v6 = vrot.slane %v6043_v32, 4 }
 0x828   : > { %v2485_v51 = vsel %vm601_vm0, %v2363_v41, 0.0  ;;  %v2525_v36 = vsel %vm601_vm0, %v2378_v33, 0.0  ;;  %v2559_v41 = vrot.slane %v6043_v32, 2  ;;  %v2574_v39 = vadd.f32 %v2558_v42, %v2429_v24 }
 0x829   : > { %v2255_v48 = vpop.permute.xlu1 %2254  ;;  %v2189_v35 = vpop.permute.xlu0 %2188  ;;  %v2486_v57 = vadd.f32 %v2485_v51, %v2484_v7  ;;  %v2406_v25 = vadd.f32 %v2405_v19, %v2404_v10  ;;  %v2469_v43 = vadd.f32 %v2468_v16, %v2467_v18  ;;  %v2526_v37 = vadd.f32 %v2525_v36, %v2524_v38 }
 0x82a   : > { %v2386_v54 = vmul.f32 %v2322_v20, %v2255_v48  ;;  %v2371_v45 = vmul.f32 %v2307_v3, %v2189_v35  ;;  %v2450_v19 = vadd.f32 %v2449_v11, %v2448_v53  ;;  %v2560_v20 = vrot.slane %v6043_v32, 3 }
 0x82b   : > { %v2487_v13 = vrot.slane %v2486_v57, 4  ;;  %v2407_v14 = vrot.slane %v2406_v25, 1  ;;  %v2470_v40 = vrot.slane %v2469_v43, 1  ;;  %v2562_v35 = vrot.slane %v6043_v32, 5 }
 0x82c   : > { %v2546_v8 = vsel %vm601_vm0, %v2386_v54, 0.0  ;;  %v2506_v52 = vsel %vm601_vm0, %v2371_v45, 0.0  ;;  %v2575_v54 = vadd.f32 %v2559_v41, %v2450_v19  ;;  %v2589_v53 = vrot.slane %v2574_v39, 7  ;;  %v4822_v41 = vld [vmem:[%s7203_s4 + $0x38] sm:$0xff]  ;;  %v4812_v19 = vld [vmem:[%s7204_s20 + $0x20] sm:$0xff] }
 0x82d   : > { %v2507_v58 = vadd.f32 %v2506_v52, %v2505_v55  ;;  %v2259_v27 = vpop.permute.xlu1 %2258  ;;  %v2224_v22 = vpop.permute.xlu0 %2223  ;;  %v2488_v47 = vadd.f32 %v2487_v13, %v2486_v57  ;;  %v2547_v29 = vadd.f32 %v2546_v8, %v2545_v26  ;;  %v2408_v34 = vadd.f32 %v2407_v14, %v2406_v25  ;;  %5130 = vmatpush3.msra.mxu0 %v4822_v41 }
 0x82e   : > { %v2387_v44 = vmul.f32 %v2323_v61, %v2259_v27  ;;  %v2379_v31 = vmul.f32 %v2315_v62, %v2224_v22  ;;  %v2471_v51 = vadd.f32 %v2470_v40, %v2469_v43  ;;  %v2564_v8 = vrot.slane %v6043_v32, 7  ;;  %5131 = vmatprep.subr.mxu0 %v5352_v2 }
 0x82f   : > { %v2508_v12 = vrot.slane %v2507_v58, 4  ;;  %v2489_v28 = vrot.slane %v2488_v47, 2  ;;  %v2573_v48 = vadd.f32 %v6043_v32, %v2408_v34  ;;  %v2592_v52 = vrot.slane %v2575_v54, 6  ;;  %v4821_v34 = vld [vmem:[%s7203_s4 + $0x30] sm:$0xff]  ;;  %v4817_v54 = vld [vmem:[%s7206_s3 + $0x1] ss:$0 sm:$0xff] }
 0x830   : > { %v2548_v10 = vsel %vm601_vm0, %v2387_v44, 0.0  ;;  %v2527_v18 = vsel %vm601_vm0, %v2379_v31, 0.0  ;;  %v2576_v63 = vadd.f32 %v2560_v20, %v2471_v51  ;;  %v2563_v26 = vrot.slane %v6043_v32, 6  ;;  %5132 = vmatpush3.msra.mxu0 %v4821_v34  ;;  %v4819_v20 = vld [vmem:[%s7203_s4 + $0x20] sm:$0xff] }
 0x831   : > { %v2509_v15 = vadd.f32 %v2508_v12, %v2507_v58  ;;  %v2549_v21 = vadd.f32 %v2548_v10, %v2547_v29  ;;  %v2490_v56 = vadd.f32 %v2489_v28, %v2488_v47  ;;  %v2528_v30 = vadd.f32 %v2527_v18, %v2526_v37  ;;  %5133 = vmatprep.subr.mxu0 %v5352_v2 }
 0x832   : > { %v2591_v62 = vsel %vm2590_vm6, %v2589_v53, %v2573_v48  ;;  %v2595_v36 = vrot.slane %v2576_v63, 5  ;;  %v4829_v48 = vld [vmem:[%s7155_s6 + $0x38] sm:$0xff] }
 0x833   : > { %v2510_v50 = vrot.slane %v2509_v15, 2  ;;  %v2550_v17 = vrot.slane %v2549_v21, 4  ;;  %v2491_v3 = vrot.slane %v2490_v56, 1  ;;  %v2529_v7 = vrot.slane %v2528_v30, 4 }
 0x834   : > { %v2594_v38 = vsel %vm2593_vm7, %v2592_v52, %v2591_v62 }
 0x835   : > { %v2511_v49 = vadd.f32 %v2510_v50, %v2509_v15  ;;  %v2551_v60 = vadd.f32 %v2550_v17, %v2549_v21  ;;  %v2492_v16 = vadd.f32 %v2491_v3, %v2490_v56  ;;  %v2530_v33 = vadd.f32 %v2529_v7, %v2528_v30  ;;  %v4815_v30 = vld [vmem:[%s7204_s20 + $0x38] sm:$0xff]  ;;  %v4813_v50 = vld [vmem:[%s7204_s20 + $0x28] sm:$0xff] }
 0x836   : > { %v2597_v11 = vsel %vm2596_vm8, %v2595_v36, %v2594_v38  ;;  %5119 = vmatpush3.msra.mxu1 %v4815_v30  ;;  %v4820_v17 = vld [vmem:[%s7203_s4 + $0x28] sm:$0xff] }
 0x837   : > { %v2512_v46 = vrot.slane %v2511_v49, 1  ;;  %v2552_v57 = vrot.slane %v2551_v60, 2  ;;  %v2531_v45 = vrot.slane %v2530_v33, 2  ;;  %v2577_v55 = vadd.f32 %v2561_v6, %v2492_v16  ;;  %5120 = vmatprep.subr.mxu1 %v5352_v2  ;;  %5134 = vmatpush3.msra.mxu0 %v4820_v17  ;;  %v4811_v6 = vld [vmem:[%s7166_s17] ss:$0 sm:$0xff] }
 0x838   : > { %5135 = vmatprep.subr.mxu0 %v5352_v2 }
 0x839   : > { %v2513_v25 = vadd.f32 %v2512_v46, %v2511_v49  ;;  %v2553_v42 = vadd.f32 %v2552_v57, %v2551_v60  ;;  %v2532_v61 = vadd.f32 %v2531_v45, %v2530_v33  ;;  %v2598_v27 = vrot.slane %v2577_v55, 4  ;;  %5136 = vmatpush3.msra.mxu0 %v4819_v20  ;;  %v4810_v49 = vld [vmem:[%s7165_s16] ss:$0 sm:$0xff]  ;;  %v4827_v46 = vld [vmem:[%s7155_s6 + $0x28] sm:$0xff]  ;;  %v4824_v45 = vld [vmem:[%s7154_s5 + $0x1] ss:$0 sm:$0xff] }
 0x83a   : > { %5151 = vmatprep.subr.mxu0 %v5352_v2  ;;  %v4826_v57 = vld [vmem:[%s7155_s6 + $0x20] sm:$0xff] }
 0x83b   : > { %v2578_v23 = vadd.f32 %v2562_v35, %v2513_v25  ;;  %v2554_v13 = vrot.slane %v2553_v42, 1  ;;  %v2533_v43 = vrot.slane %v2532_v61, 1  ;;  %v2600_v29 = vsel %vm2599_vm9, %v2598_v27, %v2597_v11  ;;  %v4828_v35 = vld [vmem:[%s7155_s6 + $0x30] sm:$0xff] }
 0x83d   : > { %v2555_v58 = vadd.f32 %v2554_v13, %v2553_v42  ;;  %v2534_v22 = vadd.f32 %v2533_v43, %v2532_v61  ;;  %v2601_v47 = vrot.slane %v2578_v23, 3 }
 0x83f   : > { %v2580_v44 = vadd.f32 %v2564_v8, %v2555_v58  ;;  %v2579_v31 = vadd.f32 %v2563_v26, %v2534_v22  ;;  %v2603_v32 = vsel %vm2602_vm10, %v2601_v47, %v2600_v29  ;;  %v4831_v26 = vld [vmem:[%s7156_s7 + $0x1] ss:$0 sm:$0xff] }
 0x841   : > { %v2607_v14 = vrot.slane %v2580_v44, 1  ;;  %v2604_v12 = vrot.slane %v2579_v31, 2  ;;  %v5289_v44 = vld [vmem:[%s5619_s22] sm:$0xff]  ;;  %s5360_s22 = smov [#allocation2]  }
 0x843   : > { %v2606_v37 = vsel %vm2605_vm11, %v2604_v12, %v2603_v32 }
 0x844   : > { %v2609_v28 = vsel %vm2608_vm12, %v2607_v14, %v2606_v37 }
 0x845   : > { %v2611_v10 = vadd.f32 %v2609_v28, %v5692_v1  ;;  %v4814_v1 = vld [vmem:[%s7204_s20 + $0x30] sm:$0xff] }
 0x846   : > { %5121 = vmatpush3.msra.mxu1 %v4814_v1 }
 0x847   : > { %v2614_v18 = vsel %vm601_vm0, %v2611_v10, 0.0  ;;  %5122 = vmatprep.subr.mxu1 %v5352_v2 }
 0x848   : > { %2615 = vadd.xlane.f32.xlu0 %v2614_v18  ;;  %5123 = vmatpush3.msra.mxu1 %v4813_v50 }
 0x849   : > { %5124 = vmatprep.subr.mxu1 %v5352_v2 }
 0x84a   : > { %5125 = vmatpush3.msra.mxu1 %v4812_v19 }
 0x84b   : > { %5140 = vmatprep.subr.mxu1 %v5352_v2 }
 0x8d1   : > { %v2616_v24 = vpop.xlane.xlu0 %2615 }
 0x8d2   : > { %v2617_v40 = vmul.f32 0.03125, %v2616_v24 }
 0x8d4   : > { %v2618_v15 = vsub.f32 %v2611_v10, %v2617_v40 }
 0x8d6   : > { %v2619_v21 = vmul.f32 %v2618_v15, %v2618_v15 }
 0x8d8   : > { %v2620_v56 = vsel %vm601_vm0, %v2619_v21, 0.0 }
 0x8d9   : > { %2621 = vadd.xlane.f32.xlu1 %v2620_v56 }
 0x962   : > { %v2622_v3 = vpop.xlane.xlu1 %2621 }
 0x963   : > { %v2623_v7 = vmul.f32 0.03125, %v2622_v3 }
 0x965   : > { %v2624_v39 = vadd.f32 1e-05, %v2623_v7 }
 0x967   : > { %5267 = vrsqrt.f32 %v2624_v39 }
 0x974   : > { %v5268_v51 = vpop.eup %5267 }
 0x975   : > { %v2626_v60 = vmul.f32 %v5268_v51, %v2618_v15 }
 0x977   : > { %v2633_v16 = vmul.f32 %v4810_v49, %v2626_v60 }
 0x979   : > { %v6376_v33 = vadd.f32 %v4811_v6, %v2633_v16 }
 0x97b   : > { %5127 = vmatmul.mubr.msk.f32.vlgmr.msra.gmra.mxu1 %vm601_vm0, %v6376_v33  ;;  %5138 = vmatmul.mubr.msk.f32.vlgmr.msra.gmra.mxu0 %vm601_vm0, %v6376_v33 }
 0x97c   : > { %5141 = vmatpush3.msra.mxu1 %v4829_v48  ;;  %5148 = vmatprep.mubr.msk.f32.mxu1 %vm5353_vm1, %v5352_v2 }
 0x97d   : > { %5142 = vmatprep.subr.mxu1 %v5352_v2  ;;  %5153 = vmatprep.mubr.msk.f32.mxu0 %vm5353_vm1, %v5352_v2 }
 0x97e   : > { %5143 = vmatpush3.msra.mxu1 %v4828_v35 }
 0x97f   : > { %5144 = vmatprep.subr.mxu1 %v5352_v2 }
 0x980   : > { %5145 = vmatpush3.msra.mxu1 %v4827_v46 }
 0x981   : > { %5146 = vmatprep.subr.mxu1 %v5352_v2 }
 0x982   : > { %5147 = vmatpush3.msra.mxu1 %v4826_v57 }
 0x983   : > { %5149 = vmatmul.mubr.msk.f32.vlgmr.msra.gmra.mxu1 %vm601_vm0, %v6376_v33  ;;  %5156 = vmatprep.subr.mxu1 %v5352_v2 }
 0x984   : > { %5158 = vmatprep.mubr.msk.f32.mxu1 %vm5353_vm1, %v5352_v2 }
 0xa3b   : > { %v2723_v53 = vpop.f32.mrf.mxu1  ;;  %v2806_v63 = vpop.f32.mrf.mxu0 }
 0xa3c   : > { %v2724_v25 = vadd.f32 %v4817_v54, %v2723_v53  ;;  %v2807_v42 = vadd.f32 %v4824_v45, %v2806_v63 }
 0xa3d   : > { %v5128_v55 = vpop.f32.mrf.mxu1  ;;  %v5139_v61 = vpop.f32.mrf.mxu0 }
 0xa3e   : > { %2894 = vrot.lane.b32.xlu1 %v2724_v25, %s7209_s19  ;;  %2901 = vrot.lane.b32.xlu0 %v2807_v42, %s7209_s19 }
 0xa3f   : > { %5152 = vmatpush3.xpose.msk.msra.mxu0 %vm861_vm2, %v2807_v42 }
 0xa40   : > { %5161 = vmatprep.subr.mxu0 %v5352_v2 }
 0xa42   : > { %5154 = vmatmul.mubr.msk.f32.vlgmr.msra.gmra.mxu0 %vm861_vm2, %v2724_v25  ;;  %2905 = vrot.lane.b32.xlu1 %v2807_v42, %s7210_s26 }
 0xa43   : > { %v2889_v62 = vpop.f32.mrf.mxu1  ;;  %2903 = vrot.lane.b32.xlu0 %v2807_v42, %s7208_s24  ;;  %5163 = vmatprep.mubr.msk.f32.mxu0 %vm5353_vm1, %v5352_v2 }
 0xa44   : > { %v6435_v58 = vadd.f32 %v4831_v26, %v2889_v62 }
 0xa45   : > { %v5150_v23 = vpop.f32.mrf.mxu1 }
 0xa46   : > { %2898 = vrot.lane.b32.xlu1 %v2724_v25, %s7210_s26 }
 0xa47   : > { %2896 = vrot.lane.b32.xlu0 %v2724_v25, %s7208_s24 }
 0xab0   : > { %v2895_v13 = vpop.permute.xlu1 %2894  ;;  %v2902_v8 = vpop.permute.xlu0 %2901 }
 0xab1   : > { %5157 = vmatpush3.xpose.msk.msra.mxu1 %vm861_vm2, %v2902_v8 }
 0xab2   : > { %5166 = vmatprep.subr.mxu1 %v5352_v2 }
 0xab4   : > { %v2906_v52 = vpop.permute.xlu1 %2905  ;;  %5159 = vmatmul.mubr.msk.f32.vlgmr.msra.gmra.mxu1 %vm861_vm2, %v2895_v13 }
 0xab5   : > { %v2904_v43 = vpop.permute.xlu0 %2903  ;;  %5167 = vmatpush3.xpose.msk.msra.mxu1 %vm861_vm2, %v2906_v52  ;;  %5168 = vmatprep.mubr.msk.f32.mxu1 %vm5353_vm1, %v5352_v2 }
 0xab6   : > { %5162 = vmatpush3.xpose.msk.msra.mxu0 %vm861_vm2, %v2904_v43  ;;  %5176 = vmatprep.subr.mxu1 %v5352_v2 }
 0xab7   : > { %5171 = vmatprep.subr.mxu0 %v5352_v2 }
 0xab8   : > { %v2899_v36 = vpop.permute.xlu1 %2898 }
 0xab9   : > { %v2897_v27 = vpop.permute.xlu0 %2896  ;;  %5169 = vmatmul.mubr.msk.f32.vlgmr.msra.gmra.mxu1 %vm861_vm2, %v2899_v36 }
 0xaba   : > { %5164 = vmatmul.mubr.msk.f32.vlgmr.msra.gmra.mxu0 %vm861_vm2, %v2897_v27  ;;  %5178 = vmatprep.mubr.msk.f32.mxu1 %vm5353_vm1, %v5352_v2 }
 0xabb   : > { %5172 = vmatpush3.msra.mxu0 %v6435_v58  ;;  %5173 = vmatprep.mubr.msk.f32.mxu0 %vm5353_vm1, %v5352_v2 }
 0xabc   : > { %5181 = vmatprep.subr.mxu0 %v5352_v2 }
 0xb02   : > { %v2987_v22 = vpop.f32.mrf.mxu0 }
 0xb03   : > { %v3213_v38 = vmul.f32 0.35355338, %v2987_v22 }
 0xb04   : > { %v5155_v47 = vpop.f32.mrf.mxu0 }
 0xb05   : > { %v3217_v31 = vadd.f32 %v5289_v44, %v3213_v38  ;;  %v4848_v38 = vld [vmem:[%s7157_s8 + $0x38] sm:$0xff]  ;;  %v4847_v47 = vld [vmem:[%s7157_s8 + $0x30] sm:$0xff] }
 0xb07   : > { %v3221_v11 = vsel %vm861_vm2, %v3217_v31, -inf }
 0xb08   : > { %3222 = vmax.xlane.f32.xlu0 %v3221_v11 }
 0xb74   : > { %v3061_v14 = vpop.f32.mrf.mxu1 }
 0xb75   : > { %v3214_v29 = vmul.f32 0.35355338, %v3061_v14 }
 0xb76   : > { %v5160_v12 = vpop.f32.mrf.mxu1 }
 0xb77   : > { %v3218_v32 = vadd.f32 %v5289_v44, %v3214_v29 }
 0xb79   : > { %v3209_v37 = vpop.f32.mrf.mxu1  ;;  %v3224_v28 = vsel %vm861_vm2, %v3218_v32, -inf }
 0xb7a   : > { %v3135_v10 = vpop.f32.mrf.mxu0  ;;  %3225 = vmax.xlane.f32.xlu1 %v3224_v28  ;;  %v3216_v24 = vmul.f32 0.35355338, %v3209_v37 }
 0xb7b   : > { %v3215_v18 = vmul.f32 0.35355338, %v3135_v10  ;;  %v5170_v40 = vpop.f32.mrf.mxu1 }
 0xb7c   : > { %v5165_v15 = vpop.f32.mrf.mxu0  ;;  %v3220_v56 = vadd.f32 %v5289_v44, %v3216_v24 }
 0xb7d   : > { %v3219_v21 = vadd.f32 %v5289_v44, %v3215_v18  ;;  %v4846_v44 = vld [vmem:[%s7157_s8 + $0x28] sm:$0xff]  ;;  %v4850_v15 = vld [vmem:[%s7158_s9 + $0x1] ss:$0 sm:$0xff] }
 0xb7e   : > { %v3230_v41 = vsel %vm861_vm2, %v3220_v56, -inf }
 0xb7f   : > { %v3227_v30 = vsel %vm861_vm2, %v3219_v21, -inf }
 0xb80   : > { %3228 = vmax.xlane.f32.xlu0 %v3227_v30 }
 0xb84   : > { %3231 = vmax.xlane.f32.xlu0 %v3230_v41 }
 0xb8b   : > { %2908 = vrot.lane.b32.xlu1 %v6435_v58, %s7209_s19  ;;  %s7211_s19 = smov 8  }
 0xb91   : > { %v3223_v1 = vpop.xlane.xlu0 %3222 }
 0xb92   : > { %v3233_v34 = vsub.f32 %v3217_v31, %v3223_v1  ;;  %v4845_v31 = vld [vmem:[%s7157_s8 + $0x20] sm:$0xff] }
 0xb94   : > { %v3237_v50 = vmul.f32 1.442695, %v3233_v34 }
 0xb96   : > { %5269 = vpow2.f32 %v3237_v50 }
 0xba3   : > { %v5270_v17 = vpop.eup %5269 }
 0xba4   : > { %v3245_v19 = vsel %vm861_vm2, %v5270_v17, 0.0 }
 0xbaf   : > { %3246 = vadd.xlane.f32.xlu1 %v3245_v19 }
 0xc03   : > { %v3226_v20 = vpop.xlane.xlu1 %3225 }
 0xc04   : > { %v3234_v3 = vsub.f32 %v3218_v32, %v3226_v20 }
 0xc06   : > { %v3239_v7 = vmul.f32 1.442695, %v3234_v3 }
 0xc07   : > { %v2909_v39 = vpop.permute.xlu1 %2908 }
 0xc08   : > { %5271 = vpow2.f32 %v3239_v7  ;;  %5177 = vmatpush3.msra.mxu1 %v2909_v39 }
 0xc09   : > { %v3229_v51 = vpop.xlane.xlu0 %3228  ;;  %5186 = vmatprep.subr.mxu1 %v5352_v2 }
 0xc0a   : > { %v3235_v49 = vsub.f32 %v3219_v21, %v3229_v51 }
 0xc0c   : > { %v3241_v60 = vmul.f32 1.442695, %v3235_v49  ;;  %v4854_v49 = vld [vmem:[%s7159_s10 + $0x1] ss:$0 sm:$0xff] }
 0xc0d   : > { %v3232_v6 = vpop.xlane.xlu0 %3231 }
 0xc0e   : > { %5273 = vpow2.f32 %v3241_v60  ;;  %v3236_v16 = vsub.f32 %v3220_v56, %v3232_v6  ;;  %v4855_v60 = vld [vmem:[%s7160_s11 + $0x1] ss:$0 sm:$0xff] }
 0xc10   : > { %v3243_v48 = vmul.f32 1.442695, %v3236_v16 }
 0xc12   : > { %5275 = vpow2.f32 %v3243_v48 }
 0xc15   : > { %v5272_v35 = vpop.eup %5271 }
 0xc16   : > { %v3248_v46 = vsel %vm861_vm2, %v5272_v35, 0.0 }
 0xc17   : > { %3249 = vadd.xlane.f32.xlu0 %v3248_v46 }
 0xc1b   : > { %v5274_v57 = vpop.eup %5273 }
 0xc1c   : > { %v3251_v54 = vsel %vm861_vm2, %v5274_v57, 0.0 }
 0xc1d   : > { %3252 = vadd.xlane.f32.xlu1 %v3251_v54 }
 0xc1f   : > { %v5276_v45 = vpop.eup %5275 }
 0xc20   : > { %v3254_v53 = vsel %vm861_vm2, %v5276_v45, 0.0 }
 0xc21   : > { %3255 = vadd.xlane.f32.xlu0 %v3254_v53 }
 0xc2e   : > { %2914 = vrot.lane.b32.xlu1 %v6435_v58, %s7210_s26  ;;  %s7212_s26 = smov 16  }
 0xc37   : > { %2911 = vrot.lane.b32.xlu0 %v6435_v58, %s7208_s24  ;;  %s5294_s24 = sshll.u32 %s5360_s22, 4  ;;  %s5295_s24 = int_to_ptr.vmem [resolvable:$false] %s5294_s24 }
 0xc38   : > { %v3247_v63 = vpop.xlane.xlu1 %3246  ;;  %s5296_s0 = scalar_lea.vmem %s5295_s24, 256 }
 0xc39   : > { %5277 = vrcp.f32 %v3247_v63  ;;  %v7217_v63 = vsub.s32 7, %v5683_v59 }
 0xc46   : > { %v5278_v25 = vpop.eup %5277 }
 0xc47   : > { %v3261_v42 = vmul.f32 %v5278_v25, %v5270_v17 }
 0xc49   : > { %5174 = vmatmul.mubr.msk.f32.vlgmr.msra.gmra.mxu0 %vm861_vm2, %v3261_v42 }
 0xc4a   : > { %5183 = vmatprep.mubr.msk.f32.mxu0 %vm5353_vm1, %v5352_v2 }
 0xca0   : > { %v3250_v55 = vpop.xlane.xlu0 %3249 }
 0xca1   : > { %5279 = vrcp.f32 %v3250_v55 }
 0xca6   : > { %v3253_v61 = vpop.xlane.xlu1 %3252 }
 0xca7   : > { %5281 = vrcp.f32 %v3253_v61 }
 0xcaa   : > { %v3256_v62 = vpop.xlane.xlu0 %3255  ;;  %v2915_v52 = vpop.permute.xlu1 %2914 }
 0xcab   : > { %5283 = vrcp.f32 %v3256_v62 }
 0xcae   : > { %v5280_v23 = vpop.eup %5279  ;;  %v2912_v13 = vpop.permute.xlu0 %2911 }
 0xcaf   : > { %5182 = vmatpush3.msra.mxu0 %v2912_v13  ;;  %v3262_v8 = vmul.f32 %v5280_v23, %v5272_v35 }
 0xcb0   : > { %5191 = vmatprep.subr.mxu0 %v5352_v2 }
 0xcb1   : > { %5179 = vmatmul.mubr.msk.f32.vlgmr.msra.gmra.mxu1 %vm861_vm2, %v3262_v8 }
 0xcb2   : > { %5187 = vmatpush3.msra.mxu1 %v2915_v52  ;;  %5188 = vmatprep.mubr.msk.f32.mxu1 %vm5353_vm1, %v5352_v2 }
 0xcb4   : > { %v5282_v43 = vpop.eup %5281 }
 0xcb5   : > { %v3263_v26 = vmul.f32 %v5282_v43, %v5274_v57  ;;  %v4860_v43 = vld [vmem:[%s7161_s12 + $0x120] sm:$0xff] }
 0xcb7   : > { %5184 = vmatmul.mubr.msk.f32.vlgmr.msra.gmra.mxu0 %vm861_vm2, %v3263_v26  ;;  %v4862_v26 = vld [vmem:[%s7161_s12 + $0x130] sm:$0xff] }
 0xcb8   : > { %v5284_v36 = vpop.eup %5283  ;;  %5199 = vmatprep.mubr.msk.f32.mxu0 %vm5353_vm1, %v5352_v2  ;;  %5192 = vmatpush3.msra.mxu0 %v4848_v38 }
 0xcb9   : > { %v3264_v58 = vmul.f32 %v5284_v36, %v5276_v45  ;;  %5193 = vmatprep.subr.mxu0 %v5352_v2 }
 0xcba   : > { %5194 = vmatpush3.msra.mxu0 %v4847_v47 }
 0xcbb   : > { %5189 = vmatmul.mubr.msk.f32.vlgmr.msra.gmra.mxu1 %vm861_vm2, %v3264_v58  ;;  %5195 = vmatprep.subr.mxu0 %v5352_v2 }
 0xcbc   : > { %5196 = vmatpush3.msra.mxu0 %v4846_v44 }
 0xcbd   : > { %5197 = vmatprep.subr.mxu0 %v5352_v2 }
 0xcbe   : > { %5198 = vmatpush3.msra.mxu0 %v4845_v31 }
 0xd09   : > { %v3334_v27 = vpop.f32.mrf.mxu0 }
 0xd0b   : > { %v5175_v22 = vpop.f32.mrf.mxu0 }
 0xd71   : > { %v3407_v11 = vpop.f32.mrf.mxu1 }
 0xd72   : > { %3558 = vrot.lane.b32.xlu1 %v3407_v11, %s7211_s19  ;;  %s7218_s19 = sld [smem:[#allocation16_spill]] }
 0xd73   : > { %v5180_v14 = vpop.f32.mrf.mxu1 }
 0xd74   : > { %v4865_v14 = vld [vmem:[%s7161_s12 + $0x148] sm:$0xff] }
 0xd77   : > { %v3480_v29 = vpop.f32.mrf.mxu0 }
 0xd78   : > { %3562 = vrot.lane.b32.xlu0 %v3480_v29, %s7212_s26  ;;  %v4864_v29 = vld [vmem:[%s7161_s12 + $0x140] sm:$0xff]  ;;  %s577_s26 = sand.u32 1, %s5342_s28   ;;  %s4708_s3 = scalar_lea.hbm %s7218_s19, %s4959_s29 }
 0xd79   : > { %v5185_v12 = vpop.f32.mrf.mxu0  ;;  %s4697_s4 = scalar_lea.sflag [#allocation3], %s577_s26 }
 0xd7a   : > { %v4863_v12 = vld [vmem:[%s7161_s12 + $0x138] sm:$0xff] }
 0xd7b   : > { %v3553_v32 = vpop.f32.mrf.mxu1 }
 0xd7c   : > { %3566 = vrot.lane.b32.xlu1 %v3553_v32, %s7213_s18  ;;  %s4785_s18 = sshll.u32 %s577_s26, 3 }
 0xd7d   : > { %v5190_v37 = vpop.f32.mrf.mxu1  ;;  %s579_s23 = scalar_lea.vmem [#allocation2], %s4785_s18 }
 0xd7e   : > { %s4710_s1 = sshll.u32 %s579_s23, 4  ;;  %s4711_s1 = int_to_ptr.vmem [resolvable:$true] %s4710_s1 }
 0xd7f   : > { %s5290_s30 = scalar_lea.vmem %s4711_s1, 128  ;;  %p5297_p0 = scmp.lt.s32.totalorder %s4711_s1, %s5295_s24 }
 0xd80   : > { %p5291_p11 = scmp.ne.s32.totalorder %s4711_s1, %s5290_s30  ;;  %p5298_p1 = scmp.lt.s32.totalorder %s5296_s0, %s5290_s30 }
 0xd82   : > { %p5292_p12 = pnand %p5291_p11, %p5494_p5  ;;  %p5299_p2 = por %p5298_p1, %p5297_p0 }
 0xd84   : > { %p5293_p13 = pneg %p5292_p12 }
 0xd86   : > { %p5300_p3 = pnand %p5299_p2, %p5293_p13 }
 0xde4   : > { %v3559_v28 = vpop.permute.xlu1 %3558 }
 0xde5   : > { %v3569_v2 = vsel %vm861_vm2, %v3334_v27, %v3559_v28  ;;  %v4866_v28 = vld [vmem:[%s7161_s12 + $0x150] sm:$0xff] }
 0xdea   : > { %v3563_v10 = vpop.permute.xlu0 %3562 }
 0xdeb   : > { %v3570_v18 = vsel %vm1515_vm3, %v3569_v2, %v3563_v10 }
 0xdee   : > { %v3567_v24 = vpop.permute.xlu1 %3566 }
 0xdef   : > { %v3571_v40 = vsel %vm1517_vm4, %v3570_v18, %v3567_v24 }
 0xdf0   : > { %5200 = vmatmul.mubr.msk.f32.vlgmr.msra.gmra.mxu0 %vm601_vm0, %v3571_v40 }
 0xeb0   : > { %v3654_v21 = vpop.f32.mrf.mxu0 }
 0xeb1   : > { %v3655_v56 = vadd.f32 %v4850_v15, %v3654_v21 }
 0xeb2   : > { %v5201_v30 = vpop.f32.mrf.mxu0 }
 0xeb3   : > { %v3658_v41 = vadd.f32 %v3655_v56, %v6376_v33 }
 0xeb5   : > { %v3663_v1 = vsel %vm601_vm0, %v3658_v41, 0.0 }
 0xeb6   : > { %3664 = vadd.xlane.f32.xlu0 %v3663_v1 }
 0xf3f   : > { %v3665_v34 = vpop.xlane.xlu0 %3664 }
 0xf40   : > { %v3666_v50 = vmul.f32 0.03125, %v3665_v34 }
 0xf42   : > { %v3667_v17 = vsub.f32 %v3658_v41, %v3666_v50 }
 0xf44   : > { %v3668_v19 = vmul.f32 %v3667_v17, %v3667_v17 }
 0xf46   : > { %v3669_v20 = vsel %vm601_vm0, %v3668_v19, 0.0  ;;  %v4856_v19 = vld [vmem:[%s7161_s12 + $0x100] sm:$0xff] }
 0xf47   : > { %3670 = vadd.xlane.f32.xlu1 %v3669_v20 }
 0xfd0   : > { %v3671_v3 = vpop.xlane.xlu1 %3670 }
 0xfd1   : > { %v3672_v7 = vmul.f32 0.03125, %v3671_v3  ;;  %v4867_v3 = vld [vmem:[%s7161_s12 + $0x158] sm:$0xff] }
 0xfd3   : > { %v3673_v39 = vadd.f32 1e-05, %v3672_v7 }
 0xfd5   : > { %5285 = vrsqrt.f32 %v3673_v39 }
 0xfe2   : > { %v5286_v51 = vpop.eup %5285 }
 0xfe3   : > { %v3675_v33 = vmul.f32 %v5286_v51, %v3667_v17  ;;  %v4857_v17 = vld [vmem:[%s7161_s12 + $0x108] sm:$0xff] }
 0xfe5   : > { %v3682_v6 = vmul.f32 %v4854_v49, %v3675_v33  ;;  %v4858_v49 = vld [vmem:[%s7161_s12 + $0x110] sm:$0xff] }
 0xfe7   : > { %v6506_v16 = vadd.f32 %v4855_v60, %v3682_v6 }
 0xfe9   : > { %v3712_v48 = vrot.slane %v6506_v16, %v1655_v0  ;;  %v3731_v35 = vrot.slane %v6506_v16, %v1674_v4  ;;  %v3693_v46 = vrot.slane %v6506_v16, %v5699_v5  ;;  %v3750_v57 = vrot.slane %v6506_v16, %v1693_v9 }
 0xfea   : > { %v7214_v0 = vsub.s32 4, %v5683_v59  ;;  %v7215_v4 = vsub.s32 5, %v5683_v59  ;;  %v7216_v9 = vsub.s32 6, %v5683_v59  ;;  %v3826_v25 = vrot.slane %v6506_v16, %v7217_v63  ;;  %v4861_v59 = vld [vmem:[%s7161_s12 + $0x128] sm:$0xff]  ;;  %v4870_v63 = vld [vmem:[%s7161_s12 + $0x170] sm:$0xff] }
 0xfeb   : > { %3718 = vbcast.lane.b32.xlu1 %v3712_v48, 264  ;;  %3714 = vbcast.lane.b32.xlu0 %v3712_v48, 256 }
 0xfec   : > { %v3769_v54 = vrot.slane %v6506_v16, %v7214_v0  ;;  %v3788_v45 = vrot.slane %v6506_v16, %v7215_v4  ;;  %v3807_v53 = vrot.slane %v6506_v16, %v7216_v9  ;;  %v4868_v9 = vld [vmem:[%s7161_s12 + $0x160] sm:$0xff] }
 0xfef   : > { %3737 = vbcast.lane.b32.xlu1 %v3731_v35, 264  ;;  %3733 = vbcast.lane.b32.xlu0 %v3731_v35, 256 }
 0xff3   : > { %3699 = vbcast.lane.b32.xlu1 %v3693_v46, 264  ;;  %3695 = vbcast.lane.b32.xlu0 %v3693_v46, 256 }
 0xff7   : > { %3752 = vbcast.lane.b32.xlu1 %v3750_v57, 256  ;;  %3722 = vbcast.lane.b32.xlu0 %v3712_v48, 272 }
 0xffb   : > { %3741 = vbcast.lane.b32.xlu1 %v3731_v35, 272  ;;  %3756 = vbcast.lane.b32.xlu0 %v3750_v57, 264 }
 0xfff   : > { %3775 = vbcast.lane.b32.xlu1 %v3769_v54, 264  ;;  %3771 = vbcast.lane.b32.xlu0 %v3769_v54, 256 }
0x1003   : > { %3726 = vbcast.lane.b32.xlu1 %v3712_v48, 280  ;;  %3703 = vbcast.lane.b32.xlu0 %v3693_v46, 272 }
0x1007   : > { %3790 = vbcast.lane.b32.xlu1 %v3788_v45, 256  ;;  %3760 = vbcast.lane.b32.xlu0 %v3750_v57, 272 }
0x100b   : > { %3745 = vbcast.lane.b32.xlu1 %v3731_v35, 280  ;;  %3794 = vbcast.lane.b32.xlu0 %v3788_v45, 264 }
0x100f   : > { %3809 = vbcast.lane.b32.xlu1 %v3807_v53, 256  ;;  %3779 = vbcast.lane.b32.xlu0 %v3769_v54, 272 }
0x1013   : > { %3707 = vbcast.lane.b32.xlu1 %v3693_v46, 280  ;;  %3813 = vbcast.lane.b32.xlu0 %v3807_v53, 264 }
0x1017   : > { %3798 = vbcast.lane.b32.xlu1 %v3788_v45, 272  ;;  %3764 = vbcast.lane.b32.xlu0 %v3750_v57, 280  ;;  %v4869_v57 = vld [vmem:[%s7161_s12 + $0x168] sm:$0xff] }
0x101b   : > { %3832 = vbcast.lane.b32.xlu1 %v3826_v25, 264  ;;  %3828 = vbcast.lane.b32.xlu0 %v3826_v25, 256 }
0x101f   : > { %3817 = vbcast.lane.b32.xlu1 %v3807_v53, 272  ;;  %3783 = vbcast.lane.b32.xlu0 %v3769_v54, 280  ;;  %v6587_v54 = vld [vmem:[%s7162_s13 + $0x8] sm:$0xff] }
0x1023   : > { %3836 = vbcast.lane.b32.xlu1 %v3826_v25, 272  ;;  %3802 = vbcast.lane.b32.xlu0 %v3788_v45, 280 }
0x1027   : > { %3840 = vbcast.lane.b32.xlu1 %v3826_v25, 280  ;;  %3821 = vbcast.lane.b32.xlu0 %v3807_v53, 280 }
0x105d   : > { %v3719_v42 = vpop.permute.xlu1 %3718  ;;  %v3715_v55 = vpop.permute.xlu0 %3714 }
0x105e   : > { %v3880_v27 = vmul.f32 %v4861_v59, %v3719_v42  ;;  %v3879_v22 = vmul.f32 %v4860_v43, %v3715_v55  ;;  %v4859_v43 = vld [vmem:[%s7161_s12 + $0x118] sm:$0xff] }
0x1060   : > { %v3921_v31 = vsel %vm1850_vm5, %v3880_v27, 0.0  ;;  %v3920_v11 = vsel %vm1850_vm5, %v3879_v22, 0.0 }
0x1061   : > { %v3738_v61 = vpop.permute.xlu1 %3737  ;;  %v3734_v62 = vpop.permute.xlu0 %3733  ;;  %v3922_v37 = vadd.f32 %v3921_v31, %v3920_v11 }
0x1062   : > { %v3884_v18 = vmul.f32 %v4865_v14, %v3738_v61  ;;  %v3883_v24 = vmul.f32 %v4864_v29, %v3734_v62 }
0x1064   : > { %v3934_v34 = vsel %vm1850_vm5, %v3884_v18, 0.0  ;;  %v3933_v50 = vsel %vm1850_vm5, %v3883_v24, 0.0 }
0x1065   : > { %v3700_v23 = vpop.permute.xlu1 %3699  ;;  %v3696_v13 = vpop.permute.xlu0 %3695  ;;  %v3935_v39 = vadd.f32 %v3934_v34, %v3933_v50 }
0x1066   : > { %v3876_v6 = vmul.f32 %v4857_v17, %v3700_v23  ;;  %v3875_v48 = vmul.f32 %v4856_v19, %v3696_v13  ;;  %v4014_v13 = vrot.slane %v6587_v54, 1 }
0x1068   : > { %v3908_v61 = vsel %vm1850_vm5, %v3876_v6, 0.0  ;;  %v3907_v62 = vsel %vm1850_vm5, %v3875_v48, 0.0  ;;  %v4881_v48 = vld [vmem:[%s7161_s12 + $0x1c8] sm:$0xff] }
0x1069   : > { %v6531_v8 = vpop.permute.xlu1 %3752  ;;  %v3723_v52 = vpop.permute.xlu0 %3722  ;;  %v3909_v22 = vadd.f32 %v3908_v61, %v3907_v62  ;;  %v4875_v62 = vld [vmem:[%s7161_s12 + $0x198] sm:$0xff] }
0x106a   : > { %v3881_v38 = vmul.f32 %v4862_v26, %v3723_v52  ;;  %v3887_v26 = vmul.f32 %v4868_v9, %v6531_v8 }
0x106c   : > { %v3923_v32 = vsel %vm1850_vm5, %v3881_v38, 0.0 }
0x106d   : > { %v3742_v36 = vpop.permute.xlu1 %3741  ;;  %v3757_v58 = vpop.permute.xlu0 %3756  ;;  %v3924_v15 = vadd.f32 %v3923_v32, %v3922_v37  ;;  %v4872_v32 = vld [vmem:[%s7161_s12 + $0x180] sm:$0xff] }
0x106e   : > { %v3885_v21 = vmul.f32 %v4866_v28, %v3742_v36  ;;  %v3888_v23 = vmul.f32 %v4869_v57, %v3757_v58 }
0x1070   : > { %v3936_v7 = vsel %vm1850_vm5, %v3885_v21, 0.0  ;;  %v3947_v58 = vsel %vm1850_vm5, %v3888_v23, 0.0 }
0x1071   : > { %v6542_v47 = vpop.permute.xlu1 %3775  ;;  %v6544_v44 = vpop.permute.xlu0 %3771  ;;  %v3937_v46 = vadd.f32 %v3936_v7, %v3935_v39  ;;  %v4015_v7 = vrot.slane %v6587_v54, 2 }
0x1072   : > { %v3891_v17 = vmul.f32 %v4872_v32, %v6544_v44 }
0x1075   : > { %v3727_v10 = vpop.permute.xlu1 %3726  ;;  %v3704_v2 = vpop.permute.xlu0 %3703 }
0x1076   : > { %v3882_v40 = vmul.f32 %v4863_v12, %v3727_v10  ;;  %v3877_v4 = vmul.f32 %v4858_v49, %v3704_v2  ;;  %v4873_v12 = vld [vmem:[%s7161_s12 + $0x188] sm:$0xff]  ;;  %v4871_v10 = vld [vmem:[%s7161_s12 + $0x178] sm:$0xff]  ;;  %v3946_v2 = vsel %vm1850_vm5, %v3887_v26, 0.0  ;;  %v4882_v26 = vld [vmem:[%s7161_s12 + $0x1d0] sm:$0xff] }
0x1077   : > { %v3892_v50 = vmul.f32 %v4873_v12, %v6542_v47  ;;  %v4877_v47 = vld [vmem:[%s7161_s12 + $0x1a8] sm:$0xff] }
0x1078   : > { %v3925_v56 = vsel %vm1850_vm5, %v3882_v40, 0.0  ;;  %v3910_v36 = vsel %vm1850_vm5, %v3877_v4, 0.0  ;;  %v3948_v40 = vadd.f32 %v3947_v58, %v3946_v2 }
0x1079   : > { %v3926_v30 = vadd.f32 %v3925_v56, %v3924_v15  ;;  %v6562_v41 = vpop.permute.xlu1 %3790  ;;  %v3761_v1 = vpop.permute.xlu0 %3760  ;;  %v3911_v37 = vadd.f32 %v3910_v36, %v3909_v22  ;;  %v4874_v56 = vld [vmem:[%s7161_s12 + $0x190] sm:$0xff]  ;;  %v3960_v4 = vsel %vm1850_vm5, %v3892_v50, 0.0 }
0x107a   : > { %v3889_v27 = vmul.f32 %v4870_v63, %v3761_v1 }
0x107b   : > { %v3927_v20 = vrot.slane %v3926_v30, 4 }
0x107c   : > { %v3949_v18 = vsel %vm1850_vm5, %v3889_v27, 0.0 }
0x107d   : > { %v3928_v51 = vadd.f32 %v3927_v20, %v3926_v30  ;;  %v3746_v33 = vpop.permute.xlu1 %3745  ;;  %v6579_v60 = vpop.permute.xlu0 %3794  ;;  %v4876_v20 = vld [vmem:[%s7161_s12 + $0x1a0] sm:$0xff] }
0x107e   : > { %v3886_v35 = vmul.f32 %v4867_v3, %v3746_v33  ;;  %v3950_v3 = vadd.f32 %v3949_v18, %v3948_v40  ;;  %v3895_v9 = vmul.f32 %v4876_v20, %v6562_v41  ;;  %v3896_v63 = vmul.f32 %v4877_v47, %v6579_v60  ;;  %v4883_v47 = vld [vmem:[%s7161_s12 + $0x1d8] sm:$0xff] }
0x107f   : > { %v3929_v0 = vrot.slane %v3928_v51, 2 }
0x1080   : > { %v3938_v45 = vsel %vm1850_vm5, %v3886_v35, 0.0  ;;  %v4878_v35 = vld [vmem:[%s7161_s12 + $0x1b0] sm:$0xff]  ;;  %v3972_v22 = vsel %vm1850_vm5, %v3895_v9, 0.0 }
0x1081   : > { %v3930_v53 = vadd.f32 %v3929_v0, %v3928_v51  ;;  %v3939_v25 = vadd.f32 %v3938_v45, %v3937_v46  ;;  %v6596_v42 = vpop.permute.xlu1 %3809  ;;  %v3780_v55 = vpop.permute.xlu0 %3779  ;;  %v3959_v45 = vsel %vm1850_vm5, %v3891_v17, 0.0 }
0x1082   : > { %v3893_v49 = vmul.f32 %v4874_v56, %v3780_v55  ;;  %v4886_v56 = vld [vmem:[%s7161_s12 + $0x1f0] sm:$0xff] }
0x1083   : > { %v3931_v52 = vrot.slane %v3930_v53, 1  ;;  %v3940_v59 = vrot.slane %v3939_v25, 4 }
0x1084   : > { %v3962_v23 = vsel %vm1850_vm5, %v3893_v49, 0.0 }
0x1085   : > { %v3932_v38 = vadd.f32 %v3931_v52, %v3930_v53  ;;  %v3941_v31 = vadd.f32 %v3940_v59, %v3939_v25  ;;  %v3708_v11 = vpop.permute.xlu1 %3707  ;;  %v3814_v14 = vpop.permute.xlu0 %3813  ;;  %v4880_v25 = vld [vmem:[%s7161_s12 + $0x1c0] sm:$0xff]  ;;  %v3961_v59 = vadd.f32 %v3960_v4, %v3959_v45 }
0x1086   : > { %v3878_v29 = vmul.f32 %v4859_v43, %v3708_v11  ;;  %v4885_v11 = vld [vmem:[%s7161_s12 + $0x1e8] sm:$0xff] }
0x1087   : > { %v4030_v8 = vadd.f32 %v4014_v13, %v3932_v38  ;;  %v3942_v28 = vrot.slane %v3941_v31, 2  ;;  %v3900_v13 = vmul.f32 %v4881_v48, %v3814_v14  ;;  %v3899_v38 = vmul.f32 %v4880_v25, %v6596_v42  ;;  %v4884_v14 = vld [vmem:[%s7161_s12 + $0x1e0] sm:$0xff]  ;;  %v4879_v42 = vld [vmem:[%s7161_s12 + $0x1b8] sm:$0xff] }
0x1088   : > { %v3912_v24 = vsel %vm1850_vm5, %v3878_v29, 0.0  ;;  %v3973_v29 = vsel %vm1850_vm5, %v3896_v63, 0.0  ;;  %v3963_v12 = vadd.f32 %v3962_v23, %v3961_v59 }
0x1089   : > { %v6620_v15 = vrot.slane %v4030_v8, %v5699_v5  ;;  %v3943_v21 = vadd.f32 %v3942_v28, %v3941_v31  ;;  %v3913_v30 = vadd.f32 %v3912_v24, %v3911_v37  ;;  %v3799_v1 = vpop.permute.xlu1 %3798  ;;  %v3765_v34 = vpop.permute.xlu0 %3764  ;;  %v4016_v31 = vrot.slane %v6587_v54, 3 }
0x108a   : > { %v3890_v19 = vmul.f32 %v4871_v10, %v3765_v34  ;;  %v3897_v52 = vmul.f32 %v4878_v35, %v3799_v1  ;;  %v3986_v37 = vsel %vm1850_vm5, %v3900_v13, 0.0  ;;  %v3974_v34 = vadd.f32 %v3973_v29, %v3972_v22 }
0x108b   : > { %v3944_v39 = vrot.slane %v3943_v21, 1  ;;  %v3914_v51 = vrot.slane %v3913_v30, 4  ;;  %4081 = vbcast.lane.b32.xlu1 %v6620_v15, 264  ;;  %4077 = vbcast.lane.b32.xlu0 %v6620_v15, 256  ;;  %v3985_v50 = vsel %vm1850_vm5, %v3899_v38, 0.0 }
0x108c   : > { %v3951_v44 = vsel %vm1850_vm5, %v3890_v19, 0.0  ;;  %v3975_v28 = vsel %vm1850_vm5, %v3897_v52, 0.0 }
0x108d   : > { %v3945_v33 = vadd.f32 %v3944_v39, %v3943_v21  ;;  %v3915_v6 = vadd.f32 %v3914_v51, %v3913_v30  ;;  %v3952_v46 = vadd.f32 %v3951_v44, %v3950_v3  ;;  %v3833_v57 = vpop.permute.xlu1 %3832  ;;  %v3829_v0 = vpop.permute.xlu0 %3828  ;;  %v3987_v3 = vadd.f32 %v3986_v37, %v3985_v50  ;;  %v4887_v51 = vld [vmem:[%s7161_s12 + $0x1f8] sm:$0xff] }
0x108e   : > { %v3904_v40 = vmul.f32 %v4885_v11, %v3833_v57  ;;  %v3903_v17 = vmul.f32 %v4884_v14, %v3829_v0  ;;  %v3976_v49 = vadd.f32 %v3975_v28, %v3974_v34  ;;  %v4018_v28 = vrot.slane %v6587_v54, 5 }
0x108f   : > { %v4031_v53 = vadd.f32 %v4015_v7, %v3945_v33  ;;  %v3916_v55 = vrot.slane %v3915_v6, 2  ;;  %v3953_v61 = vrot.slane %v3952_v46, 4 }
0x1090   : > { %v3998_v45 = vsel %vm1850_vm5, %v3903_v17, 0.0 }
0x1091   : > { %v6655_v41 = vrot.slane %v4031_v53, %v5699_v5  ;;  %v3917_v43 = vadd.f32 %v3916_v55, %v3915_v6  ;;  %v3954_v60 = vadd.f32 %v3953_v61, %v3952_v46  ;;  %v3818_v36 = vpop.permute.xlu1 %3817  ;;  %v3784_v27 = vpop.permute.xlu0 %3783  ;;  %v3999_v46 = vsel %vm1850_vm5, %v3904_v40, 0.0 }
0x1092   : > { %v3894_v58 = vmul.f32 %v4875_v62, %v3784_v27  ;;  %v3901_v10 = vmul.f32 %v4882_v26, %v3818_v36  ;;  %v4000_v59 = vadd.f32 %v3999_v46, %v3998_v45  ;;  %v4017_v27 = vrot.slane %v6587_v54, 4  ;;  %v4905_v46 = vld [vmem:[%s7163_s14 + $0x280] sm:$0xff] }
0x1093   : > { %v3918_v32 = vrot.slane %v3917_v43, 1  ;;  %v3955_v8 = vrot.slane %v3954_v60, 2  ;;  %4116 = vbcast.lane.b32.xlu1 %v6655_v41, 264  ;;  %4112 = vbcast.lane.b32.xlu0 %v6655_v41, 256 }
0x1094   : > { %v3964_v2 = vsel %vm1850_vm5, %v3894_v58, 0.0  ;;  %v3988_v44 = vsel %vm1850_vm5, %v3901_v10, 0.0 }
0x1095   : > { %v3919_v18 = vadd.f32 %v3918_v32, %v3917_v43  ;;  %v3956_v24 = vadd.f32 %v3955_v8, %v3954_v60  ;;  %v3965_v21 = vadd.f32 %v3964_v2, %v3963_v12  ;;  %v3837_v30 = vpop.permute.xlu1 %3836  ;;  %v3803_v1 = vpop.permute.xlu0 %3802  ;;  %v3989_v55 = vadd.f32 %v3988_v44, %v3987_v3 }
0x1096   : > { %v3898_v19 = vmul.f32 %v4879_v42, %v3803_v1  ;;  %v3905_v33 = vmul.f32 %v4886_v56, %v3837_v30  ;;  %v4019_v1 = vrot.slane %v6587_v54, 6  ;;  %v4020_v3 = vrot.slane %v6587_v54, 7 }
0x1097   : > { %v4029_v20 = vadd.f32 %v6587_v54, %v3919_v18  ;;  %v3957_v7 = vrot.slane %v3956_v24, 1  ;;  %v3966_v39 = vrot.slane %v3965_v21, 4  ;;  %v4897_v54 = vld [vmem:[%s7163_s14 + $0x240] sm:$0xff] }
0x1098   : > { %v3977_v6 = vsel %vm1850_vm5, %v3898_v19, 0.0  ;;  %v4001_v62 = vsel %vm1850_vm5, %v3905_v33, 0.0 }
0x1099   : > { %v6692_v48 = vrot.slane %v4029_v20, %v5699_v5  ;;  %v3958_v35 = vadd.f32 %v3957_v7, %v3956_v24  ;;  %v3967_v57 = vadd.f32 %v3966_v39, %v3965_v21  ;;  %v3841_v0 = vpop.permute.xlu1 %3840  ;;  %v3822_v4 = vpop.permute.xlu0 %3821  ;;  %v3978_v9 = vadd.f32 %v3977_v6, %v3976_v49 }
0x109a   : > { %v3906_v53 = vmul.f32 %v4887_v51, %v3841_v0  ;;  %v3902_v63 = vmul.f32 %v4883_v47, %v3822_v4  ;;  %v4002_v38 = vadd.f32 %v4001_v62, %v4000_v59 }
0x109b   : > { %v4032_v25 = vadd.f32 %v4016_v31, %v3958_v35  ;;  %v3968_v61 = vrot.slane %v3967_v57, 2  ;;  %4046 = vbcast.lane.b32.xlu1 %v6692_v48, 264  ;;  %4042 = vbcast.lane.b32.xlu0 %v6692_v48, 256  ;;  %v3979_v23 = vrot.slane %v3978_v9, 4  ;;  %v4906_v35 = vld [vmem:[%s7163_s14 + $0x288] sm:$0xff] }
0x109c   : > { %v3990_v13 = vsel %vm1850_vm5, %v3902_v63, 0.0  ;;  %v4003_v36 = vsel %vm1850_vm5, %v3906_v53, 0.0  ;;  %v4890_v63 = vld [vmem:[%s7163_s14 + $0x208] sm:$0xff] }
0x109d   : > { %v6701_v52 = vrot.slane %v4032_v25, %v5699_v5  ;;  %v3969_v43 = vadd.f32 %v3968_v61, %v3967_v57  ;;  %v3991_v60 = vadd.f32 %v3990_v13, %v3989_v55  ;;  %v3980_v26 = vadd.f32 %v3979_v23, %v3978_v9  ;;  %v4889_v25 = vld [vmem:[%s7163_s14 + $0x200] sm:$0xff]  ;;  %v4899_v13 = vld [vmem:[%s7163_s14 + $0x250] sm:$0xff] }
0x109e   : > { %v4004_v58 = vadd.f32 %v4003_v36, %v4002_v38  ;;  %v4914_v38 = vld [vmem:[%s7163_s14 + $0x2c8] sm:$0xff] }
0x109f   : > { %v3970_v22 = vrot.slane %v3969_v43, 1  ;;  %v3992_v31 = vrot.slane %v3991_v60, 4  ;;  %4085 = vbcast.lane.b32.xlu0 %v6620_v15, 272  ;;  %4147 = vbcast.lane.b32.xlu1 %v6701_v52, 256  ;;  %v3981_v11 = vrot.slane %v3980_v26, 2 }
0x10a0   : > { %v4005_v10 = vrot.slane %v4004_v58, 4 }
0x10a1   : > { %v3971_v14 = vadd.f32 %v3970_v22, %v3969_v43  ;;  %v3993_v29 = vadd.f32 %v3992_v31, %v3991_v60  ;;  %v3982_v12 = vadd.f32 %v3981_v11, %v3980_v26  ;;  %v4913_v60 = vld [vmem:[%s7163_s14 + $0x2c0] sm:$0xff]  ;;  %v4907_v22 = vld [vmem:[%s7163_s14 + $0x290] sm:$0xff] }
0x10a2   : > { %v4006_v40 = vadd.f32 %v4005_v10, %v4004_v58 }
0x10a3   : > { %v4033_v32 = vadd.f32 %v4017_v27, %v3971_v14  ;;  %v3994_v8 = vrot.slane %v3993_v29, 2  ;;  %4151 = vbcast.lane.b32.xlu0 %v6701_v52, 264  ;;  %4120 = vbcast.lane.b32.xlu1 %v6655_v41, 272  ;;  %v3983_v42 = vrot.slane %v3982_v12, 1 }
0x10a4   : > { %v4007_v30 = vrot.slane %v4006_v40, 2 }
0x10a5   : > { %v6710_v37 = vrot.slane %v4033_v32, %v5699_v5  ;;  %v3995_v2 = vadd.f32 %v3994_v8, %v3993_v29  ;;  %v3984_v18 = vadd.f32 %v3983_v42, %v3982_v12  ;;  %v4922_v8 = vld [vmem:[%s7163_s14 + $0x308] sm:$0xff]  ;;  %v4921_v42 = vld [vmem:[%s7163_s14 + $0x300] sm:$0xff] }
0x10a6   : > { %v4008_v50 = vadd.f32 %v4007_v30, %v4006_v40  ;;  %v4900_v30 = vld [vmem:[%s7163_s14 + $0x258] sm:$0xff] }
0x10a7   : > { %4186 = vbcast.lane.b32.xlu1 %v6710_v37, 264  ;;  %4182 = vbcast.lane.b32.xlu0 %v6710_v37, 256  ;;  %v4034_v24 = vadd.f32 %v4018_v28, %v3984_v18  ;;  %v3996_v21 = vrot.slane %v3995_v2, 1 }
0x10a8   : > { %v4009_v19 = vrot.slane %v4008_v50, 1 }
0x10a9   : > { %v6718_v56 = vrot.slane %v4034_v24, %v5699_v5  ;;  %v3997_v34 = vadd.f32 %v3996_v21, %v3995_v2 }
0x10aa   : > { %v4010_v7 = vadd.f32 %v4009_v19, %v4008_v50 }
0x10ab   : > { %4089 = vbcast.lane.b32.xlu1 %v6620_v15, 280  ;;  %4050 = vbcast.lane.b32.xlu0 %v6692_v48, 272  ;;  %v4035_v17 = vadd.f32 %v4019_v1, %v3997_v34  ;;  %v4891_v1 = vld [vmem:[%s7163_s14 + $0x210] sm:$0xff] }
0x10ac   : > { %v4036_v39 = vadd.f32 %v4020_v3, %v4010_v7 }
0x10ad   : > { %v6726_v20 = vrot.slane %v4035_v17, %v5699_v5 }
0x10ae   : > { %v6736_v51 = vrot.slane %v4036_v39, %v5699_v5  ;;  %v4898_v5 = vld [vmem:[%s7163_s14 + $0x248] sm:$0xff]  ;;  %v4915_v39 = vld [vmem:[%s7163_s14 + $0x2d0] sm:$0xff] }
0x10af   : > { %4155 = vbcast.lane.b32.xlu0 %v6701_v52, 272  ;;  %4217 = vbcast.lane.b32.xlu1 %v6718_v56, 256 }
0x10b3   : > { %4221 = vbcast.lane.b32.xlu0 %v6718_v56, 264  ;;  %4124 = vbcast.lane.b32.xlu1 %v6655_v41, 280 }
0x10b7   : > { %4190 = vbcast.lane.b32.xlu0 %v6710_v37, 272  ;;  %4252 = vbcast.lane.b32.xlu1 %v6726_v20, 256 }
0x10bb   : > { %4256 = vbcast.lane.b32.xlu0 %v6726_v20, 264  ;;  %4054 = vbcast.lane.b32.xlu1 %v6692_v48, 280 }
0x10bf   : > { %4093 = vbcast.lane.b32.xlu0 %v6620_v15, 288  ;;  %4159 = vbcast.lane.b32.xlu1 %v6701_v52, 280 }
0x10c3   : > { %4225 = vbcast.lane.b32.xlu0 %v6718_v56, 272  ;;  %4287 = vbcast.lane.b32.xlu1 %v6736_v51, 256 }
0x10c7   : > { %4291 = vbcast.lane.b32.xlu0 %v6736_v51, 264  ;;  %4128 = vbcast.lane.b32.xlu1 %v6655_v41, 288 }
0x10cb   : > { %4194 = vbcast.lane.b32.xlu0 %v6710_v37, 280  ;;  %4260 = vbcast.lane.b32.xlu1 %v6726_v20, 272 }
0x10cf   : > { %4058 = vbcast.lane.b32.xlu0 %v6692_v48, 288  ;;  %4097 = vbcast.lane.b32.xlu1 %v6620_v15, 296 }
0x10d3   : > { %4163 = vbcast.lane.b32.xlu0 %v6701_v52, 288  ;;  %4229 = vbcast.lane.b32.xlu1 %v6718_v56, 280 }
0x10d7   : > { %4295 = vbcast.lane.b32.xlu0 %v6736_v51, 272  ;;  %4132 = vbcast.lane.b32.xlu1 %v6655_v41, 296 }
0x10db   : > { %4198 = vbcast.lane.b32.xlu0 %v6710_v37, 288  ;;  %4264 = vbcast.lane.b32.xlu1 %v6726_v20, 280 }
0x10df   : > { %4062 = vbcast.lane.b32.xlu0 %v6692_v48, 296  ;;  %4101 = vbcast.lane.b32.xlu1 %v6620_v15, 304 }
0x10e3   : > { %4167 = vbcast.lane.b32.xlu0 %v6701_v52, 296  ;;  %4233 = vbcast.lane.b32.xlu1 %v6718_v56, 288 }
0x10e7   : > { %4299 = vbcast.lane.b32.xlu0 %v6736_v51, 280  ;;  %4136 = vbcast.lane.b32.xlu1 %v6655_v41, 304 }
0x10eb   : > { %4202 = vbcast.lane.b32.xlu0 %v6710_v37, 296  ;;  %4268 = vbcast.lane.b32.xlu1 %v6726_v20, 288 }
0x10ef   : > { %4066 = vbcast.lane.b32.xlu0 %v6692_v48, 304  ;;  %4105 = vbcast.lane.b32.xlu1 %v6620_v15, 312 }
0x10f3   : > { %4171 = vbcast.lane.b32.xlu0 %v6701_v52, 304  ;;  %4237 = vbcast.lane.b32.xlu1 %v6718_v56, 296 }
0x10f7   : > { %4303 = vbcast.lane.b32.xlu0 %v6736_v51, 288  ;;  %4140 = vbcast.lane.b32.xlu1 %v6655_v41, 312 }
0x10fb   : > { %4206 = vbcast.lane.b32.xlu0 %v6710_v37, 304  ;;  %4272 = vbcast.lane.b32.xlu1 %v6726_v20, 296 }
0x10fd   : > { %v4082_v15 = vpop.permute.xlu1 %4081  ;;  %v4078_v47 = vpop.permute.xlu0 %4077 }
0x10fe   : > { %v4391_v49 = vmul.f32 %v4898_v5, %v4082_v15  ;;  %v4390_v44 = vmul.f32 %v4897_v54, %v4078_v47  ;;  %v4929_v47 = vld [vmem:[%s7163_s14 + $0x340] sm:$0xff] }
0x10ff   : > { %4070 = vbcast.lane.b32.xlu0 %v6692_v48, 312  ;;  %4175 = vbcast.lane.b32.xlu1 %v6701_v52, 312 }
0x1100   : > { %v4468_v41 = vsel %vm601_vm0, %v4391_v49, 0.0  ;;  %v4467_v33 = vsel %vm601_vm0, %v4390_v44, 0.0 }
0x1101   : > { %v4469_v6 = vadd.f32 %v4468_v41, %v4467_v33  ;;  %v4908_v33 = vld [vmem:[%s7163_s14 + $0x298] sm:$0xff] }
0x1103   : > { %4241 = vbcast.lane.b32.xlu0 %v6718_v56, 304  ;;  %4307 = vbcast.lane.b32.xlu1 %v6736_v51, 296 }
0x1105   : > { %v4117_v48 = vpop.permute.xlu1 %4116  ;;  %v4113_v57 = vpop.permute.xlu0 %4112 }
0x1106   : > { %v4399_v0 = vmul.f32 %v4906_v35, %v4117_v48  ;;  %v4398_v4 = vmul.f32 %v4905_v46, %v4113_v57 }
0x1107   : > { %4210 = vbcast.lane.b32.xlu0 %v6710_v37, 312  ;;  %4276 = vbcast.lane.b32.xlu1 %v6726_v20, 304 }
0x1108   : > { %v4489_v45 = vsel %vm601_vm0, %v4399_v0, 0.0  ;;  %v4488_v9 = vsel %vm601_vm0, %v4398_v4, 0.0 }
0x1109   : > { %v4490_v53 = vadd.f32 %v4489_v45, %v4488_v9  ;;  %v4923_v9 = vld [vmem:[%s7163_s14 + $0x310] sm:$0xff] }
0x110b   : > { %4245 = vbcast.lane.b32.xlu0 %v6718_v56, 312  ;;  %4311 = vbcast.lane.b32.xlu1 %v6736_v51, 304 }
0x110d   : > { %v4047_v55 = vpop.permute.xlu1 %4046  ;;  %v4043_v61 = vpop.permute.xlu0 %4042 }
0x110e   : > { %v4383_v62 = vmul.f32 %v4890_v63, %v4047_v55  ;;  %v4382_v23 = vmul.f32 %v4889_v25, %v4043_v61 }
0x110f   : > { %4280 = vbcast.lane.b32.xlu0 %v6726_v20, 312  ;;  %4315 = vbcast.lane.b32.xlu1 %v6736_v51, 312 }
0x1110   : > { %v4447_v52 = vsel %vm601_vm0, %v4383_v62, 0.0  ;;  %v4446_v59 = vsel %vm601_vm0, %v4382_v23, 0.0  ;;  %v4937_v62 = vld [vmem:[%s7163_s14 + $0x380] sm:$0xff] }
0x1111   : > { %v4448_v43 = vadd.f32 %v4447_v52, %v4446_v59  ;;  %v4148_v26 = vpop.permute.xlu1 %4147  ;;  %v4086_v36 = vpop.permute.xlu0 %4085  ;;  %v4892_v59 = vld [vmem:[%s7163_s14 + $0x218] sm:$0xff] }
0x1112   : > { %v4392_v27 = vmul.f32 %v4899_v13, %v4086_v36  ;;  %v4406_v31 = vmul.f32 %v4913_v60, %v4148_v26 }
0x1114   : > { %v4470_v11 = vsel %vm601_vm0, %v4392_v27, 0.0  ;;  %v4509_v37 = vsel %vm601_vm0, %v4406_v31, 0.0 }
0x1115   : > { %v4471_v14 = vadd.f32 %v4470_v11, %v4469_v6  ;;  %v4121_v58 = vpop.permute.xlu1 %4120  ;;  %v4152_v29 = vpop.permute.xlu0 %4151  ;;  %v4930_v6 = vld [vmem:[%s7163_s14 + $0x348] sm:$0xff]  ;;  %v4916_v11 = vld [vmem:[%s7163_s14 + $0x2d8] sm:$0xff] }
0x1116   : > { %v4400_v12 = vmul.f32 %v4907_v22, %v4121_v58  ;;  %v4407_v32 = vmul.f32 %v4914_v38, %v4152_v29 }
0x1118   : > { %v4491_v28 = vsel %vm601_vm0, %v4400_v12, 0.0  ;;  %v4510_v10 = vsel %vm601_vm0, %v4407_v32, 0.0 }
0x1119   : > { %v4492_v2 = vadd.f32 %v4491_v28, %v4490_v53  ;;  %v4511_v18 = vadd.f32 %v4510_v10, %v4509_v37  ;;  %v4187_v24 = vpop.permute.xlu1 %4186  ;;  %v4183_v40 = vpop.permute.xlu0 %4182 }
0x111a   : > { %v4415_v21 = vmul.f32 %v4922_v8, %v4187_v24  ;;  %v4414_v56 = vmul.f32 %v4921_v42, %v4183_v40 }
0x111c   : > { %v4531_v34 = vsel %vm601_vm0, %v4415_v21, 0.0  ;;  %v4530_v50 = vsel %vm601_vm0, %v4414_v56, 0.0 }
0x111d   : > { %v4532_v17 = vadd.f32 %v4531_v34, %v4530_v50  ;;  %v4090_v19 = vpop.permute.xlu1 %4089  ;;  %v4051_v20 = vpop.permute.xlu0 %4050 }
0x111e   : > { %v4393_v3 = vmul.f32 %v4900_v30, %v4090_v19  ;;  %v4384_v7 = vmul.f32 %v4891_v1, %v4051_v20 }
0x1120   : > { %v4472_v51 = vsel %vm601_vm0, %v4393_v3, 0.0  ;;  %v4449_v5 = vsel %vm601_vm0, %v4384_v7, 0.0 }
0x1121   : > { %v4473_v54 = vadd.f32 %v4472_v51, %v4471_v14  ;;  %v4450_v15 = vadd.f32 %v4449_v5, %v4448_v43  ;;  %v4218_v49 = vpop.permute.xlu1 %4217  ;;  %v4156_v44 = vpop.permute.xlu0 %4155  ;;  %v4938_v43 = vld [vmem:[%s7163_s14 + $0x388] sm:$0xff]  ;;  %v4901_v14 = vld [vmem:[%s7163_s14 + $0x260] sm:$0xff] }
0x1122   : > { %v4408_v41 = vmul.f32 %v4915_v39, %v4156_v44  ;;  %v4422_v35 = vmul.f32 %v4929_v47, %v4218_v49 }
0x1124   : > { %v4512_v46 = vsel %vm601_vm0, %v4408_v41, 0.0  ;;  %v4551_v53 = vsel %vm601_vm0, %v4422_v35, 0.0  ;;  %v4902_v35 = vld [vmem:[%s7163_s14 + $0x268] sm:$0xff] }
0x1125   : > { %v4513_v48 = vadd.f32 %v4512_v46, %v4511_v18  ;;  %v4125_v57 = vpop.permute.xlu1 %4124  ;;  %v4222_v0 = vpop.permute.xlu0 %4221  ;;  %v4903_v46 = vld [vmem:[%s7163_s14 + $0x270] sm:$0xff] }
0x1126   : > { %v4401_v4 = vmul.f32 %v4908_v33, %v4125_v57  ;;  %v4423_v45 = vmul.f32 %v4930_v6, %v4222_v0 }
0x1128   : > { %v4493_v63 = vsel %vm601_vm0, %v4401_v4, 0.0  ;;  %v4552_v25 = vsel %vm601_vm0, %v4423_v45, 0.0  ;;  %v4945_v4 = vld [vmem:[%s7163_s14 + $0x3c0] sm:$0xff] }
0x1129   : > { %v6853_v55 = vadd.f32 %v4493_v63, %v4492_v2  ;;  %v4553_v61 = vadd.f32 %v4552_v25, %v4551_v53  ;;  %v4253_v23 = vpop.permute.xlu1 %4252  ;;  %v4191_v13 = vpop.permute.xlu0 %4190  ;;  %v4931_v2 = vld [vmem:[%s7163_s14 + $0x350] sm:$0xff]  ;;  %v4909_v45 = vld [vmem:[%s7163_s14 + $0x2a0] sm:$0xff]  ;;  %v4946_v53 = vld [vmem:[%s7163_s14 + $0x3c8] sm:$0xff] }
0x112a   : > { %v4416_v52 = vmul.f32 %v4923_v9, %v4191_v13  ;;  %v4430_v60 = vmul.f32 %v4937_v62, %v4253_v23  ;;  %v4939_v63 = vld [vmem:[%s7163_s14 + $0x390] sm:$0xff]  ;;  %v4924_v62 = vld [vmem:[%s7163_s14 + $0x318] sm:$0xff]  ;;  %v4893_v13 = vld [vmem:[%s7163_s14 + $0x220] sm:$0xff] }
0x112c   : > { %v4533_v26 = vsel %vm601_vm0, %v4416_v52, 0.0  ;;  %v4572_v58 = vsel %vm601_vm0, %v4430_v60, 0.0  ;;  %v4904_v60 = vld [vmem:[%s7163_s14 + $0x278] sm:$0xff] }
0x112d   : > { %v6865_v36 = vadd.f32 %v4533_v26, %v4532_v17  ;;  %v4055_v27 = vpop.permute.xlu1 %4054  ;;  %v4257_v22 = vpop.permute.xlu0 %4256  ;;  %v6940_v26 = vld [vmem:[%s7164_s15 + $0x8] sm:$0xff] }
0x112e   : > { %v4385_v38 = vmul.f32 %v4892_v59, %v4055_v27  ;;  %v4431_v31 = vmul.f32 %v4938_v43, %v4257_v22  ;;  %v4910_v43 = vld [vmem:[%s7163_s14 + $0x2a8] sm:$0xff] }
0x1130   : > { %v4451_v29 = vsel %vm601_vm0, %v4385_v38, 0.0  ;;  %v4573_v12 = vsel %vm601_vm0, %v4431_v31, 0.0 }
0x1131   : > { %v6876_v32 = vadd.f32 %v4451_v29, %v4450_v15  ;;  %v6878_v8 = vadd.f32 %v4573_v12, %v4572_v58  ;;  %v4160_v42 = vpop.permute.xlu1 %4159  ;;  %v4094_v37 = vpop.permute.xlu0 %4093  ;;  %v4911_v58 = vld [vmem:[%s7163_s14 + $0x2b0] sm:$0xff] }
0x1132   : > { %v4409_v28 = vmul.f32 %v4916_v11, %v4160_v42  ;;  %v4394_v10 = vmul.f32 %v4901_v14, %v4094_v37  ;;  %v4932_v42 = vld [vmem:[%s7163_s14 + $0x358] sm:$0xff] }
0x1134   : > { %v4514_v18 = vsel %vm601_vm0, %v4409_v28, 0.0  ;;  %v4474_v24 = vsel %vm601_vm0, %v4394_v10, 0.0  ;;  %v4617_v28 = vrot.slane %v6940_v26, 1 }
0x1135   : > { %v6885_v40 = vadd.f32 %v4514_v18, %v4513_v48  ;;  %v4475_v21 = vadd.f32 %v4474_v24, %v4473_v54  ;;  %v4288_v56 = vpop.permute.xlu1 %4287  ;;  %v4226_v30 = vpop.permute.xlu0 %4225 }
0x1136   : > { %v4424_v1 = vmul.f32 %v4931_v2, %v4226_v30  ;;  %v4438_v52 = vmul.f32 %v4945_v4, %v4288_v56  ;;  %v4618_v2 = vrot.slane %v6940_v26, 2  ;;  %v4947_v56 = vld [vmem:[%s7163_s14 + $0x3d0] sm:$0xff] }
0x1138   : > { %v4554_v34 = vsel %vm601_vm0, %v4424_v1, 0.0  ;;  %v4593_v18 = vsel %vm601_vm0, %v4438_v52, 0.0  ;;  %v4619_v1 = vrot.slane %v6940_v26, 3 }
0x1139   : > { %v6888_v50 = vadd.f32 %v4554_v34, %v4553_v61  ;;  %v4129_v17 = vpop.permute.xlu1 %4128  ;;  %v4292_v19 = vpop.permute.xlu0 %4291 }
0x113a   : > { %v4402_v59 = vmul.f32 %v4909_v45, %v4129_v17  ;;  %v4439_v27 = vmul.f32 %v4946_v53, %v4292_v19  ;;  %v4940_v19 = vld [vmem:[%s7163_s14 + $0x398] sm:$0xff] }
0x113c   : > { %v4495_v24 = vsel %vm601_vm0, %v4402_v59, 0.0  ;;  %v4594_v34 = vsel %vm601_vm0, %v4439_v27, 0.0 }
0x113d   : > { %v4261_v20 = vpop.permute.xlu1 %4260  ;;  %v4195_v3 = vpop.permute.xlu0 %4194  ;;  %v4496_v4 = vadd.f32 %v4495_v24, %v6853_v55  ;;  %v4912_v55 = vld [vmem:[%s7163_s14 + $0x2b8] sm:$0xff] }
0x113e   : > { %v4432_v22 = vmul.f32 %v4939_v63, %v4261_v20  ;;  %v4417_v31 = vmul.f32 %v4924_v62, %v4195_v3  ;;  %v4925_v20 = vld [vmem:[%s7163_s14 + $0x320] sm:$0xff]  ;;  %v4595_v63 = vadd.f32 %v4594_v34, %v4593_v18 }
0x1140   : > { %v4575_v17 = vsel %vm601_vm0, %v4432_v22, 0.0 }
0x1141   : > { %v4098_v7 = vpop.permute.xlu1 %4097  ;;  %v4059_v39 = vpop.permute.xlu0 %4058 }
0x1142   : > { %v4395_v0 = vmul.f32 %v4902_v35, %v4098_v7  ;;  %v4386_v14 = vmul.f32 %v4893_v13, %v4059_v39  ;;  %v4535_v39 = vsel %vm601_vm0, %v4417_v31, 0.0 }
0x1144   : > { %v4476_v23 = vsel %vm601_vm0, %v4395_v0, 0.0 }
0x1145   : > { %v4230_v51 = vpop.permute.xlu1 %4229  ;;  %v4164_v5 = vpop.permute.xlu0 %4163  ;;  %v4477_v11 = vadd.f32 %v4476_v23, %v4475_v21  ;;  %v4917_v21 = vld [vmem:[%s7163_s14 + $0x2e0] sm:$0xff] }
0x1146   : > { %v4410_v45 = vmul.f32 %v4917_v21, %v4164_v5  ;;  %v4576_v5 = vadd.f32 %v4575_v17, %v6878_v8  ;;  %v4895_v8 = vld [vmem:[%s7163_s14 + $0x230] sm:$0xff] }
0x1149   : > { %v4133_v15 = vpop.permute.xlu1 %4132  ;;  %v4296_v47 = vpop.permute.xlu0 %4295 }
0x114a   : > { %v4403_v37 = vmul.f32 %v4910_v43, %v4133_v15  ;;  %v4453_v15 = vsel %vm601_vm0, %v4386_v14, 0.0  ;;  %v4440_v53 = vmul.f32 %v4947_v56, %v4296_v47  ;;  %v4536_v47 = vadd.f32 %v4535_v39, %v6865_v36  ;;  %v4919_v36 = vld [vmem:[%s7163_s14 + $0x2f0] sm:$0xff] }
0x114b   : > { %v4454_v52 = vadd.f32 %v4453_v15, %v6876_v32 }
0x114c   : > { %v4596_v31 = vsel %vm601_vm0, %v4440_v53, 0.0 }
0x114d   : > { %v6890_v49 = vpop.permute.xlu1 %4264  ;;  %v6892_v54 = vpop.permute.xlu0 %4198 }
0x114e   : > { %v4433_v62 = vmul.f32 %v4940_v19, %v6890_v49  ;;  %v4418_v23 = vmul.f32 %v4925_v20, %v6892_v54 }
0x1151   : > { %v4102_v44 = vpop.permute.xlu1 %4101  ;;  %v6894_v41 = vpop.permute.xlu0 %4062 }
0x1152   : > { %v4396_v9 = vmul.f32 %v4903_v46, %v4102_v44  ;;  %v4425_v44 = vmul.f32 %v4932_v42, %v4230_v51  ;;  %v4918_v51 = vld [vmem:[%s7163_s14 + $0x2e8] sm:$0xff] }
0x1154   : > { %v4478_v38 = vsel %vm601_vm0, %v4396_v9, 0.0  ;;  %v4497_v9 = vsel %vm601_vm0, %v4403_v37, 0.0  ;;  %v4556_v49 = vsel %vm601_vm0, %v4425_v44, 0.0  ;;  %v4941_v37 = vld [vmem:[%s7163_s14 + $0x3a0] sm:$0xff] }
0x1155   : > { %v6896_v33 = vpop.permute.xlu1 %4233  ;;  %v6898_v6 = vpop.permute.xlu0 %4167  ;;  %v4479_v30 = vadd.f32 %v4478_v38, %v4477_v11  ;;  %v4498_v54 = vadd.f32 %v4497_v9, %v4496_v4  ;;  %v4516_v38 = vsel %vm601_vm0, %v4410_v45, 0.0  ;;  %v4948_v11 = vld [vmem:[%s7163_s14 + $0x3d8] sm:$0xff]  ;;  %v4557_v56 = vadd.f32 %v4556_v49, %v6888_v50 }
0x1159   : > { %v4137_v48 = vpop.permute.xlu1 %4136  ;;  %v6906_v57 = vpop.permute.xlu0 %4299 }
0x115a   : > { %v4404_v3 = vmul.f32 %v4911_v58, %v4137_v48  ;;  %v4894_v48 = vld [vmem:[%s7163_s14 + $0x228] sm:$0xff]  ;;  %v4577_v58 = vsel %vm601_vm0, %v4433_v62, 0.0  ;;  %v4441_v34 = vmul.f32 %v4948_v11, %v6906_v57 }
0x115b   : > { %v4387_v43 = vmul.f32 %v4894_v48, %v6894_v41  ;;  %v4411_v41 = vmul.f32 %v4918_v51, %v6898_v6  ;;  %v4578_v15 = vadd.f32 %v4577_v58, %v4576_v5  ;;  %v4934_v57 = vld [vmem:[%s7163_s14 + $0x368] sm:$0xff] }
0x115c   : > { %v4499_v59 = vsel %vm601_vm0, %v4404_v3, 0.0  ;;  %v4517_v3 = vadd.f32 %v4516_v38, %v6885_v40  ;;  %v4920_v40 = vld [vmem:[%s7163_s14 + $0x2f8] sm:$0xff]  ;;  %v4598_v48 = vsel %vm601_vm0, %v4441_v34, 0.0  ;;  %v4942_v51 = vld [vmem:[%s7163_s14 + $0x3a8] sm:$0xff] }
0x115d   : > { %v6920_v25 = vpop.permute.xlu1 %4268  ;;  %v6922_v61 = vpop.permute.xlu0 %4202  ;;  %v4500_v42 = vadd.f32 %v4499_v59, %v4498_v54  ;;  %v4518_v39 = vsel %vm601_vm0, %v4411_v41, 0.0 }
0x115e   : > { %v4519_v53 = vadd.f32 %v4518_v39, %v4517_v3 }
0x1161   : > { %v4106_v29 = vpop.permute.xlu1 %4105  ;;  %v4067_v12 = vpop.permute.xlu0 %4066 }
0x1162   : > { %v4397_v10 = vmul.f32 %v4904_v60, %v4106_v29  ;;  %v4933_v60 = vld [vmem:[%s7163_s14 + $0x360] sm:$0xff]  ;;  %v4537_v29 = vsel %vm601_vm0, %v4418_v23, 0.0  ;;  %v4388_v24 = vmul.f32 %v4895_v8, %v4067_v12  ;;  %v4926_v12 = vld [vmem:[%s7163_s14 + $0x328] sm:$0xff] }
0x1163   : > { %v4426_v18 = vmul.f32 %v4933_v60, %v6896_v33  ;;  %v4434_v33 = vmul.f32 %v4941_v37, %v6920_v25  ;;  %v4538_v50 = vadd.f32 %v4537_v29, %v4536_v47  ;;  %v4896_v25 = vld [vmem:[%s7163_s14 + $0x238] sm:$0xff]  ;;  %v4949_v23 = vld [vmem:[%s7163_s14 + $0x3e0] sm:$0xff] }
0x1164   : > { %v4480_v7 = vsel %vm601_vm0, %v4397_v10, 0.0  ;;  %v4457_v45 = vsel %vm601_vm0, %v4388_v24, 0.0 }
0x1165   : > { %v4481_v35 = vadd.f32 %v4480_v7, %v4479_v30  ;;  %v6971_v46 = vpop.permute.xlu1 %4237  ;;  %v4172_v0 = vpop.permute.xlu0 %4171  ;;  %v4455_v30 = vsel %vm601_vm0, %v4387_v43, 0.0  ;;  %v4597_v7 = vadd.f32 %v4596_v31, %v4595_v63  ;;  %v4558_v4 = vsel %vm601_vm0, %v4426_v18, 0.0 }
0x1166   : > { %v4412_v21 = vmul.f32 %v4919_v36, %v4172_v0  ;;  %v4456_v0 = vadd.f32 %v4455_v30, %v4454_v52  ;;  %v4419_v63 = vmul.f32 %v4926_v12, %v6922_v61  ;;  %v4579_v5 = vsel %vm601_vm0, %v4434_v33, 0.0  ;;  %v4927_v52 = vld [vmem:[%s7163_s14 + $0x330] sm:$0xff]  ;;  %v4928_v30 = vld [vmem:[%s7163_s14 + $0x338] sm:$0xff] }
0x1167   : > { %v4482_v13 = vrot.slane %v4481_v35, 4  ;;  %v4427_v47 = vmul.f32 %v4934_v57, %v6971_v46  ;;  %v4559_v29 = vadd.f32 %v4558_v4, %v4557_v56  ;;  %v4580_v34 = vadd.f32 %v4579_v5, %v4578_v15 }
0x1168   : > { %v4520_v9 = vsel %vm601_vm0, %v4412_v21, 0.0  ;;  %v4458_v54 = vadd.f32 %v4457_v45, %v4456_v0  ;;  %v4539_v37 = vsel %vm601_vm0, %v4419_v63, 0.0 }
0x1169   : > { %v4483_v27 = vadd.f32 %v4482_v13, %v4481_v35  ;;  %v4141_v32 = vpop.permute.xlu1 %4140  ;;  %v4304_v22 = vpop.permute.xlu0 %4303  ;;  %v4521_v43 = vadd.f32 %v4520_v9, %v4519_v53  ;;  %v4951_v9 = vld [vmem:[%s7163_s14 + $0x3f0] sm:$0xff] }
0x116a   : > { %v4405_v14 = vmul.f32 %v4912_v55, %v4141_v32 }
0x116b   : > { %v4484_v10 = vrot.slane %v4483_v27, 2 }
0x116c   : > { %v4501_v6 = vsel %vm601_vm0, %v4405_v14, 0.0  ;;  %v4935_v14 = vld [vmem:[%s7163_s14 + $0x370] sm:$0xff] }
0x116d   : > { %v4502_v17 = vadd.f32 %v4501_v6, %v4500_v42  ;;  %v4273_v19 = vpop.permute.xlu1 %4272  ;;  %v4207_v20 = vpop.permute.xlu0 %4206  ;;  %v4485_v44 = vadd.f32 %v4484_v10, %v4483_v27  ;;  %v4442_v27 = vmul.f32 %v4949_v23, %v4304_v22  ;;  %v4599_v42 = vadd.f32 %v4598_v48, %v4597_v7  ;;  %v4950_v10 = vld [vmem:[%s7163_s14 + $0x3e8] sm:$0xff] }
0x116e   : > { %v4435_v8 = vmul.f32 %v4942_v51, %v4273_v19  ;;  %v4420_v31 = vmul.f32 %v4927_v52, %v4207_v20  ;;  %v4560_v22 = vsel %vm601_vm0, %v4427_v47, 0.0 }
0x116f   : > { %v4503_v35 = vrot.slane %v4502_v17, 4  ;;  %v4486_v49 = vrot.slane %v4485_v44, 1  ;;  %v4600_v56 = vsel %vm601_vm0, %v4442_v27, 0.0  ;;  %v4561_v57 = vadd.f32 %v4560_v22, %v4559_v29  ;;  %v4952_v27 = vld [vmem:[%s7163_s14 + $0x3f8] sm:$0xff] }
0x1170   : > { %v4541_v20 = vsel %vm601_vm0, %v4420_v31, 0.0  ;;  %v4601_v0 = vadd.f32 %v4600_v56, %v4599_v42 }
0x1171   : > { %v4504_v62 = vadd.f32 %v4503_v35, %v4502_v17  ;;  %v4176_v13 = vpop.permute.xlu1 %4175  ;;  %v4071_v55 = vpop.permute.xlu0 %4070  ;;  %v4487_v18 = vadd.f32 %v4486_v49, %v4485_v44  ;;  %v4581_v17 = vsel %vm601_vm0, %v4435_v8, 0.0  ;;  %v4540_v44 = vadd.f32 %v4539_v37, %v4538_v50  ;;  %v4936_v50 = vld [vmem:[%s7163_s14 + $0x378] sm:$0xff] }
0x1172   : > { %v4413_v61 = vmul.f32 %v4920_v40, %v4176_v13  ;;  %v4389_v59 = vmul.f32 %v4896_v25, %v4071_v55  ;;  %v4943_v40 = vld [vmem:[%s7163_s14 + $0x3b0] sm:$0xff]  ;;  %v4582_v53 = vadd.f32 %v4581_v17, %v4580_v34  ;;  %v4944_v8 = vld [vmem:[%s7163_s14 + $0x3b8] sm:$0xff] }
0x1173   : > { %v4505_v60 = vrot.slane %v4504_v62, 2  ;;  %v4633_v25 = vadd.f32 %v4617_v28, %v4487_v18  ;;  %v4542_v48 = vadd.f32 %v4541_v20, %v4540_v44 }
0x1174   : > { %v4522_v36 = vsel %vm601_vm0, %v4413_v61, 0.0  ;;  %v4459_v32 = vsel %vm601_vm0, %v4389_v59, 0.0 }
0x1175   : > { %v4506_v38 = vadd.f32 %v4505_v60, %v4504_v62  ;;  %v4523_v41 = vadd.f32 %v4522_v36, %v4521_v43  ;;  %v4460_v46 = vadd.f32 %v4459_v32, %v4458_v54  ;;  %v4308_v11 = vpop.permute.xlu1 %4307  ;;  %v4242_v58 = vpop.permute.xlu0 %4241  ;;  %v4648_v49 = vrot.slane %v4633_v25, 7 }
0x1176   : > { %v4428_v19 = vmul.f32 %v4935_v14, %v4242_v58  ;;  %v4443_v39 = vmul.f32 %v4950_v10, %v4308_v11 }
0x1177   : > { %v4507_v24 = vrot.slane %v4506_v38, 1  ;;  %v4524_v21 = vrot.slane %v4523_v41, 4  ;;  %v4461_v6 = vrot.slane %v4460_v46, 4 }
0x1178   : > { %v4562_v63 = vsel %vm601_vm0, %v4428_v19, 0.0  ;;  %v4602_v28 = vsel %vm601_vm0, %v4443_v39, 0.0 }
0x1179   : > { %v4525_v3 = vadd.f32 %v4524_v21, %v4523_v41  ;;  %v4462_v7 = vadd.f32 %v4461_v6, %v4460_v46  ;;  %v4277_v33 = vpop.permute.xlu1 %4276  ;;  %v4211_v12 = vpop.permute.xlu0 %4210  ;;  %v4508_v35 = vadd.f32 %v4507_v24, %v4506_v38  ;;  %v4563_v60 = vadd.f32 %v4562_v63, %v4561_v57 }
0x117a   : > { %v4421_v15 = vmul.f32 %v4928_v30, %v4211_v12  ;;  %v4436_v13 = vmul.f32 %v4943_v40, %v4277_v33  ;;  %v4603_v36 = vadd.f32 %v4602_v28, %v4601_v0  ;;  %v4620_v57 = vrot.slane %v6940_v26, 4 }
0x117b   : > { %v4526_v4 = vrot.slane %v4525_v3, 2  ;;  %v4463_v45 = vrot.slane %v4462_v7, 2  ;;  %v4634_v47 = vadd.f32 %v4618_v2, %v4508_v35 }
0x117c   : > { %v4543_v62 = vsel %vm601_vm0, %v4421_v15, 0.0  ;;  %v4583_v46 = vsel %vm601_vm0, %v4436_v13, 0.0 }
0x117d   : > { %v4527_v23 = vadd.f32 %v4526_v4, %v4525_v3  ;;  %v4464_v51 = vadd.f32 %v4463_v45, %v4462_v7  ;;  %v4312_v55 = vpop.permute.xlu1 %4311  ;;  %v4246_v5 = vpop.permute.xlu0 %4245  ;;  %v4544_v52 = vadd.f32 %v4543_v62, %v4542_v48  ;;  %v4650_v29 = vrot.slane %v4634_v47, 6 }
0x117e   : > { %v4444_v61 = vmul.f32 %v4951_v9, %v4312_v55  ;;  %v4429_v59 = vmul.f32 %v4936_v50, %v4246_v5  ;;  %v4584_v6 = vadd.f32 %v4583_v46, %v4582_v53  ;;  %v4621_v45 = vrot.slane %v6940_v26, 5 }
0x117f   : > { %v4528_v54 = vrot.slane %v4527_v23, 1  ;;  %v4465_v43 = vrot.slane %v4464_v51, 1  ;;  %v4545_v32 = vrot.slane %v4544_v52, 4  ;;  %v4623_v55 = vrot.slane %v6940_v26, 7 }
0x1180   : > { %v4604_v38 = vsel %vm601_vm0, %v4444_v61, 0.0  ;;  %v4564_v2 = vsel %vm601_vm0, %v4429_v59, 0.0  ;;  %v4622_v5 = vrot.slane %v6940_v26, 6 }
0x1181   : > { %v4529_v31 = vadd.f32 %v4528_v54, %v4527_v23  ;;  %v4466_v41 = vadd.f32 %v4465_v43, %v4464_v51  ;;  %v4565_v11 = vadd.f32 %v4564_v2, %v4563_v60  ;;  %v4316_v14 = vpop.permute.xlu1 %4315  ;;  %v4281_v58 = vpop.permute.xlu0 %4280  ;;  %v4546_v42 = vadd.f32 %v4545_v32, %v4544_v52 }
0x1182   : > { %v4445_v37 = vmul.f32 %v4952_v27, %v4316_v14  ;;  %v4437_v22 = vmul.f32 %v4944_v8, %v4281_v58  ;;  %v4605_v24 = vadd.f32 %v4604_v38, %v4603_v36 }
0x1183   : > { %v4635_v10 = vadd.f32 %v4619_v1, %v4529_v31  ;;  %v4632_v18 = vadd.f32 %v6940_v26, %v4466_v41  ;;  %v4566_v21 = vrot.slane %v4565_v11, 4  ;;  %v4547_v30 = vrot.slane %v4546_v42, 2 }
0x1184   : > { %v4606_v34 = vsel %vm601_vm0, %v4445_v37, 0.0  ;;  %v4585_v56 = vsel %vm601_vm0, %v4437_v22, 0.0  ;;  %v4957_v22 = vld [vmem:[%s7166_s17 + $0x1] ss:$0 sm:$0xff] }
0x1185   : > { %v4652_v17 = vrot.slane %v4635_v10, 5  ;;  %v4649_v19 = vsel %vm2590_vm6, %v4648_v49, %v4632_v18  ;;  %v4567_v20 = vadd.f32 %v4566_v21, %v4565_v11  ;;  %v4607_v3 = vadd.f32 %v4606_v34, %v4605_v24 }
0x1186   : > { %v4548_v7 = vadd.f32 %v4547_v30, %v4546_v42  ;;  %v4586_v39 = vadd.f32 %v4585_v56, %v4584_v6  ;;  %v4651_v33 = vsel %vm2593_vm7, %v4650_v29, %v4649_v19 }
0x1187   : > { %v4568_v1 = vrot.slane %v4567_v20, 2  ;;  %v4608_v12 = vrot.slane %v4607_v3, 4  ;;  %v4653_v44 = vsel %vm2596_vm8, %v4652_v17, %v4651_v33 }
0x1188   : > { %v4549_v35 = vrot.slane %v4548_v7, 1  ;;  %v4587_v40 = vrot.slane %v4586_v39, 4 }
0x1189   : > { %v4569_v15 = vadd.f32 %v4568_v1, %v4567_v20  ;;  %v4609_v25 = vadd.f32 %v4608_v12, %v4607_v3 }
0x118a   : > { %v4550_v0 = vadd.f32 %v4549_v35, %v4548_v7  ;;  %v4588_v4 = vadd.f32 %v4587_v40, %v4586_v39 }
0x118b   : > { %v4570_v9 = vrot.slane %v4569_v15, 1  ;;  %v4610_v50 = vrot.slane %v4609_v25, 2 }
0x118c   : > { %v4636_v53 = vadd.f32 %v4620_v57, %v4550_v0  ;;  %v4589_v48 = vrot.slane %v4588_v4, 2 }
0x118d   : > { %v4571_v63 = vadd.f32 %v4570_v9, %v4569_v15  ;;  %v4611_v62 = vadd.f32 %v4610_v50, %v4609_v25 }
0x118e   : > { %v4654_v23 = vrot.slane %v4636_v53, 4  ;;  %v4590_v51 = vadd.f32 %v4589_v48, %v4588_v4 }
0x118f   : > { %v4637_v28 = vadd.f32 %v4621_v45, %v4571_v63  ;;  %v4612_v13 = vrot.slane %v4611_v62, 1 }
0x1190   : > { %v4591_v47 = vrot.slane %v4590_v51, 1  ;;  %v4655_v52 = vsel %vm2599_vm9, %v4654_v23, %v4653_v44 }
0x1191   : > { %v4656_v61 = vrot.slane %v4637_v28, 3  ;;  %v4613_v59 = vadd.f32 %v4612_v13, %v4611_v62 }
0x1192   : > { %v4592_v49 = vadd.f32 %v4591_v47, %v4590_v51 }
0x1193   : > { %v4639_v54 = vadd.f32 %v4623_v55, %v4613_v59  ;;  %v4657_v43 = vsel %vm2602_vm10, %v4656_v61, %v4655_v52 }
0x1194   : > { %v4638_v60 = vadd.f32 %v4622_v5, %v4592_v49 }
0x1195   : > { %v4660_v27 = vrot.slane %v4639_v54, 1 }
0x1196   : > { %v4658_v8 = vrot.slane %v4638_v60, 2 }
0x1198   : > { %v4659_v36 = vsel %vm2605_vm11, %v4658_v8, %v4657_v43 }
0x1199   : > { %v4661_v32 = vsel %vm2608_vm12, %v4660_v27, %v4659_v36 }
0x119a   : > { %v4663_v38 = vadd.f32 %v4661_v32, %v6506_v16  ;;  %v4956_v16 = vld [vmem:[%s7165_s16 + $0x1] ss:$0 sm:$0xff] }
0x119c   : > { %v4668_v26 = vsel %vm601_vm0, %v4663_v38, 0.0 }
0x119d   : > { %4669 = vadd.xlane.f32.xlu0 %v4668_v26 }
0x1226   : > { %v4670_v2 = vpop.xlane.xlu0 %4669 }
0x1227   : > { %v4671_v31 = vmul.f32 0.03125, %v4670_v2 }
0x1229   : > { %v4672_v41 = vsub.f32 %v4663_v38, %v4671_v31 }
0x122b   : > { %v4673_v46 = vmul.f32 %v4672_v41, %v4672_v41 }
0x122d   : > { %v4674_v11 = vsel %vm601_vm0, %v4673_v46, 0.0 }
0x122e   : > { %4675 = vadd.xlane.f32.xlu1 %v4674_v11 }
0x12b7   : > { %v4676_v14 = vpop.xlane.xlu1 %4675 }
0x12b8   : > { %v4677_v58 = vmul.f32 0.03125, %v4676_v14 }
0x12ba   : > { %v4678_v29 = vadd.f32 1e-05, %v4677_v58 }
0x12bc   : > { %5287 = vrsqrt.f32 %v4678_v29 }
0x12c9   : > { %v5288_v42 = vpop.eup %5287 }
0x12ca   : > { %v4680_v37 = vmul.f32 %v5288_v42, %v4672_v41 }
0x12cc   : > { %v4687_v10 = vmul.f32 %v4956_v16, %v4680_v37 }
0x12ce   : > { %v4694_v18 = vadd.f32 %v4957_v22, %v4687_v10 }
0x12d0   : > { %4695 = vst.msk [vmem:[%s579_s23] sm:$0xff] %vm601_vm0, %v4694_v18 }
0x12d1   : > { %5303 = shalt.err (!%p5300_p3)
}
0x12d2   : > { %s5304_s18 = scalar_lea.hbm %s4708_s3, 128  ;;  %s5308_s29 = scalar_lea.hbm %s7218_s19, 256 }
0x12d3   : > { %p5305_p4 = scmp.ne.s32.totalorder %s4708_s3, %s5304_s18  ;;  %p5309_p9 = scmp.lt.s32.totalorder %s4708_s3, %s7218_s19 }
0x12d4   : > { %p5310_p10 = scmp.lt.s32.totalorder %s5308_s29, %s5304_s18 }
0x12d5   : > { %p5306_p7 = pnand %p5305_p4, %p5494_p5 }
0x12d6   : > { %p5311_p11 = por %p5310_p10, %p5309_p9 }
0x12d7   : > { %p5307_p8 = pneg %p5306_p7 }
0x12d9   : > { %p5312_p12 = pnand %p5311_p11, %p5307_p8 }
0x12db   : > { %5315 = shalt.err (!%p5312_p12)
}
0x12dc   : > { %5202 = dma.vmem_to_hbm [thread:$0]  (%p5494_p5), %s4711_s1, 128, %s4708_s3, %s4697_s4  }
0x12dd PF: > { %s7219_s21 = sld [smem:[#allocation7_spill]] }
0x12de   : > { %s7220_s30 = sld [smem:[#allocation5_spill]] }
0x12e3   : > { %p5208_p13 = scmp.ge.s32.totalorder %s7219_s21, 2 }
0x12e4   : > { %s4722_s24 = sand.u32 1, %s7220_s30  }
0x12e5   : > { %p5205_p0 = pnand %p5208_p13, %p5498_p6  ;;  %s4723_s0 = scalar_lea.sflag [#allocation3], %s4722_s24 }
0x12e7   : > { %p5206_p1 = pneg %p5205_p0 }
0x12e9   : > { %5333 = dma.done.wait (%p5206_p1), %s4723_s0, 128  }
0x12ea   : > { %5335 = vsyncadd (%p5206_p1), %s4723_s0, 4294967168  ;;  %s7222_s30 = sld [smem:[#allocation8_spill]]  ;;  %s7225_s27 = smov %s5342_s28 }
0x12eb   : > { %s7223_s18 = sld [smem:[#allocation6_spill]] }
0x12ec   : > { %s7224_s29 = sld [smem:[#allocation9_spill]] }
0x12f0   : > { %p28_p2 = scmp.ge.s32.totalorder %s7222_s30, 4  }
0x12f1   : > { %s7226_s28 = smov %s7223_s18 }
0x12f2   :  { %30 = sbr.rel (!%p28_p2) target bundleno = 10 (0xa), region = 146 }
0x12f7   :  { %4728 = vsyncpa [#allocation3], 1 }
0x12f8   :  { %4730 = vsyncpa [#allocation3 + $0x1], 1 }

</bundles_post_ra>
